<compile_context>
chip_gen: v5e
topology: v5e:2x2
jax: 0.10.0
libtpu: 0.0.40
codegen_flags: <defaults>
</compile_context>

<pallas_src>
import math

import numpy as np
import jax
import jax.numpy as jnp
from jax.experimental import pallas as pl
from jax.experimental.pallas import tpu as pltpu


def _jax_reference(proposals, d_model, max_time, temperature=10000.0,
                   scale=2.0 * math.pi):
    """Pure-JAX mirror of the PyTorch forward (also the small-problem fast path)."""
    B, N = proposals.shape
    p = proposals.astype(jnp.float32) + 1.0
    dim_t = jnp.arange(d_model, dtype=jnp.float32)
    dim_t = temperature ** (2.0 * jnp.floor(dim_t / 2.0) / d_model)
    p = p / max_time * scale
    pos = p[:, :, None] / dim_t
    pos = jnp.stack((jnp.sin(pos[:, :, 0::2]), jnp.cos(pos[:, :, 1::2])), axis=3)
    return pos.reshape(B, N, -1)


def _make_kernel(D, R, W, scale, max_time, temperature):
    """Kernel body producing lane-dense output rows of W = R*D lanes."""
    amp = float(scale) / float(max_time)                 # multiplies (proposal + 1)
    k_exp = -2.0 * math.log(float(temperature)) / float(D)
    d_bits = (D.bit_length() - 1) if R > 1 else 0        # D is a power of 2 iff R > 1

    def kernel(p_ref, o_ref):
        # Per-lane constants rebuilt from a lane iota (scalars folded at trace
        # time); costs ~a dozen vreg ops + one exp per grid step -- negligible.
        j = jax.lax.broadcasted_iota(jnp.int32, (1, W), 1)     # lane index
        d = (j & (D - 1)) if R > 1 else j                      # feature index in [0, D)
        grp = (j >> d_bits) if R > 1 else None                 # which proposal of the row
        half = (d >> 1).astype(jnp.float32)                    # floor(d / 2)
        coef = amp * jnp.exp(half * k_exp)                     # scale / (max_time * dim_t[d])
        # "+1" shift -> +coef ; cos(x) == sin(x + pi/2) on odd features.
        offset = coef + jnp.where((d & 1) == 1, math.pi / 2.0, 0.0)

        p = p_ref[...]                                         # (Mt, R) f32
        p_exp = p[:, R - 1:R]                                  # (Mt, 1)
        for g in range(R - 2, -1, -1):                         # lane-expand: R-1 selects
            p_exp = jnp.where(grp == g, p[:, g:g + 1], p_exp)  # -> (Mt, W)
        o_ref[...] = jnp.sin(p_exp * coef + offset).astype(o_ref.dtype)

    return kernel


def _pick_block_rows(M, target_rows):
    """Rows per block: multiple of 8, and >=2 grid tiles when possible (v7x megacore)."""
    if M <= 8:
        return M                                    # single full-extent block (legal)
    half = (M + 1) // 2
    rows = min(int(target_rows), ((half + 7) // 8) * 8)
    return max(8, (rows // 8) * 8)


def position_embedding_sine(proposals: jax.Array,
                            *,
                            d_model: int,
                            max_time: float,
                            temperature: float = 10000.0,
                            scale: float = 2.0 * math.pi,
                            out_dtype=jnp.float32,
                            block_rows: int = 8192,          # ~4 MiB f32 output / step
                            small_bytes_cutoff: int = 256 * 1024) -> jax.Array:
    """proposals: [B, N] -> [B, N, d_model] sinusoidal position embedding."""
    B, N = proposals.shape
    D = int(d_model)
    if D % 2 != 0:
        raise ValueError("d_model must be even for the sin/cos interleave")
    out_dtype = np.dtype(out_dtype)

    # Lane-dense packing factor: R consecutive proposals share one W-lane row.
    if D % 128 == 0:
        R, W = 1, D
    elif 128 % D == 0:
        R, W = 128 // D, 128
    else:
        R, W = None, None

    out_bytes = B * N * D * out_dtype.itemsize
    if R is None or out_bytes <= small_bytes_cutoff:
        # Tiny problems: pallas_call fixed launch/DMA-setup cost dominates.
        # TODO(synk): add a (non-lane-dense) Pallas path for d_model values that
        # neither divide 128 nor are a multiple of 128.
        return _jax_reference(proposals, D, max_time, temperature, scale).astype(out_dtype)

    # Flatten (B, N) -> (L,), pad to a multiple of R so (M, R) / (M, W) are exact
    # row-major reinterpretations (padded rows are computed then discarded).
    L = B * N
    flat = proposals.reshape(L).astype(jnp.float32)
    pad = (-L) % R
    if pad:
        flat = jnp.pad(flat, (0, pad))
    M = (L + pad) // R
    prop2 = flat.reshape(M, R)

    mt = _pick_block_rows(M, block_rows)

    # VMEM budget: input block (R lanes pad to a 128-lane tile in VMEM) + output
    # block, double-buffered, + headroom.  Cap so it fits every generation's
    # scoped VMEM (v5e default 16 MiB, v7x physical 64 MiB).
    def _blocks(rows):
        rp = ((rows + 7) // 8) * 8
        return rp * 128 * 4, rp * W * out_dtype.itemsize
    in_block, out_block = _blocks(mt)
    while mt > 8 and 2 * (in_block + out_block) > (24 << 20):
        mt = max(8, (mt // 2 // 8) * 8)
        in_block, out_block = _blocks(mt)
    vmem_limit = int(min(30 << 20, max(2 * (in_block + out_block) + (4 << 20), 8 << 20)))

    grid = (pl.cdiv(M, mt),)
    cost = pl.CostEstimate(
        flops=2 * M * W,                                   # expand + fma per element
        transcendentals=M * W,                             # one sin per element
        bytes_accessed=4 * M * R + out_dtype.itemsize * M * W,
    )

    kernel = _make_kernel(D, R, W, float(scale), float(max_time), float(temperature))
    out2 = pl.pallas_call(
        kernel,
        out_shape=jax.ShapeDtypeStruct((M, W), out_dtype),
        grid_spec=pl.GridSpec(
            grid=grid,
            in_specs=[pl.BlockSpec((mt, R), lambda i: (i, 0))],
            out_specs=pl.BlockSpec((mt, W), lambda i: (i, 0)),
        ),
        compiler_params=pltpu.CompilerParams(
            dimension_semantics=("parallel",),             # shard row-tiles across TCs
            vmem_limit_bytes=vmem_limit,
        ),
        cost_estimate=cost,
    )(prop2)

    # (M, W) is row-major identical to (M*R, D); drop padding, restore (B, N, D).
    return out2.reshape(M * R, D)[:L].reshape(B, N, D)


if __name__ == "__main__":
    # synthetic "params": arch.d_model = 32, data_generation.n_timesteps = 100
    D_MODEL = 32
    MAX_TIME = 100.0

    key = jax.random.PRNGKey(0)
    k1, k2 = jax.random.split(key)

    # Pallas path: small, but large enough to exercise the tiled lane-dense
    # kernel (B*N*D = 2*512*32 -> M = 256 rows of 128 lanes, 2 grid tiles).
    B, N = 2, 512
    proposals = jax.random.uniform(k1, (B, N), dtype=jnp.float32,
                                   minval=0.0, maxval=MAX_TIME - 1.0)
    out = position_embedding_sine(proposals, d_model=D_MODEL, max_time=MAX_TIME,
                                  small_bytes_cutoff=0)      # force the Pallas kernel
    out = jax.block_until_ready(out)
    ref = _jax_reference(proposals, D_MODEL, MAX_TIME)
    assert out.shape == (B, N, D_MODEL), out.shape
    err = float(jnp.max(jnp.abs(out - ref)))
    assert err < 3e-5, err

    # Tiny problem: exercises the small-problem (plain XLA) fast path.
    small = jax.random.uniform(k2, (2, 8), dtype=jnp.float32,
                               minval=0.0, maxval=MAX_TIME - 1.0)
    out_s = jax.block_until_ready(
        position_embedding_sine(small, d_model=D_MODEL, max_time=MAX_TIME))
    ref_s = _jax_reference(small, D_MODEL, MAX_TIME)
    assert out_s.shape == (2, 8, D_MODEL), out_s.shape
    assert jnp.allclose(out_s, ref_s, atol=3e-5, rtol=1e-5)

    print("KERNEL_OK")
</pallas_src>

<mosaic_0001>
module attributes {stable_mosaic.version = 11 : i64} {
  func.func @kernel(%arg0: i32, %arg1: memref<128x4xf32, #tpu.memory_space<vmem>>, %arg2: memref<128x128xf32, #tpu.memory_space<vmem>>) attributes {dimension_semantics = [#tpu.dimension_semantics<parallel>], iteration_bounds = array<i64: 2>, scalar_prefetch = 0 : i64, scratch_operands = 0 : i64, tpu.core_type = #tpu.core_type<tc>, window_params = [{transform_indices = @transform_0, window_bounds = array<i64: 128, 4>}, {transform_indices = @transform_1, window_bounds = array<i64: 128, 128>}]} {
    %0 = tpu.iota {dimensions = array<i32: 1>} : vector<1x128xi32>
    %c31_i32 = arith.constant 31 : i32
    %1 = vector.broadcast %c31_i32 : i32 to vector<1x128xi32>
    %2 = arith.andi %0, %1 : vector<1x128xi32>
    %c5_i32 = arith.constant 5 : i32
    %3 = vector.broadcast %c5_i32 : i32 to vector<1x128xi32>
    %4 = arith.shrsi %0, %3 : vector<1x128xi32>
    %c1_i32 = arith.constant 1 : i32
    %5 = vector.broadcast %c1_i32 : i32 to vector<1x128xi32>
    %6 = arith.shrsi %2, %5 : vector<1x128xi32>
    %7 = arith.sitofp %6 : vector<1x128xi32> to vector<1x128xf32>
    %cst = arith.constant -0.575646281 : f32
    %8 = vector.broadcast %cst : f32 to vector<1x128xf32>
    %9 = arith.mulf %7, %8 : vector<1x128xf32>
    %10 = math.exp %9 : vector<1x128xf32>
    %cst_0 = arith.constant 0.0628318563 : f32
    %11 = vector.broadcast %cst_0 : f32 to vector<1x128xf32>
    %12 = arith.mulf %11, %10 : vector<1x128xf32>
    %c1_i32_1 = arith.constant 1 : i32
    %13 = vector.broadcast %c1_i32_1 : i32 to vector<1x128xi32>
    %14 = arith.andi %2, %13 : vector<1x128xi32>
    %c1_i32_2 = arith.constant 1 : i32
    %15 = vector.broadcast %c1_i32_2 : i32 to vector<1x128xi32>
    %16 = arith.cmpi eq, %14, %15 : vector<1x128xi32>
    %cst_3 = arith.constant 1.57079637 : f32
    %cst_4 = arith.constant 0.000000e+00 : f32
    %17 = vector.broadcast %cst_3 : f32 to vector<1x128xf32>
    %18 = vector.broadcast %cst_4 : f32 to vector<1x128xf32>
    %19 = arith.select %16, %17, %18 : vector<1x128xi1>, vector<1x128xf32>
    %20 = arith.addf %12, %19 : vector<1x128xf32>
    %c0 = arith.constant 0 : index
    %c0_5 = arith.constant 0 : index
    %21 = vector.load %arg1[%c0, %c0_5] : memref<128x4xf32, #tpu.memory_space<vmem>>, vector<128x4xf32>
    %22 = vector.extract_strided_slice %21 {offsets = [0, 3], sizes = [128, 1], strides = [1, 1]} : vector<128x4xf32> to vector<128x1xf32>
    %c2_i32 = arith.constant 2 : i32
    %23 = vector.broadcast %c2_i32 : i32 to vector<1x128xi32>
    %24 = arith.cmpi eq, %4, %23 : vector<1x128xi32>
    %25 = vector.extract_strided_slice %21 {offsets = [0, 2], sizes = [128, 1], strides = [1, 1]} : vector<128x4xf32> to vector<128x1xf32>
    %26 = vector.shape_cast %24 : vector<1x128xi1> to vector<1x128xi1>
    %27 = vector.broadcast %26 : vector<1x128xi1> to vector<128x128xi1>
    %28 = vector.shape_cast %25 : vector<128x1xf32> to vector<128x1xf32>
    %29 = vector.broadcast %28 : vector<128x1xf32> to vector<128x128xf32>
    %30 = vector.shape_cast %22 : vector<128x1xf32> to vector<128x1xf32>
    %31 = vector.broadcast %30 : vector<128x1xf32> to vector<128x128xf32>
    %32 = arith.select %27, %29, %31 : vector<128x128xi1>, vector<128x128xf32>
    %c1_i32_6 = arith.constant 1 : i32
    %33 = vector.broadcast %c1_i32_6 : i32 to vector<1x128xi32>
    %34 = arith.cmpi eq, %4, %33 : vector<1x128xi32>
    %35 = vector.extract_strided_slice %21 {offsets = [0, 1], sizes = [128, 1], strides = [1, 1]} : vector<128x4xf32> to vector<128x1xf32>
    %36 = vector.shape_cast %34 : vector<1x128xi1> to vector<1x128xi1>
    %37 = vector.broadcast %36 : vector<1x128xi1> to vector<128x128xi1>
    %38 = vector.shape_cast %35 : vector<128x1xf32> to vector<128x1xf32>
    %39 = vector.broadcast %38 : vector<128x1xf32> to vector<128x128xf32>
    %40 = arith.select %37, %39, %32 : vector<128x128xi1>, vector<128x128xf32>
    %c0_i32 = arith.constant 0 : i32
    %41 = vector.broadcast %c0_i32 : i32 to vector<1x128xi32>
    %42 = arith.cmpi eq, %4, %41 : vector<1x128xi32>
    %43 = vector.extract_strided_slice %21 {offsets = [0, 0], sizes = [128, 1], strides = [1, 1]} : vector<128x4xf32> to vector<128x1xf32>
    %44 = vector.shape_cast %42 : vector<1x128xi1> to vector<1x128xi1>
    %45 = vector.broadcast %44 : vector<1x128xi1> to vector<128x128xi1>
    %46 = vector.shape_cast %43 : vector<128x1xf32> to vector<128x1xf32>
    %47 = vector.broadcast %46 : vector<128x1xf32> to vector<128x128xf32>
    %48 = arith.select %45, %47, %40 : vector<128x128xi1>, vector<128x128xf32>
    %49 = vector.broadcast %12 : vector<1x128xf32> to vector<128x128xf32>
    %50 = arith.mulf %48, %49 : vector<128x128xf32>
    %51 = vector.broadcast %20 : vector<1x128xf32> to vector<128x128xf32>
    %52 = arith.addf %50, %51 : vector<128x128xf32>
    %53 = math.sin %52 : vector<128x128xf32>
    %c0_7 = arith.constant 0 : index
    %c0_8 = arith.constant 0 : index
    %54 = vector.load %arg2[%c0_7, %c0_8] : memref<128x128xf32, #tpu.memory_space<vmem>>, vector<128x128xf32>
    tpu.vector_store %arg2[%c0_7, %c0_8], %53 {strides = array<i32>} : memref<128x128xf32, #tpu.memory_space<vmem>>, vector<128x128xf32>,
    return
  }
  func.func @transform_0(%arg0: i32) -> (i32, i32) {
    %c0_i32 = arith.constant 0 : i32
    %c0_i32_0 = arith.constant 0 : i32
    return %arg0, %c0_i32 : i32, i32
  }
  func.func @transform_1(%arg0: i32) -> (i32, i32) {
    %c0_i32 = arith.constant 0 : i32
    %c0_i32_0 = arith.constant 0 : i32
    return %arg0, %c0_i32 : i32, i32
  }
}

</mosaic_0001>

<bundles_post_ra>
// kernel: tpu_custom_call.1
= control target key start
LH: loop header
LB: loop body
LE: loop exit
PB: predicated region body
PF: predicated region fallthrough
CT: control target
= control target key end

     0   :  { %6 = vsyncpa [#allocation3], 0  ;;  %s5435_s0 = inlined_call_operand.vmem [shape: f32[256,4], index: 0, kind: input, shape index: {}]   ;;  %s5436_s1 = inlined_call_operand.hbm [shape: f32[256,128], index: 1, kind: output, shape index: {}]  }
   0x1   :  { %8 = vsyncpa [#allocation3 + $0x1], 0  ;;  %s3297_s6 = smov 0   ;;  %s3299_s7 = smov 0  }
   0x2   :  { %s3301_s8 = smov 0   ;;  %s3303_s9 = smov 0  }
   0x3 LB: > { %s3318_s10 = sadd.s32 4294967295, %s3272_s9   ;;  %s3083_s11 = sadd.s32 4294967294, %s3272_s9   ;;  %s3272_s9 = sphi %s3303_s9, %s5479_s9   ;;  %s3268_s8 = sphi %s3301_s8, %s5478_s8   ;;  %s3264_s7 = sphi %s3299_s7, %s5477_s7   ;;  %s3260_s6 = sphi %s3297_s6, %s5476_s6  }
   0x4   : > { %s3322_s12 = sadd.s32 1, %s3272_s9   ;;  %s47_s13 = sadd.s32 1, %s3268_s8 }
   0x5   : > { %s44_s14 = ssub.s32 %s3272_s9, %s3322_s12  ;;  %p57_p0 = scmp.ne.s32.totalorder %s3268_s8, %s3264_s7 }
   0x6   : > { %p45_p1 = scmp.eq.s32.totalorder %s44_s14, 0  ;;  %p58_p2 = scmp.eq.s32.totalorder %s3318_s10, 1 }
   0x7   : > { %p63_p3 = scmp.ne.s32.totalorder %s3264_s7, %s3260_s6  ;;  %p64_p4 = scmp.eq.s32.totalorder %s3083_s11, 1 }
   0x8   : > { %s3333_s15 = scalar_select %p45_p1, %s3268_s8, %s47_s13  }
   0x9   : > { %p3335_p5 = por %p58_p2, %p57_p0  ;;  %p3339_p6 = por %p64_p4, %p63_p3 }
   0xa   : > { %p3086_p7 = scmp.ge.s32.totalorder %s3272_s9, 1  ;;  %p91_p8 = scmp.lt.s32.totalorder %s3272_s9, 3 }
   0xc   : > { %p92_p9 = pnand %p3086_p7, %p91_p8 }
   0xd   : > { %s3088_s18 = sshll.u32 (!%p92_p9), %s3318_s10, 4  ;;  %s108_s23 = sand.u32 (!%p92_p9), 1, %s3264_s7  }
   0xe   : > { %95 = sbr.rel (%p92_p9) target bundleno = 903 (0x387), region = 24  ;;  %p112_p10 = scmp.lt.s32.totalorder (!%p92_p9), %s3088_s18, 31 }
   0xf   : > { %s3087_s24 = sshll.u32 (!%p92_p9), %s108_s23, 7  ;;  %s3143_s26 = sshll.u32 (!%p92_p9), %s3318_s10, 7 }
  0x10   : > { %s3870_s25 = scalar_lea.vmem (!%p92_p9), [#allocation2], %s3087_s24  ;;  %s3017_s29 = scalar_lea.hbm (!%p92_p9), %s5436_s1, %s3143_s26 }
  0x11   : > { %s3018_s30 = sshll.u32 (!%p92_p9), %s3870_s25, 4  ;;  %s3020_s2 = sshll.u32 (!%p92_p9), %s3017_s29, 4  ;;  %s3019_s30 = int_to_ptr.vmem [resolvable:$true] %s3018_s30  ;;  %s3021_s2 = int_to_ptr.hbm [resolvable:$true] %s3020_s2 }
  0x12   : > { %s3006_s3 = scalar_lea.sflag (!%p92_p9), [#allocation3], %s108_s23  ;;  %s3224_s4 = sshra.s32 (!%p92_p9), %s3021_s2, 4  ;;  %s3225_s4 = int_to_ptr.hbm [resolvable:$true] %s3224_s4 }
  0x13   : > { %v3274_v0 = vmov 2   ;;  %s5481_s18 = smov (!%p112_p10, %s3088_s18), 31  ;;  %v3275_v17 = vmov 3   ;;  %v3276_v18 = vmov 1   ;;  %v118_v25 = vlaneseq  ;;  %s3226_s5 = scalar_lea.hbm %s3225_s4, 128 }
  0x14   : > { %3198 = vset.pattern.permute.xlu2 %v3274_v0  ;;  %3197 = vset.pattern.permute.xlu1 %v3274_v0  ;;  %s3089_s19 = sshll.u32 %s5481_s18, 3  ;;  %v3277_v29 = vmov 0   ;;  %p3227_p11 = scmp.ne.s32.totalorder %s3225_s4, %s3226_s5 }
  0x15   : > { %3196 = vset.pattern.permute.xlu0 %v3274_v0  ;;  %s3349_s22 = scalar_lea.vmem %s5435_s0, %s3089_s19  ;;  %v3452_v26 = vand.u32 127, %v118_v25  ;;  %s3230_s13 = scalar_lea.hbm %s5436_s1, 256 }
  0x16   : > { %v3352_v1 = vld [vmem:[%s3349_s22 + $0x20] sm:$0xff]  ;;  %v3355_v2 = vld [vmem:[%s3349_s22 + $0x10] sm:$0xff]  ;;  %v3364_v4 = vld [vmem:[%s3349_s22 + $0x28] sm:$0xff]  ;;  %p3228_p12 = pnand %p3227_p11, %p3335_p5  ;;  %p3231_p0 = scmp.lt.s32.totalorder %s3225_s4, %s5436_s1 }
  0x17   : > { %v3358_v3 = vld [vmem:[%s3349_s22] sm:$0xff]  ;;  %173 = vperm.xlu2 %3198, %v3352_v1   ;;  %163 = vperm.xlu1 %3197, %v3355_v2   ;;  %v3367_v5 = vld [vmem:[%s3349_s22 + $0x18] sm:$0xff]  ;;  %v3370_v6 = vld [vmem:[%s3349_s22 + $0x8] sm:$0xff]  ;;  %v3463_v31 = vshra.s32 %v3452_v26, 5  ;;  %p3232_p1 = scmp.lt.s32.totalorder %s3230_s13, %s3226_s5 }
  0x18   : > { %153 = vperm.xlu0 %3196, %v3358_v3   ;;  %v3376_v7 = vld [vmem:[%s3349_s22 + $0x40] sm:$0xff]  ;;  %v3379_v8 = vld [vmem:[%s3349_s22 + $0x38] sm:$0xff]  ;;  %v3382_v9 = vld [vmem:[%s3349_s22 + $0x30] sm:$0xff]  ;;  %p3229_p13 = pneg %p3228_p12 }
  0x19   : > { %v3388_v10 = vld [vmem:[%s3349_s22 + $0x58] sm:$0xff]  ;;  %v3391_v11 = vld [vmem:[%s3349_s22 + $0x50] sm:$0xff]  ;;  %v3394_v12 = vld [vmem:[%s3349_s22 + $0x48] sm:$0xff]  ;;  %vm148_vm0 = vcmp.eq.s32.totalorder %v3463_v31, 2  ;;  %vm311_vm1 = vcmp.eq.s32.totalorder %v3463_v31, 1  ;;  %vm394_vm3 = vcmp.eq.s32.totalorder %v3463_v31, 0  ;;  %p3233_p2 = por %p3232_p1, %p3231_p0 }
  0x1a   : > { %v3400_v13 = vld [vmem:[%s3349_s22 + $0x70] sm:$0xff]  ;;  %v3403_v14 = vld [vmem:[%s3349_s22 + $0x68] sm:$0xff]  ;;  %v3406_v15 = vld [vmem:[%s3349_s22 + $0x60] sm:$0xff] }
  0x1b   : > { %v3412_v16 = vld [vmem:[%s3349_s22 + $0x78] sm:$0xff]  ;;  %p3234_p3 = pnand %p3233_p2, %p3229_p13 }
  0x1f   : > { %178 = vperm.xlu2 %3198, %v3364_v4   ;;  %168 = vperm.xlu1 %3197, %v3367_v5  }
  0x20   : > { %158 = vperm.xlu0 %3196, %v3370_v6  }
  0x27   : > { %193 = vperm.xlu2 %3198, %v3376_v7   ;;  %188 = vperm.xlu1 %3197, %v3379_v8  }
  0x28   : > { %183 = vperm.xlu0 %3196, %v3382_v9  }
  0x2f   : > { %208 = vperm.xlu2 %3198, %v3388_v10   ;;  %203 = vperm.xlu1 %3197, %v3391_v11  }
  0x30   : > { %198 = vperm.xlu0 %3196, %v3394_v12  }
  0x37   : > { %223 = vperm.xlu2 %3198, %v3400_v13   ;;  %218 = vperm.xlu1 %3197, %v3403_v14  }
  0x38   : > { %213 = vperm.xlu0 %3196, %v3406_v15  }
  0x3f   : > { %3200 = vset.pattern.permute.xlu2 %v3275_v17  ;;  %3199 = vset.pattern.permute.xlu1 %v3275_v17 }
  0x40   : > { %228 = vperm.xlu0 %3196, %v3412_v16   ;;  %236 = vperm.xlu2 %3200, %v3370_v6  }
  0x41   : > { %232 = vperm.xlu1 %3199, %v3358_v3  }
  0x48   : > { %3201 = vset.pattern.permute.xlu0 %v3275_v17  ;;  %248 = vperm.xlu2 %3200, %v3352_v1  }
  0x49   : > { %244 = vperm.xlu1 %3199, %v3367_v5   ;;  %240 = vperm.xlu0 %3201, %v3355_v2  }
  0x50   : > { %256 = vperm.xlu2 %3200, %v3382_v9  }
  0x51   : > { %252 = vperm.xlu1 %3199, %v3364_v4   ;;  %260 = vperm.xlu0 %3201, %v3379_v8  }
  0x58   : > { %268 = vperm.xlu2 %3200, %v3394_v12  }
  0x59   : > { %264 = vperm.xlu1 %3199, %v3376_v7   ;;  %272 = vperm.xlu0 %3201, %v3391_v11  }
  0x60   : > { %280 = vperm.xlu2 %3200, %v3406_v15  }
  0x61   : > { %276 = vperm.xlu1 %3199, %v3388_v10   ;;  %284 = vperm.xlu0 %3201, %v3403_v14  }
  0x68   : > { %292 = vperm.xlu2 %3200, %v3412_v16  }
  0x69   : > { %288 = vperm.xlu1 %3199, %v3400_v13   ;;  %3202 = vset.pattern.permute.xlu0 %v3276_v18 }
  0x6a   : > { %315 = vperm.xlu0 %3202, %v3358_v3  }
  0x70   : > { %3204 = vset.pattern.permute.xlu2 %v3276_v18 }
  0x71   : > { %3203 = vset.pattern.permute.xlu1 %v3276_v18  ;;  %v174_v19 = vpop.permute.xlu2 %173  ;;  %323 = vperm.xlu2 %3204, %v3355_v2  }
  0x72   : > { %319 = vperm.xlu1 %3203, %v3370_v6   ;;  %335 = vperm.xlu0 %3202, %v3364_v4  }
  0x79   : > { %v3435_v20 = vpop.permute.xlu2 %178  ;;  %331 = vperm.xlu2 %3204, %v3352_v1  }
  0x7a   : > { %327 = vperm.xlu1 %3203, %v3367_v5   ;;  %347 = vperm.xlu0 %3202, %v3376_v7  }
  0x81   : > { %v3440_v21 = vpop.permute.xlu2 %193  ;;  %343 = vperm.xlu2 %3204, %v3379_v8  }
  0x82   : > { %339 = vperm.xlu1 %3203, %v3382_v9   ;;  %359 = vperm.xlu0 %3202, %v3388_v10  }
  0x89   : > { %v3445_v22 = vpop.permute.xlu2 %208  ;;  %v164_v23 = vpop.permute.xlu1 %163  ;;  %355 = vperm.xlu2 %3204, %v3391_v11  }
  0x8a   : > { %351 = vperm.xlu1 %3203, %v3394_v12   ;;  %371 = vperm.xlu0 %3202, %v3400_v13   ;;  %v3450_v24 = vpop.permute.xlu0 %153 }
  0x91   : > { %v3454_v27 = vpop.permute.xlu2 %223  ;;  %v3456_v28 = vpop.permute.xlu1 %168  ;;  %367 = vperm.xlu2 %3204, %v3403_v14  }
  0x92   : > { %363 = vperm.xlu1 %3203, %v3406_v15   ;;  %3206 = vset.pattern.permute.xlu0 %v3277_v29  ;;  %v159_v30 = vpop.permute.xlu0 %158 }
  0x93   : > { %402 = vperm.xlu0 %3206, %v3370_v6  }
  0x99   : > { %v189_v32 = vpop.permute.xlu1 %188  ;;  %3205 = vset.pattern.permute.xlu2 %v3277_v29 }
  0x9a   : > { %375 = vperm.xlu1 %3203, %v3412_v16   ;;  %v184_v33 = vpop.permute.xlu0 %183  ;;  %v237_v34 = vpop.permute.xlu2 %236  ;;  %398 = vperm.xlu2 %3205, %v3358_v3  }
  0x9b   : > { %v296_v35 = vsel %vm148_vm0, %v159_v30, %v237_v34  ;;  %422 = vperm.xlu0 %3206, %v3382_v9  }
  0xa1   : > { %v204_v36 = vpop.permute.xlu1 %203 }
  0xa2   : > { %3207 = vset.pattern.permute.xlu1 %v3277_v29  ;;  %v199_v37 = vpop.permute.xlu0 %198  ;;  %v249_v38 = vpop.permute.xlu2 %248  ;;  %410 = vperm.xlu2 %3205, %v3367_v5  }
  0xa3   : > { %v299_v39 = vsel %vm148_vm0, %v174_v19, %v249_v38  ;;  %406 = vperm.xlu1 %3207, %v3355_v2   ;;  %434 = vperm.xlu0 %3206, %v3394_v12  }
  0xa9   : > { %v219_v40 = vpop.permute.xlu1 %218 }
  0xaa   : > { %v214_v41 = vpop.permute.xlu0 %213  ;;  %v257_v42 = vpop.permute.xlu2 %256  ;;  %418 = vperm.xlu2 %3205, %v3364_v4  }
  0xab   : > { %v3481_v43 = vsel %vm148_vm0, %v184_v33, %v257_v42  ;;  %414 = vperm.xlu1 %3207, %v3352_v1   ;;  %446 = vperm.xlu0 %3206, %v3406_v15   ;;  %v120_v1 = vand.u32 31, %v3452_v26 }
  0xad   : > { %v122_v5 = vshra.s32 %v120_v1, 1  ;;  %v128_v18 = vand.u32 1, %v120_v1 }
  0xaf   : > { %vm129_vm2 = vcmp.eq.s32.totalorder %v128_v18, 1 }
  0xb2   : > { %v229_v44 = vpop.permute.xlu0 %228  ;;  %v269_v45 = vpop.permute.xlu2 %268  ;;  %430 = vperm.xlu2 %3205, %v3376_v7   ;;  %v123_v7 = vcvt.s32.f32 %v122_v5 }
  0xb3   : > { %v3488_v46 = vsel %vm148_vm0, %v199_v37, %v269_v45  ;;  %426 = vperm.xlu1 %3207, %v3379_v8   ;;  %v233_v47 = vpop.permute.xlu1 %232  ;;  %458 = vperm.xlu0 %3206, %v3412_v16  }
  0xba   : > { %v281_v48 = vpop.permute.xlu2 %280  ;;  %442 = vperm.xlu2 %3205, %v3388_v10  }
  0xbb   : > { %v3495_v49 = vsel %vm148_vm0, %v214_v41, %v281_v48  ;;  %438 = vperm.xlu1 %3207, %v3391_v11   ;;  %v3498_v50 = vpop.permute.xlu1 %244  ;;  %v241_v51 = vpop.permute.xlu0 %240  ;;  %v124_v11 = vmul.f32 -0.5756463, %v123_v7 }
  0xbc   : > { %v297_v52 = vsel %vm148_vm0, %v164_v23, %v241_v51 }
  0xbd   : > { %v125_v12 = vmul.f32 1.442695, %v124_v11 }
  0xbf   : > { %3208 = vpow2.f32 %v125_v12 }
  0xc2   : > { %v293_v53 = vpop.permute.xlu2 %292  ;;  %454 = vperm.xlu2 %3205, %v3400_v13  }
  0xc3   : > { %v3505_v54 = vsel %vm148_vm0, %v229_v44, %v293_v53  ;;  %450 = vperm.xlu1 %3207, %v3403_v14   ;;  %v3508_v55 = vpop.permute.xlu1 %252  ;;  %v261_v56 = vpop.permute.xlu0 %260 }
  0xc4   : > { %v302_v57 = vsel %vm148_vm0, %v189_v32, %v261_v56  ;;  %v300_v7 = vsel %vm148_vm0, %v3435_v20, %v3508_v55 }
  0xc5   : > { %v3209_v25 = vpop.eup %3208 }
  0xc6   : > { %v3549_v34 = vmul.f32 0.06283186, %v3209_v25  ;;  %v3280_v25 = vmov 2475754826  }
  0xcb   : > { %v265_v58 = vpop.permute.xlu1 %264  ;;  %v273_v59 = vpop.permute.xlu0 %272 }
  0xcc   : > { %v305_v60 = vsel %vm148_vm0, %v204_v36, %v273_v59  ;;  %v324_v61 = vpop.permute.xlu2 %323  ;;  %v303_v26 = vsel %vm148_vm0, %v3440_v21, %v265_v58  ;;  %v295_v21 = vsel %vm148_vm0, %v3450_v24, %v233_v47 }
  0xcd   : > { %v3517_v62 = vsel %vm311_vm1, %v324_v61, %v297_v52 }
  0xd3   : > { %v277_v63 = vpop.permute.xlu1 %276  ;;  %v285_v0 = vpop.permute.xlu0 %284 }
  0xd4   : > { %v308_v2 = vsel %vm148_vm0, %v219_v40, %v285_v0  ;;  %v332_v3 = vpop.permute.xlu2 %331  ;;  %v306_v41 = vsel %vm148_vm0, %v3445_v22, %v277_v63  ;;  %v298_v22 = vsel %vm148_vm0, %v3456_v28, %v3498_v50 }
  0xd5   : > { %v3524_v4 = vsel %vm311_vm1, %v332_v3, %v299_v39 }
  0xdb   : > { %v289_v6 = vpop.permute.xlu1 %288 }
  0xdc   : > { %v344_v8 = vpop.permute.xlu2 %343  ;;  %v316_v9 = vpop.permute.xlu0 %315  ;;  %v309_v59 = vsel %vm148_vm0, %v3454_v27, %v289_v6 }
  0xdd   : > { %v3528_v10 = vsel %vm311_vm1, %v344_v8, %v302_v57  ;;  %v378_v37 = vsel %vm311_vm1, %v316_v9, %v295_v21 }
  0xe4   : > { %v356_v13 = vpop.permute.xlu2 %355  ;;  %v320_v14 = vpop.permute.xlu1 %319 }
  0xe5   : > { %v3532_v15 = vsel %vm311_vm1, %v356_v13, %v305_v60  ;;  %v3536_v16 = vsel %vm311_vm1, %v320_v14, %v296_v35  ;;  %v336_v17 = vpop.permute.xlu0 %335  ;;  %v3278_v35 = vmov 0.0  }
  0xe6   : > { %v130_v36 = vsel %vm129_vm2, 1.5707964, %v3278_v35  ;;  %v383_v9 = vsel %vm311_vm1, %v336_v17, %v300_v7  ;;  %v5443_v17 = vmov 2131351028  }
  0xe7   : > { %v3560_v39 = vadd.f32 %v130_v36, %v3549_v34  ;;  %v3282_v36 = vmov 2102212464  }
  0xec   : > { %v368_v19 = vpop.permute.xlu2 %367  ;;  %v328_v23 = vpop.permute.xlu1 %327 }
  0xed   : > { %v3543_v30 = vsel %vm311_vm1, %v368_v19, %v308_v2  ;;  %v348_v32 = vpop.permute.xlu0 %347  ;;  %v381_v52 = vsel %vm311_vm1, %v328_v23, %v298_v22  ;;  %v3279_v19 = vmov 683565275  }
  0xee   : > { %v3547_v33 = vsel %vm311_vm1, %v348_v32, %v303_v26 }
  0xf4   : > { %v3557_v38 = vpop.permute.xlu1 %339  ;;  %v399_v40 = vpop.permute.xlu2 %398 }
  0xf5   : > { %v360_v42 = vpop.permute.xlu0 %359  ;;  %v461_v44 = vsel %vm394_vm3, %v399_v40, %v378_v37  ;;  %v5441_v40 = vmov 920167782  }
  0xf6   : > { %v3569_v24 = vsel %vm311_vm1, %v360_v42, %v306_v41  ;;  %v477_v45 = vmul.f32 %v461_v44, %v3549_v34  ;;  %v5439_v44 = vmov 1326507024  }
  0xf8   : > { %v3573_v47 = vadd.f32 %v477_v45, %v3560_v39 }
  0xfa   : > { %v509_v48 = vand.u32 2147483647, %v3573_v47  ;;  %v512_v51 = vand.u32 2139095040, %v3573_v47 }
  0xfc   : > { %v513_v53 = vshrl.u32 %v512_v51, 23  ;;  %v516_v56 = vand.u32 8388607, %v509_v48  ;;  %v352_v57 = vpop.permute.xlu1 %351  ;;  %v411_v58 = vpop.permute.xlu2 %410 }
  0xfd   : > { %v3591_v60 = vsel %vm311_vm1, %v352_v57, %v3488_v46  ;;  %v372_v61 = vpop.permute.xlu0 %371  ;;  %v464_v28 = vsel %vm394_vm3, %v411_v58, %v381_v52 }
  0xfe   : > { %v3090_v50 = vadd.s32 4294967169, %v513_v53  ;;  %v517_v63 = vor.u32 8388608, %v516_v56  ;;  %v3597_v0 = vsel %vm311_vm1, %v372_v61, %v309_v59  ;;  %v480_v1 = vmul.f32 %v464_v28, %v3549_v34 }
 0x100   : > { %v519_v2 = vadd.s32 1, %v3090_v50  ;;  %v3601_v27 = vadd.f32 %v480_v1, %v3560_v39  ;;  %v3603_v3 = vshll.u32 %v517_v63, 8 }
 0x102   : > { %vm520_vm4 = vcmp.gt.s32.totalorder %v519_v2, 0  ;;  %v5437_v5 = vand.u32 2147483647, %v3601_v27  ;;  %v977_v6 = vand.u32 2139095040, %v3601_v27  ;;  %v558_v12 = vand.u32 65535, %v3603_v3 }
 0x103   : > { %v521_v46 = vsel %vm520_vm4, %v519_v2, 0  ;;  %v559_v13 = vshrl.u32 %v3603_v3, 16 }
 0x104   : > { %v523_v8 = vand.u32 31, %v521_v46  ;;  %v978_v14 = vshrl.u32 %v977_v6, 23  ;;  %v522_v18 = vshrl.u32 %v521_v46, 5  ;;  %v3619_v20 = vand.u32 8388607, %v5437_v5  ;;  %v419_v7 = vpop.permute.xlu2 %418 }
 0x106   : > { %v524_v11 = vsub.s32 32, %v523_v8  ;;  %v526_v23 = vshll.u32 %v3279_v19, %v523_v8  ;;  %v529_v26 = vshll.u32 %v3280_v25, %v523_v8  ;;  %v532_v35 = vshll.u32 %v5443_v17, %v523_v8 }
 0x107   : > { %v535_v37 = vshll.u32 %v3282_v36, %v523_v8  ;;  %v538_v42 = vshll.u32 %v5441_v40, %v523_v8  ;;  %v3099_v53 = vadd.s32 4294967169, %v978_v14  ;;  %vm541_vm5 = vcmp.lt.s32.totalorder %v522_v18, 1 }
 0x108   : > { %v527_v55 = vshrl.u32 %v3280_v25, %v524_v11  ;;  %v530_v32 = vshrl.u32 %v5443_v17, %v524_v11  ;;  %v533_v21 = vshrl.u32 %v3282_v36, %v524_v11  ;;  %v536_v41 = vshrl.u32 %v5441_v40, %v524_v11 }
 0x109   : > { %v539_v45 = vshrl.u32 %v5439_v44, %v524_v11  ;;  %vm544_vm6 = vcmp.lt.s32.totalorder %v522_v18, 4  ;;  %v525_v58 = vshrl.u32 %v3279_v19, %v524_v11  ;;  %vm543_vm7 = vcmp.lt.s32.totalorder %v522_v18, 3 }
 0x10a   : > { %v528_v51 = vor.u32 %v527_v55, %v526_v23  ;;  %v531_v22 = vor.u32 %v530_v32, %v529_v26  ;;  %v534_v52 = vor.u32 %v533_v21, %v532_v35  ;;  %v537_v56 = vor.u32 %v536_v41, %v535_v37 }
 0x10b   : > { %v540_v57 = vor.u32 %v539_v45, %v538_v42  ;;  %v984_v1 = vadd.s32 1, %v3099_v53  ;;  %vm542_vm8 = vcmp.lt.s32.totalorder %v522_v18, 2  ;;  %v982_v35 = vor.u32 8388608, %v3619_v20 }
 0x10c   : > { %v546_v59 = vsel %vm544_vm6, %v534_v52, 2102212464  ;;  %v549_v61 = vsel %vm541_vm5, %v528_v51, %v531_v22  ;;  %v553_v28 = vsel %vm541_vm5, %v531_v22, %v534_v52  ;;  %v550_v50 = vsel %vm544_vm6, %v537_v56, 920167782 }
 0x10d   : > { %v554_v63 = vsel %vm544_vm6, %v540_v57, 1326507024  ;;  %v545_v2 = vsel %vm541_vm5, %v525_v58, %v528_v51  ;;  %v551_v46 = vsel %vm543_vm7, %v534_v52, %v550_v50  ;;  %v547_v8 = vsel %vm543_vm7, %v531_v22, %v546_v59 }
 0x10e   : > { %v555_v6 = vsel %vm543_vm7, %v537_v56, %v554_v63  ;;  %v552_v14 = vsel %vm542_vm8, %v549_v61, %v551_v46  ;;  %vm985_vm9 = vcmp.gt.s32.totalorder %v984_v1, 0  ;;  %v466_v21 = vsel %vm394_vm3, %v419_v7, %v383_v9 }
 0x10f   : > { %v556_v23 = vsel %vm542_vm8, %v553_v28, %v555_v6  ;;  %v582_v32 = vand.u32 65535, %v552_v14  ;;  %v583_v11 = vshrl.u32 %v552_v14, 16  ;;  %v3633_v37 = vsel %vm542_vm8, %v545_v2, %v547_v8 }
 0x110   : > { %v560_v26 = vand.u32 65535, %v556_v23  ;;  %v561_v55 = vshrl.u32 %v556_v23, 16  ;;  %v986_v42 = vsel %vm985_vm9, %v984_v1, 0  ;;  %vm511_vm9 = vcmp.lt.s32.totalorder %v3573_v47, 0 }
 0x111   : > { %v585_v22 = vmul.u32 %v583_v11, %v558_v12  ;;  %v586_v52 = vmul.u32 %v582_v32, %v559_v13  ;;  %v584_v57 = vmul.u32 %v582_v32, %v558_v12  ;;  %v587_v58 = vmul.u32 %v583_v11, %v559_v13 }
 0x112   : > { %v563_v18 = vmul.u32 %v561_v55, %v558_v12  ;;  %v564_v41 = vmul.u32 %v560_v26, %v559_v13  ;;  %v562_v45 = vmul.u32 %v560_v26, %v558_v12  ;;  %v565_v51 = vmul.u32 %v561_v55, %v559_v13 }
 0x113   : > { %v588_v28 = vshll.u32 %v585_v22, 16  ;;  %v589_v20 = vshrl.u32 %v585_v22, 16  ;;  %v590_v9 = vshll.u32 %v586_v52, 16  ;;  %v988_v63 = vand.u32 31, %v986_v42 }
 0x114   : > { %v566_v53 = vshll.u32 %v563_v18, 16  ;;  %v567_v56 = vshrl.u32 %v563_v18, 16  ;;  %v568_v59 = vshll.u32 %v564_v41, 16  ;;  %v569_v61 = vshrl.u32 %v564_v41, 16 }
 0x115   : > { %v591_v46 = vshrl.u32 %v586_v52, 16  ;;  %vm592_vm11 = vc.u32 %v584_v57, %v588_v28  ;;  %v594_v1 = vadd.s32 %v588_v28, %v584_v57  ;;  %v3637_v8 = vsub.s32 32, %v988_v63 }
 0x116   : > { %vm570_vm10 = vc.u32 %v562_v45, %v566_v53  ;;  %v572_v50 = vadd.s32 %v566_v53, %v562_v45  ;;  %v593_v7 = vsel %vm592_vm11, 1, %v3277_v29  ;;  %v3640_v14 = vshrl.u32 %v986_v42, 5 }
 0x117   : > { %v571_v2 = vsel %vm570_vm10, 1, %v3277_v29  ;;  %v595_v13 = vadd.s32 %v593_v7, %v587_v58  ;;  %vm596_vm13 = vc.u32 %v594_v1, %v590_v9  ;;  %v3643_v55 = vadd.s32 %v594_v1, %v590_v9 }
 0x118   : > { %v573_v6 = vadd.s32 %v571_v2, %v565_v51  ;;  %vm574_vm12 = vc.u32 %v572_v50, %v568_v59  ;;  %v597_v26 = vsel %vm596_vm13, 1, %v3277_v29  ;;  %v991_v32 = vshll.u32 %v3279_v19, %v988_v63 }
 0x119   : > { %v575_v12 = vsel %vm574_vm12, 1, %v3277_v29  ;;  %v599_v11 = vadd.s32 %v597_v26, %v595_v13  ;;  %v992_v18 = vshrl.u32 %v3280_v25, %v3637_v8  ;;  %v994_v41 = vshll.u32 %v3280_v25, %v988_v63 }
 0x11a   : > { %v577_v23 = vadd.s32 %v575_v12, %v573_v6  ;;  %v995_v45 = vshrl.u32 %v5443_v17, %v3637_v8  ;;  %v997_v42 = vshll.u32 %v5443_v17, %v988_v63  ;;  %v998_v22 = vshrl.u32 %v3282_v36, %v3637_v8 }
 0x11b   : > { %v1000_v52 = vshll.u32 %v3282_v36, %v988_v63  ;;  %v600_v53 = vadd.s32 %v599_v11, %v589_v20  ;;  %v3655_v57 = vor.u32 %v992_v18, %v991_v32  ;;  %v1001_v59 = vshrl.u32 %v5441_v40, %v3637_v8 }
 0x11c   : > { %v578_v51 = vadd.s32 %v577_v23, %v567_v56  ;;  %v3657_v58 = vor.u32 %v995_v45, %v994_v41  ;;  %v999_v50 = vor.u32 %v998_v22, %v997_v42  ;;  %v1003_v56 = vshll.u32 %v5441_v40, %v988_v63 }
 0x11d   : > { %v1004_v9 = vshrl.u32 %v5439_v44, %v3637_v8  ;;  %v601_v2 = vadd.s32 %v600_v53, %v591_v46  ;;  %v1002_v1 = vor.u32 %v1001_v59, %v1000_v52  ;;  %v482_v6 = vmul.f32 %v466_v21, %v3549_v34 }
 0x11e   : > { %v3661_v28 = vadd.s32 %v578_v51, %v569_v61  ;;  %vm1006_vm15 = vcmp.lt.s32.totalorder %v3640_v14, 1  ;;  %v3670_v7 = vshll.u32 %v982_v35, 8  ;;  %v602_v61 = vmul.u32 %v3603_v3, %v3633_v37 }
 0x11f   : > { %v1005_v20 = vor.u32 %v1004_v9, %v1003_v56  ;;  %v605_v12 = vadd.s32 1, %v601_v2  ;;  %vm1009_vm0 = vcmp.lt.s32.totalorder %v3640_v14, 4  ;;  %v1014_v63 = vsel %vm1006_vm15, %v3655_v57, %v3657_v58 }
 0x120   : > { %vm604_vm14 = vc.u32 %v3661_v28, %v3643_v55  ;;  %vm1008_vm2 = vcmp.lt.s32.totalorder %v3640_v14, 3  ;;  %v1015_v21 = vsel %vm1009_vm0, %v1002_v1, 920167782  ;;  %v1018_v35 = vsel %vm1006_vm15, %v3657_v58, %v999_v50 }
 0x121   : > { %v1019_v3 = vsel %vm1009_vm0, %v1005_v20, 1326507024  ;;  %v606_v37 = vsel %vm604_vm14, %v605_v12, %v601_v2  ;;  %vm1007_vm4 = vcmp.lt.s32.totalorder %v3640_v14, 2  ;;  %v1016_v46 = vsel %vm1008_vm2, %v999_v50, %v1015_v21 }
 0x122   : > { %v1020_v13 = vsel %vm1008_vm2, %v1002_v1, %v1019_v3  ;;  %v607_v23 = vadd.s32 %v606_v37, %v602_v61  ;;  %v1017_v26 = vsel %vm1007_vm4, %v1014_v63, %v1016_v46  ;;  %v1023_v11 = vand.u32 65535, %v3670_v7 }
 0x123   : > { %v1021_v32 = vsel %vm1007_vm4, %v1018_v35, %v1020_v13  ;;  %v1024_v18 = vshrl.u32 %v3670_v7, 16  ;;  %v1048_v51 = vshrl.u32 %v1017_v26, 16  ;;  %v1047_v22 = vand.u32 65535, %v1017_v26 }
 0x124   : > { %v1025_v41 = vand.u32 65535, %v1021_v32  ;;  %v1026_v45 = vshrl.u32 %v1021_v32, 16  ;;  %v608_v42 = vadd.s32 536870912, %v607_v23  ;;  %v3699_v1 = vadd.f32 %v482_v6, %v3560_v39 }
 0x125   : > { %v1050_v56 = vmul.u32 %v1048_v51, %v1023_v11  ;;  %v1051_v12 = vmul.u32 %v1047_v22, %v1024_v18  ;;  %v1049_v3 = vmul.u32 %v1047_v22, %v1023_v11  ;;  %v1011_v46 = vsel %vm1009_vm0, %v999_v50, 2102212464 }
 0x126   : > { %v1028_v52 = vmul.u32 %v1026_v45, %v1023_v11  ;;  %v1029_v53 = vmul.u32 %v1025_v41, %v1024_v18  ;;  %v609_v59 = vshrl.u32 %v608_v42, 30  ;;  %v1027_v9 = vmul.u32 %v1025_v41, %v1023_v11 }
 0x127   : > { %v1030_v61 = vmul.u32 %v1026_v45, %v1024_v18  ;;  %v1053_v63 = vshll.u32 %v1050_v56, 16  ;;  %v1052_v41 = vmul.u32 %v1048_v51, %v1024_v18  ;;  %v1055_v42 = vshll.u32 %v1051_v12, 16 }
 0x128   : > { %v1031_v2 = vshll.u32 %v1028_v52, 16  ;;  %v610_v20 = vshll.u32 %v609_v59, 30  ;;  %v1033_v21 = vshll.u32 %v1029_v53, 16  ;;  %v1032_v13 = vshrl.u32 %v1028_v52, 16 }
 0x129   : > { %vm1057_vm7 = vc.u32 %v1049_v3, %v1053_v63  ;;  %v1059_v11 = vadd.s32 %v1053_v63, %v1049_v3  ;;  %v633_v50 = vsub.s32 4, %v609_v59  ;;  %v990_v52 = vshrl.u32 %v3279_v19, %v3637_v8 }
 0x12a   : > { %vm1035_vm5 = vc.u32 %v1027_v9, %v1031_v2  ;;  %v1037_v35 = vadd.s32 %v1031_v2, %v1027_v9  ;;  %v611_v37 = vsub.s32 %v607_v23, %v610_v20  ;;  %v1058_v9 = vsel %vm1057_vm7, 1, %v3277_v29 }
 0x12b   : > { %v1036_v26 = vsel %vm1035_vm5, 1, %v3277_v29  ;;  %v1287_v23 = vand.u32 2139095040, %v3699_v1  ;;  %v1060_v2 = vadd.s32 %v1058_v9, %v1052_v41  ;;  %vm1061_vm10 = vc.u32 %v1059_v11, %v1055_v42 }
 0x12c   : > { %v1038_v32 = vadd.s32 %v1036_v26, %v1030_v61  ;;  %vm1039_vm6 = vc.u32 %v1037_v35, %v1033_v21  ;;  %vm612_vm8 = vcmp.lt.s32.totalorder %v611_v37, 0  ;;  %v613_v6 = vsub.s32 0, %v611_v37 }
 0x12d   : > { %v1040_v45 = vsel %vm1039_vm6, 1, %v3277_v29  ;;  %v1010_v20 = vsel %vm1006_vm15, %v990_v52, %v3655_v57  ;;  %v1012_v61 = vsel %vm1008_vm2, %v3657_v58, %v1011_v46  ;;  %v1034_v63 = vshrl.u32 %v1029_v53, 16 }
 0x12e   : > { %v1042_v5 = vadd.s32 %v1040_v45, %v1038_v32  ;;  %v614_v22 = vsel %vm612_vm8, %v613_v6, %v611_v37  ;;  %v1062_v21 = vsel %vm1061_vm10, 1, %v3277_v29  ;;  %v1054_v3 = vshrl.u32 %v1050_v56, 16 }
 0x12f   : > { %v615_v18 = vclz %v614_v22  ;;  %v1064_v8 = vadd.s32 %v1062_v21, %v1060_v2  ;;  %v1288_v26 = vshrl.u32 %v1287_v23, 23  ;;  %vm3719_vm11 = vcmp.le.f32.partialorder %v509_v48, 0.7853982  ;;  %v403_v22 = vpop.permute.xlu0 %402 }
 0x130   : > { %v1043_v51 = vadd.s32 %v1042_v5, %v1032_v13  ;;  %v634_v57 = vsel %vm511_vm9, %v633_v50, %v609_v59  ;;  %v5438_v32 = vand.u32 2147483647, %v3699_v1  ;;  %v603_v58 = vadd.s32 %v3643_v55, %v3661_v28 }
 0x131   : > { %v3091_v35 = vadd.s32 4294967294, %v615_v18  ;;  %v1056_v53 = vshrl.u32 %v1051_v12, 16  ;;  %v1065_v56 = vadd.s32 %v1064_v8, %v1054_v3  ;;  %v1013_v41 = vsel %vm1007_vm4, %v1010_v20, %v1012_v61 }
 0x132   : > { %v1044_v13 = vadd.s32 %v1043_v51, %v1034_v63  ;;  %v1063_v48 = vadd.s32 %v1059_v11, %v1055_v42  ;;  %v3105_v6 = vadd.s32 4294967169, %v1288_v26  ;;  %v636_v59 = vsel %vm3719_vm11, 0, %v634_v57 }
 0x133   : > { %vm3092_vm12 = vcmp.lt.s32.totalorder %v3091_v35, 0  ;;  %v1066_v23 = vadd.s32 %v1065_v56, %v1056_v53  ;;  %v1291_v55 = vand.u32 8388607, %v5438_v32  ;;  %v653_v14 = vadd.s32 3, %v636_v59 }
 0x134   : > { %v618_v46 = vsel %vm3092_vm12, 0, %v3091_v35  ;;  %vm1069_vm13 = vc.u32 %v1044_v13, %v1063_v48  ;;  %v1294_v28 = vadd.s32 1, %v3105_v6  ;;  %v1067_v42 = vmul.u32 %v3670_v7, %v1013_v41 }
 0x135   : > { %v619_v45 = vsub.s32 32, %v618_v46  ;;  %v623_v9 = vsub.s32 4294967266, %v618_v46  ;;  %v620_v12 = vshll.u32 %v611_v37, %v618_v46  ;;  %v1070_v2 = vadd.s32 1, %v1066_v23 }
 0x136   : > { %vm1295_vm14 = vcmp.gt.s32.totalorder %v1294_v28, 0  ;;  %v462_v11 = vsel %vm394_vm3, %v403_v22, %v3536_v16  ;;  %v1292_v21 = vor.u32 8388608, %v1291_v55  ;;  %v3743_v53 = vadd.s32 %v1063_v48, %v1044_v13 }
 0x137   : > { %v621_v50 = vshrl.u32 %v603_v58, %v619_v45  ;;  %v624_v52 = vadd.s32 127, %v623_v9  ;;  %v1071_v20 = vsel %vm1069_vm13, %v1070_v2, %v1066_v23  ;;  %v1296_v61 = vsel %vm1295_vm14, %v1294_v28, 0 }
 0x138   : > { %v1072_v63 = vadd.s32 %v1071_v20, %v1067_v42  ;;  %v1298_v35 = vand.u32 31, %v1296_v61  ;;  %v478_v37 = vmul.f32 %v462_v11, %v3549_v34  ;;  %v3741_v58 = vand.u32 3, %v653_v14 }
 0x139   : > { %v622_v18 = vor.u32 %v621_v50, %v620_v12  ;;  %v625_v51 = vshll.u32 %v624_v52, 23  ;;  %v3749_v41 = vshll.u32 %v1292_v21, 8  ;;  %v3761_v28 = vshrl.u32 %v1296_v61, 5 }
 0x13a   : > { %v1073_v8 = vadd.s32 536870912, %v1072_v63  ;;  %v3739_v26 = vsub.s32 32, %v1298_v35  ;;  %v1301_v45 = vshll.u32 %v3279_v19, %v1298_v35  ;;  %v3755_v59 = vadd.f32 %v478_v37, %v3560_v39 }
 0x13b   : > { %v626_v3 = vor.u32 4788187, %v625_v51  ;;  %v629_v7 = vcvt.s32.f32 %v622_v18  ;;  %v1304_v48 = vshll.u32 %v3280_v25, %v1298_v35  ;;  %v1310_v22 = vshll.u32 %v3282_v36, %v1298_v35 }
 0x13c   : > { %v1074_v16 = vshrl.u32 %v1073_v8, 30  ;;  %v1302_v56 = vshrl.u32 %v3280_v25, %v3739_v26  ;;  %v1305_v46 = vshrl.u32 %v5443_v17, %v3739_v26  ;;  %v1311_v9 = vshrl.u32 %v5441_v40, %v3739_v26 }
 0x13d   : > { %v627_v57 = vand.u32 2147483647, %v626_v3  ;;  %v1308_v23 = vshrl.u32 %v3282_v36, %v3739_v26  ;;  %v1307_v12 = vshll.u32 %v5443_v17, %v1298_v35  ;;  %v1314_v50 = vshrl.u32 %v5439_v44, %v3739_v26 }
 0x13e   : > { %v1075_v13 = vshll.u32 %v1074_v16, 30  ;;  %v3768_v2 = vor.u32 %v1302_v56, %v1301_v45  ;;  %v3770_v14 = vor.u32 %v1305_v46, %v1304_v48  ;;  %v1312_v42 = vor.u32 %v1311_v9, %v1310_v22 }
 0x13f   : > { %v630_v6 = vmul.f32 %v629_v7, %v627_v57  ;;  %vm976_vm15 = vcmp.lt.s32.totalorder %v3601_v27, 0  ;;  %v1313_v18 = vshll.u32 %v5441_v40, %v1298_v35  ;;  %v3777_v51 = vand.u32 65535, %v3749_v41 }
 0x140   : > { %v3766_v52 = vsub.s32 %v1072_v63, %v1075_v13  ;;  %v3780_v20 = vshrl.u32 %v3749_v41, 16  ;;  %v1309_v21 = vor.u32 %v1308_v23, %v1307_v12  ;;  %vm1316_vm2 = vcmp.lt.s32.totalorder %v3761_v28, 1 }
 0x141   : > { %v631_v55 = vxor.u32 2147483648, %v630_v6  ;;  %vm1319_vm4 = vcmp.lt.s32.totalorder %v3761_v28, 4  ;;  %v667_v35 = vand.u32 2139095040, %v3755_v59  ;;  %v1315_v8 = vor.u32 %v1314_v50, %v1313_v18 }
 0x142   : > { %vm1077_vm0 = vcmp.lt.s32.totalorder %v3766_v52, 0  ;;  %v1078_v63 = vsub.s32 0, %v3766_v52  ;;  %v1324_v5 = vsel %vm1316_vm2, %v3768_v2, %v3770_v14  ;;  %v1325_v57 = vsel %vm1319_vm4, %v1312_v42, 920167782 }
 0x143   : > { %v632_v11 = vsel %vm511_vm9, %v631_v55, %v630_v6  ;;  %vm1318_vm5 = vcmp.lt.s32.totalorder %v3761_v28, 3  ;;  %v1098_v6 = vsub.s32 4, %v1074_v16  ;;  %vm1317_vm6 = vcmp.lt.s32.totalorder %v3761_v28, 2 }
 0x144   : > { %v3785_v61 = vsel %vm3719_vm11, %v3573_v47, %v632_v11  ;;  %v1079_v37 = vsel %vm1077_vm0, %v1078_v63, %v3766_v52  ;;  %v1326_v45 = vsel %vm1318_vm5, %v1309_v21, %v1325_v57  ;;  %v664_v9 = vand.u32 2147483647, %v3755_v59 }
 0x145   : > { %v637_v3 = vmul.f32 %v3785_v61, %v3785_v61  ;;  %v1080_v46 = vclz %v1079_v37  ;;  %v1327_v22 = vsel %vm1317_vm6, %v1324_v5, %v1326_v45  ;;  %v1328_v55 = vsel %vm1316_vm2, %v3770_v14, %v1309_v21 }
 0x146   : > { %v1329_v12 = vsel %vm1319_vm4, %v1315_v8, 1326507024  ;;  %v1358_v50 = vshrl.u32 %v1327_v22, 16  ;;  %v3813_v11 = vshrl.u32 %v667_v35, 23  ;;  %v3819_v5 = vsel %vm976_vm15, %v1098_v6, %v1074_v16 }
 0x147   : > { %v638_v7 = vmul.f32 -0.001358992, %v637_v3  ;;  %v645_v56 = vmul.f32 -0.00019511016, %v637_v3  ;;  %v3100_v23 = vadd.s32 4294967294, %v1080_v46  ;;  %v1330_v37 = vsel %vm1318_vm5, %v1312_v42, %v1329_v12 }
 0x148   : > { %v1331_v8 = vsel %vm1317_vm6, %v1328_v55, %v1330_v37  ;;  %v1357_v45 = vand.u32 65535, %v1327_v22  ;;  %vm656_vm8 = vcmp.eq.s32.totalorder %v3741_v58, 0  ;;  %vm659_vm9 = vcmp.eq.s32.totalorder %v3741_v58, 2 }
 0x149   : > { %v639_v13 = vadd.f32 0.041655596, %v638_v7  ;;  %v646_v48 = vadd.f32 0.008332121, %v645_v56  ;;  %vm3101_vm7 = vcmp.lt.s32.totalorder %v3100_v23, 0  ;;  %v3823_v7 = vshrl.u32 %v3279_v19, %v3739_v26 }
 0x14a   : > { %v1083_v57 = vsel %vm3101_vm7, 0, %v3100_v23  ;;  %v1321_v16 = vsel %vm1319_vm4, %v1309_v21, 2102212464  ;;  %v1335_v6 = vand.u32 65535, %v1331_v8  ;;  %vm655_vm10 = vcmp.lt.s32.totalorder %v3741_v58, 2 }
 0x14b   : > { %v640_v18 = vmul.f32 %v639_v13, %v637_v3  ;;  %v647_v63 = vmul.f32 %v646_v48, %v637_v3  ;;  %v1084_v46 = vsub.s32 32, %v1083_v57  ;;  %v1088_v42 = vsub.s32 4294967266, %v1083_v57 }
 0x14c   : > { %v1336_v13 = vshrl.u32 %v1331_v8, 16  ;;  %v3834_v55 = vmul.u32 %v1358_v50, %v3777_v51  ;;  %vm652_vm11 = vweird.f32 %v3573_v47  ;;  %v1085_v22 = vshll.u32 %v3766_v52, %v1083_v57 }
 0x14d   : > { %v641_v35 = vadd.f32 -0.4999988, %v640_v18  ;;  %v648_v56 = vadd.f32 -0.16666654, %v647_v63  ;;  %v1086_v23 = vshrl.u32 %v3743_v53, %v1084_v46  ;;  %v1089_v12 = vadd.s32 127, %v1088_v42 }
 0x14e   : > { %v1338_v18 = vmul.u32 %v1336_v13, %v3777_v51  ;;  %v1339_v21 = vmul.u32 %v1335_v6, %v3780_v20  ;;  %v5450_v37 = vand.u32 2147483647, %v3601_v27  ;;  %v1359_v8 = vmul.u32 %v1357_v45, %v3777_v51 }
 0x14f   : > { %v642_v26 = vmul.f32 %v641_v35, %v637_v3  ;;  %v649_v48 = vmul.f32 %v648_v56, %v637_v3  ;;  %v3849_v35 = vmul.u32 %v1357_v45, %v3780_v20  ;;  %v1087_v52 = vor.u32 %v1086_v23, %v1085_v22 }
 0x150   : > { %vm3843_vm12 = vcmp.le.f32.partialorder %v5450_v37, 0.7853982  ;;  %v1090_v57 = vshll.u32 %v1089_v12, 23  ;;  %v1337_v56 = vmul.u32 %v1335_v6, %v3777_v51  ;;  %v1341_v46 = vshll.u32 %v1338_v18, 16 }
 0x151   : > { %v643_v63 = vadd.f32 1.0, %v642_v26  ;;  %v650_v3 = vadd.f32 1.0, %v649_v48  ;;  %v1340_v48 = vmul.u32 %v1336_v13, %v3780_v20  ;;  %v1343_v32 = vshll.u32 %v1339_v21, 16 }
 0x152   : > { %v1091_v37 = vor.u32 4788187, %v1090_v57  ;;  %vm1345_vm13 = vc.u32 %v1337_v56, %v1341_v46  ;;  %v1347_v44 = vadd.s32 %v1341_v46, %v1337_v56  ;;  %v1363_v40 = vshll.u32 %v3834_v55, 16 }
 0x153   : > { %v651_v42 = vmul.f32 %v650_v3, %v3785_v61  ;;  %v660_v26 = vxor.u32 2147483648, %v643_v63  ;;  %v1342_v17 = vshrl.u32 %v1338_v18, 16  ;;  %v1346_v23 = vsel %vm1345_vm13, 1, %v3277_v29 }
 0x154   : > { %v1362_v51 = vmul.u32 %v1358_v50, %v3780_v20  ;;  %v1092_v6 = vand.u32 2147483647, %v1091_v37  ;;  %v1094_v22 = vcvt.s32.f32 %v1087_v52  ;;  %v1348_v61 = vadd.s32 %v1346_v23, %v1340_v48 }
 0x155   : > { %v657_v45 = vxor.u32 2147483648, %v651_v42  ;;  %vm1349_vm14 = vc.u32 %v1347_v44, %v1343_v32  ;;  %v661_v12 = vsel %vm659_vm9, %v660_v26, %v651_v42  ;;  %vm1367_vm0 = vc.u32 %v1359_v8, %v1363_v40 }
 0x156   : > { %v1350_v3 = vsel %vm1349_vm14, 1, %v3277_v29  ;;  %v1095_v57 = vmul.f32 %v1094_v22, %v1092_v6  ;;  %v1368_v20 = vsel %vm1367_vm0, 1, %v3277_v29  ;;  %v1365_v44 = vshll.u32 %v3849_v35, 16 }
 0x157   : > { %v658_v13 = vsel %vm656_vm8, %v643_v63, %v657_v45  ;;  %v1352_v56 = vadd.s32 %v1350_v3, %v1348_v61  ;;  %v1369_v32 = vadd.s32 %v1363_v40, %v1359_v8  ;;  %v1370_v63 = vadd.s32 %v1368_v20, %v1362_v51 }
 0x158   : > { %v662_v18 = vsel %vm655_vm10, %v658_v13, %v661_v12  ;;  %v1096_v52 = vxor.u32 2147483648, %v1095_v57  ;;  %v1101_v58 = vsel %vm3843_vm12, 0, %v3819_v5  ;;  %v3093_v42 = vadd.s32 4294967169, %v3813_v11 }
 0x159   : > { %v663_v50 = vsel %vm652_vm11, nan, %v662_v18  ;;  %v1353_v46 = vadd.s32 %v1352_v56, %v1342_v17  ;;  %v1320_v47 = vsel %vm1316_vm2, %v3823_v7, %v3768_v2  ;;  %v1322_v40 = vsel %vm1318_vm5, %v3770_v14, %v1321_v16 }
 0x15a   : > { %2989 = vst [vmem:[%s3870_s25] sm:$0xff] %v663_v50  ;;  %vm1371_vm4 = vc.u32 %v1369_v32, %v1365_v44  ;;  %v3886_v8 = vand.u32 8388607, %v664_v9  ;;  %v1097_v5 = vsel %vm976_vm15, %v1096_v52, %v1095_v57  ;;  %v1344_v17 = vshrl.u32 %v1339_v21, 16 }
 0x15b   : > { %v1372_v11 = vsel %vm1371_vm4, 1, %v3277_v29  ;;  %v674_v26 = vadd.s32 1, %v3093_v42  ;;  %v1100_v2 = vsel %vm3843_vm12, %v3601_v27, %v1097_v5  ;;  %v1118_v7 = vadd.s32 3, %v1101_v58 }
 0x15c   : > { %v1364_v48 = vshrl.u32 %v3834_v55, 16  ;;  %v1374_v14 = vadd.s32 %v1372_v11, %v1370_v63  ;;  %v1102_v16 = vmul.f32 %v1100_v2, %v1100_v2  ;;  %v1323_v37 = vsel %vm1317_vm6, %v1320_v47, %v1322_v40 }
 0x15d   : > { %v3897_v45 = vadd.s32 %v1353_v46, %v1344_v17  ;;  %vm675_vm2 = vcmp.gt.s32.totalorder %v674_v26, 0  ;;  %v1366_v21 = vshrl.u32 %v3849_v35, 16  ;;  %v3900_v61 = vadd.s32 %v1369_v32, %v1365_v44 }
 0x15e   : > { %v1375_v23 = vadd.s32 %v1374_v14, %v1364_v48  ;;  %v676_v51 = vsel %vm675_vm2, %v674_v26, 0  ;;  %v1103_v6 = vmul.f32 -0.001358992, %v1102_v16  ;;  %v1110_v22 = vmul.f32 -0.00019511016, %v1102_v16 }
 0x15f   : > { %v678_v53 = vand.u32 31, %v676_v51  ;;  %v3902_v13 = vand.u32 3, %v1118_v7  ;;  %v1377_v12 = vmul.u32 %v3749_v41, %v1323_v37  ;;  %v672_v28 = vor.u32 8388608, %v3886_v8 }
 0x160   : > { %v1376_v55 = vadd.s32 %v1375_v23, %v1366_v21  ;;  %v1104_v3 = vadd.f32 0.041655596, %v1103_v6  ;;  %v1111_v18 = vadd.f32 0.008332121, %v1110_v22  ;;  %vm1379_vm15 = vc.u32 %v3897_v45, %v3900_v61 }
 0x161   : > { %v679_v35 = vsub.s32 32, %v678_v53  ;;  %v3908_v56 = vshrl.u32 %v676_v51, 5  ;;  %v681_v20 = vshll.u32 %v3279_v19, %v678_v53  ;;  %v684_v50 = vshll.u32 %v3280_v25, %v678_v53 }
 0x162   : > { %v1380_v57 = vadd.s32 1, %v1376_v55  ;;  %v1105_v44 = vmul.f32 %v1104_v3, %v1102_v16  ;;  %v1112_v32 = vmul.f32 %v1111_v18, %v1102_v16  ;;  %v690_v41 = vshll.u32 %v3282_v36, %v678_v53 }
 0x163   : > { %v682_v63 = vshrl.u32 %v3280_v25, %v679_v35  ;;  %v5453_v58 = vmov 2131351028   ;;  %v688_v42 = vshrl.u32 %v3282_v36, %v679_v35  ;;  %v5454_v47 = vmov 920167782  }
 0x164   : > { %v1381_v52 = vsel %vm1379_vm15, %v1380_v57, %v1376_v55  ;;  %v685_v46 = vshrl.u32 %v5453_v58, %v679_v35  ;;  %v691_v40 = vshrl.u32 %v5454_v47, %v679_v35  ;;  %v1106_v8 = vadd.f32 -0.4999988, %v1105_v44 }
 0x165   : > { %v1113_v5 = vadd.f32 -0.16666654, %v1112_v32  ;;  %v1382_v17 = vadd.s32 %v1381_v52, %v1377_v12  ;;  %v687_v11 = vshll.u32 %v5453_v58, %v678_v53  ;;  %v683_v26 = vor.u32 %v682_v63, %v681_v20 }
 0x166   : > { %v3918_v7 = vor.u32 %v685_v46, %v684_v50  ;;  %v692_v48 = vor.u32 %v691_v40, %v690_v41  ;;  %v693_v14 = vshll.u32 %v5454_v47, %v678_v53  ;;  %v1107_v37 = vmul.f32 %v1106_v8, %v1102_v16  ;;  %v431_v53 = vpop.permute.xlu2 %430 }
 0x167   : > { %v1114_v21 = vmul.f32 %v1113_v5, %v1102_v16  ;;  %v1383_v23 = vadd.s32 536870912, %v1382_v17  ;;  %v5455_v51 = vmov 1326507024   ;;  %vm1117_vm5 = vweird.f32 %v3601_v27 }
 0x168   : > { %v694_v6 = vshrl.u32 %v5455_v51, %v679_v35  ;;  %vm1120_vm6 = vcmp.lt.s32.totalorder %v3902_v13, 2  ;;  %vm1121_vm7 = vcmp.eq.s32.totalorder %v3902_v13, 0  ;;  %v689_v22 = vor.u32 %v688_v42, %v687_v11 }
 0x169   : > { %vm699_vm8 = vcmp.lt.s32.totalorder %v3908_v56, 4  ;;  %v1108_v55 = vadd.f32 1.0, %v1107_v37  ;;  %v1115_v12 = vadd.f32 1.0, %v1114_v21  ;;  %v3926_v3 = vshrl.u32 %v1383_v23, 30 }
 0x16a   : > { %v695_v18 = vor.u32 %v694_v6, %v693_v14  ;;  %vm696_vm9 = vcmp.lt.s32.totalorder %v3908_v56, 1  ;;  %vm698_vm10 = vcmp.lt.s32.totalorder %v3908_v56, 3  ;;  %v705_v16 = vsel %vm699_vm8, %v692_v48, 920167782 }
 0x16b   : > { %v3932_v57 = vshll.u32 %v672_v28, 8  ;;  %v1116_v20 = vmul.f32 %v1115_v12, %v1100_v2  ;;  %v1125_v50 = vxor.u32 2147483648, %v1108_v55  ;;  %v1385_v44 = vshll.u32 %v3926_v3, 30 }
 0x16c   : > { %v704_v32 = vsel %vm696_vm9, %v683_v26, %v3918_v7  ;;  %vm1124_vm11 = vcmp.eq.s32.totalorder %v3902_v13, 2  ;;  %v706_v63 = vsel %vm698_vm10, %v689_v22, %v705_v16  ;;  %v709_v41 = vsel %vm699_vm8, %v695_v18, 1326507024 }
 0x16d   : > { %v469_v28 = vsel %vm394_vm3, %v431_v53, %v3547_v33  ;;  %v1122_v2 = vxor.u32 2147483648, %v1116_v20  ;;  %v3946_v52 = vsub.s32 %v1382_v17, %v1385_v44  ;;  %vm697_vm12 = vcmp.lt.s32.totalorder %v3908_v56, 2 }
 0x16e   : > { %v708_v46 = vsel %vm696_vm9, %v3918_v7, %v689_v22  ;;  %v707_v42 = vsel %vm697_vm12, %v704_v32, %v706_v63  ;;  %v710_v40 = vsel %vm698_vm10, %v692_v48, %v709_v41  ;;  %v713_v8 = vand.u32 65535, %v3932_v57 }
 0x16f   : > { %v714_v33 = vshrl.u32 %v3932_v57, 16  ;;  %v1123_v5 = vsel %vm1121_vm7, %v1108_v55, %v1122_v2  ;;  %v1126_v17 = vsel %vm1124_vm11, %v1125_v50, %v1116_v20  ;;  %vm1387_vm13 = vcmp.lt.s32.totalorder %v3946_v52, 0 }
 0x170   : > { %v1388_v11 = vsub.s32 0, %v3946_v52  ;;  %v1127_v14 = vsel %vm1120_vm6, %v1123_v5, %v1126_v17  ;;  %v680_v37 = vshrl.u32 %v3279_v19, %v679_v35  ;;  %v711_v48 = vsel %vm697_vm12, %v708_v46, %v710_v40 }
 0x171   : > { %v738_v21 = vshrl.u32 %v707_v42, 16  ;;  %v1128_v23 = vsel %vm1117_vm5, nan, %v1127_v14  ;;  %v715_v55 = vand.u32 65535, %v711_v48  ;;  %v737_v12 = vand.u32 65535, %v707_v42 }
 0x172   : > { %v1389_v6 = vsel %vm1387_vm13, %v1388_v11, %v3946_v52  ;;  %2992 = vst [vmem:[%s3870_s25 + $0x18] sm:$0xff] %v1128_v23  ;;  %v701_v53 = vsel %vm699_vm8, %v689_v22, 2102212464  ;;  %v716_v13 = vshrl.u32 %v711_v48, 16  ;;  %v384_v35 = vsel %vm311_vm1, %v3557_v38, %v3481_v43 }
 0x173   : > { %v1390_v18 = vclz %v1389_v6  ;;  %v740_v16 = vmul.u32 %v738_v21, %v713_v8  ;;  %v1378_v27 = vadd.s32 %v3900_v61, %v3897_v45  ;;  %v700_v20 = vsel %vm696_vm9, %v680_v37, %v683_v26 }
 0x174   : > { %v485_v50 = vmul.f32 %v469_v28, %v3549_v34  ;;  %v1408_v32 = vsub.s32 4, %v3926_v3  ;;  %v718_v63 = vmul.u32 %v716_v13, %v713_v8  ;;  %v719_v22 = vmul.u32 %v715_v55, %v714_v33 }
 0x175   : > { %v3106_v44 = vadd.s32 4294967294, %v1390_v18  ;;  %vm1286_vm14 = vcmp.lt.s32.totalorder %v3699_v1, 0  ;;  %v702_v41 = vsel %vm698_vm10, %v3918_v7, %v701_v53  ;;  %v739_v43 = vmul.u32 %v737_v12, %v713_v8 }
 0x176   : > { %v741_v38 = vmul.u32 %v737_v12, %v714_v33  ;;  %v743_v2 = vshll.u32 %v740_v16, 16  ;;  %v717_v45 = vmul.u32 %v715_v55, %v713_v8  ;;  %v720_v61 = vmul.u32 %v716_v13, %v714_v33 }
 0x177   : > { %vm3107_vm0 = vcmp.lt.s32.totalorder %v3106_v44, 0  ;;  %v721_v26 = vshll.u32 %v718_v63, 16  ;;  %v723_v28 = vshll.u32 %v719_v22, 16  ;;  %v742_v42 = vmul.u32 %v738_v21, %v714_v33  ;;  %v423_v33 = vpop.permute.xlu0 %422 }
 0x178   : > { %v1393_v46 = vsel %vm3107_vm0, 0, %v3106_v44  ;;  %v745_v40 = vshll.u32 %v741_v38, 16  ;;  %vm747_vm2 = vc.u32 %v739_v43, %v743_v2  ;;  %v749_v7 = vadd.s32 %v743_v2, %v739_v43 }
 0x179   : > { %v1394_v5 = vsub.s32 32, %v1393_v46  ;;  %v1395_v17 = vshll.u32 %v3946_v52, %v1393_v46  ;;  %v1398_v11 = vsub.s32 4294967266, %v1393_v46  ;;  %vm725_vm4 = vc.u32 %v717_v45, %v721_v26 }
 0x17a   : > { %v726_v14 = vsel %vm725_vm4, 1, %v3277_v29  ;;  %v727_v37 = vadd.s32 %v721_v26, %v717_v45  ;;  %v748_v8 = vsel %vm747_vm2, 1, %v3277_v29  ;;  %v744_v55 = vshrl.u32 %v740_v16, 16 }
 0x17b   : > { %v1396_v48 = vshrl.u32 %v1378_v27, %v1394_v5  ;;  %v1399_v23 = vadd.s32 127, %v1398_v11  ;;  %v728_v6 = vadd.s32 %v726_v14, %v720_v61  ;;  %v750_v12 = vadd.s32 %v748_v8, %v742_v42 }
 0x17c   : > { %vm729_vm15 = vc.u32 %v727_v37, %v723_v28  ;;  %vm751_vm5 = vc.u32 %v749_v7, %v745_v40  ;;  %v722_v13 = vshrl.u32 %v718_v63, 16  ;;  %v3993_v27 = vadd.f32 %v485_v50, %v3560_v39 }
 0x17d   : > { %v1397_v21 = vor.u32 %v1396_v48, %v1395_v17  ;;  %v1400_v18 = vshll.u32 %v1399_v23, 23  ;;  %v730_v52 = vsel %vm729_vm15, 1, %v3277_v29  ;;  %v752_v53 = vsel %vm751_vm5, 1, %v3277_v29 }
 0x17e   : > { %v732_v44 = vadd.s32 %v730_v52, %v728_v6  ;;  %v754_v45 = vadd.s32 %v752_v53, %v750_v12  ;;  %v1409_v16 = vsel %vm1286_vm14, %v1408_v32, %v3926_v3  ;;  %v724_v2 = vshrl.u32 %v719_v22, 16 }
 0x17f   : > { %v1401_v43 = vor.u32 4788187, %v1400_v18  ;;  %v467_v61 = vsel %vm394_vm3, %v423_v33, %v384_v35  ;;  %v746_v46 = vshrl.u32 %v741_v38, 16  ;;  %v1749_v42 = vand.u32 2147483647, %v3993_v27 }
 0x180   : > { %v733_v26 = vadd.s32 %v732_v44, %v722_v13  ;;  %v755_v28 = vadd.s32 %v754_v45, %v744_v55  ;;  %v1404_v5 = vcvt.s32.f32 %v1397_v21  ;;  %v1752_v17 = vand.u32 2139095040, %v3993_v27 }
 0x181   : > { %v1402_v63 = vand.u32 2147483647, %v1401_v43  ;;  %v483_v50 = vmul.f32 %v467_v61, %v3549_v34  ;;  %v703_v11 = vsel %vm697_vm12, %v700_v20, %v702_v41  ;;  %v753_v3 = vadd.s32 %v749_v7, %v745_v40 }
 0x182   : > { %v734_v14 = vadd.s32 %v733_v26, %v724_v2  ;;  %v756_v32 = vadd.s32 %v755_v28, %v746_v46  ;;  %v1753_v37 = vshrl.u32 %v1752_v17, 23  ;;  %v1756_v35 = vand.u32 8388607, %v1749_v42 }
 0x183   : > { %v1405_v22 = vmul.f32 %v1404_v5, %v1402_v63  ;;  %v4008_v38 = vadd.f32 %v483_v50, %v3560_v39  ;;  %v5456_v23 = vand.u32 2147483647, %v3699_v1  ;;  %v757_v20 = vmul.u32 %v3932_v57, %v703_v11 }
 0x184   : > { %vm759_vm6 = vc.u32 %v734_v14, %v753_v3  ;;  %v760_v48 = vadd.s32 1, %v756_v32  ;;  %v3114_v41 = vadd.s32 4294967169, %v1753_v37  ;;  %v1757_v33 = vor.u32 8388608, %v1756_v35 }
 0x185   : > { %vm4012_vm7 = vcmp.le.f32.partialorder %v5456_v23, 0.7853982  ;;  %v1406_v56 = vxor.u32 2147483648, %v1405_v22  ;;  %v1442_v8 = vand.u32 2139095040, %v4008_v38  ;;  %v5445_v26 = vand.u32 2147483647, %v4008_v38 }
 0x186   : > { %v1411_v40 = vsel %vm4012_vm7, 0, %v1409_v16  ;;  %v761_v7 = vsel %vm759_vm6, %v760_v48, %v756_v32  ;;  %v1759_v21 = vadd.s32 1, %v3114_v41  ;;  %v4025_v2 = vshll.u32 %v1757_v33, 8 }
 0x187   : > { %v1407_v55 = vsel %vm1286_vm14, %v1406_v56, %v1405_v22  ;;  %v762_v12 = vadd.s32 %v761_v7, %v757_v20  ;;  %v1443_v52 = vshrl.u32 %v1442_v8, 23  ;;  %v1428_v13 = vadd.s32 3, %v1411_v40 }
 0x188   : > { %v1410_v18 = vsel %vm4012_vm7, %v3699_v1, %v1407_v55  ;;  %vm1760_vm8 = vcmp.gt.s32.totalorder %v1759_v21, 0  ;;  %vm4030_vm9 = vcmp.le.f32.partialorder %v664_v9, 0.7853982  ;;  %vm666_vm10 = vcmp.lt.s32.totalorder %v3755_v59, 0 }
 0x189   : > { %v1412_v53 = vmul.f32 %v1410_v18, %v1410_v18  ;;  %v763_v57 = vadd.s32 536870912, %v762_v12  ;;  %v1761_v44 = vsel %vm1760_vm8, %v1759_v21, 0  ;;  %v3108_v46 = vadd.s32 4294967169, %v1443_v52 }
 0x18a   : > { %v1763_v61 = vand.u32 31, %v1761_v44  ;;  %v1429_v50 = vand.u32 3, %v1428_v13  ;;  %v758_v11 = vadd.s32 %v753_v3, %v734_v14  ;;  %v4038_v23 = vand.u32 65535, %v4025_v2 }
 0x18b   : > { %v1413_v45 = vmul.f32 -0.001358992, %v1412_v53  ;;  %v1420_v43 = vmul.f32 -0.00019511016, %v1412_v53  ;;  %v764_v16 = vshrl.u32 %v763_v57, 30  ;;  %v4040_v6 = vshrl.u32 %v1761_v44, 5 }
 0x18c   : > { %v1764_v22 = vsub.s32 32, %v1763_v61  ;;  %v4043_v9 = vshrl.u32 %v4025_v2, 16  ;;  %v4047_v56 = vand.u32 8388607, %v5445_v26  ;;  %v4049_v20 = vadd.s32 1, %v3108_v46 }
 0x18d   : > { %v1414_v28 = vadd.f32 0.041655596, %v1413_v45  ;;  %v1421_v63 = vadd.f32 0.008332121, %v1420_v43  ;;  %v765_v17 = vshll.u32 %v764_v16, 30  ;;  %v788_v32 = vsub.s32 4, %v764_v16 }
 0x18e   : > { %vm1431_vm12 = vcmp.eq.s32.totalorder %v1429_v50, 0  ;;  %vm1434_vm13 = vcmp.eq.s32.totalorder %v1429_v50, 2  ;;  %v1766_v7 = vshll.u32 %v3279_v19, %v1763_v61  ;;  %v1767_v8 = vshrl.u32 %v3280_v25, %v1764_v22 }
 0x18f   : > { %v1415_v37 = vmul.f32 %v1414_v28, %v1412_v53  ;;  %v1422_v35 = vmul.f32 %v1421_v63, %v1412_v53  ;;  %v4035_v48 = vsub.s32 %v762_v12, %v765_v17  ;;  %v789_v40 = vsel %vm666_vm10, %v788_v32, %v764_v16 }
 0x190   : > { %v1769_v55 = vshll.u32 %v3280_v25, %v1763_v61  ;;  %vm1430_vm14 = vcmp.lt.s32.totalorder %v1429_v50, 2  ;;  %v1770_v52 = vshrl.u32 %v5453_v58, %v1764_v22  ;;  %vm1427_vm0 = vweird.f32 %v3699_v1 }
 0x191   : > { %v1416_v14 = vadd.f32 -0.4999988, %v1415_v37  ;;  %v1423_v3 = vadd.f32 -0.16666654, %v1422_v35  ;;  %vm767_vm11 = vcmp.lt.s32.totalorder %v4035_v48, 0  ;;  %v768_v41 = vsub.s32 0, %v4035_v48 }
 0x192   : > { %v1772_v13 = vshll.u32 %v5453_v58, %v1763_v61  ;;  %v1773_v44 = vshrl.u32 %v3282_v36, %v1764_v22  ;;  %v1776_v45 = vshrl.u32 %v5454_v47, %v1764_v22  ;;  %v1775_v46 = vshll.u32 %v3282_v36, %v1763_v61 }
 0x193   : > { %v1417_v12 = vmul.f32 %v1416_v14, %v1412_v53  ;;  %v1424_v33 = vmul.f32 %v1423_v3, %v1412_v53  ;;  %v769_v21 = vsel %vm767_vm11, %v768_v41, %v4035_v48  ;;  %v1779_v53 = vshrl.u32 %v5455_v51, %v1764_v22 }
 0x194   : > { %v770_v57 = vclz %v769_v21  ;;  %v791_v63 = vsel %vm4030_vm9, 0, %v789_v40  ;;  %v1768_v17 = vor.u32 %v1767_v8, %v1766_v7  ;;  %v1778_v32 = vshll.u32 %v5454_v47, %v1763_v61 }
 0x195   : > { %v1418_v43 = vadd.f32 1.0, %v1417_v12  ;;  %v1425_v16 = vadd.f32 1.0, %v1424_v33  ;;  %v1771_v14 = vor.u32 %v1770_v52, %v1769_v55  ;;  %v1777_v3 = vor.u32 %v1776_v45, %v1775_v46 }
 0x196   : > { %v3094_v28 = vadd.s32 4294967294, %v770_v57  ;;  %v1765_v41 = vshrl.u32 %v3279_v19, %v1764_v22  ;;  %v1774_v12 = vor.u32 %v1773_v44, %v1772_v13  ;;  %v1780_v33 = vor.u32 %v1779_v53, %v1778_v32 }
 0x197   : > { %v1426_v37 = vmul.f32 %v1425_v16, %v1410_v18  ;;  %v1435_v35 = vxor.u32 2147483648, %v1418_v43  ;;  %vm1781_vm2 = vcmp.lt.s32.totalorder %v4040_v6, 1  ;;  %vm1782_vm15 = vcmp.lt.s32.totalorder %v4040_v6, 2 }
 0x198   : > { %vm3095_vm4 = vcmp.lt.s32.totalorder %v3094_v28, 0  ;;  %vm1783_vm5 = vcmp.lt.s32.totalorder %v4040_v6, 3  ;;  %vm1784_vm6 = vcmp.lt.s32.totalorder %v4040_v6, 4  ;;  %v1789_v22 = vsel %vm1781_vm2, %v1768_v17, %v1771_v14 }
 0x199   : > { %v1432_v21 = vxor.u32 2147483648, %v1426_v37  ;;  %v773_v26 = vsel %vm3095_vm4, 0, %v3094_v28  ;;  %v1436_v61 = vsel %vm1434_vm13, %v1435_v35, %v1426_v37  ;;  %v1790_v7 = vsel %vm1784_vm6, %v1777_v3, 920167782 }
 0x19a   : > { %v774_v57 = vsub.s32 32, %v773_v26  ;;  %v778_v40 = vsub.s32 4294967266, %v773_v26  ;;  %v775_v55 = vshll.u32 %v4035_v48, %v773_v26  ;;  %v1786_v45 = vsel %vm1784_vm6, %v1774_v12, 2102212464 }
 0x19b   : > { %v1433_v18 = vsel %vm1431_vm12, %v1418_v43, %v1432_v21  ;;  %v1791_v43 = vsel %vm1783_vm5, %v1774_v12, %v1790_v7  ;;  %v1793_v16 = vsel %vm1781_vm2, %v1771_v14, %v1774_v12  ;;  %v808_v1 = vadd.s32 3, %v791_v63 }
 0x19c   : > { %v1437_v8 = vsel %vm1430_vm14, %v1433_v18, %v1436_v61  ;;  %v776_v52 = vshrl.u32 %v758_v11, %v774_v57  ;;  %v779_v13 = vadd.s32 127, %v778_v40  ;;  %v1792_v26 = vsel %vm1782_vm15, %v1789_v22, %v1791_v43 }
 0x19d   : > { %v1438_v44 = vsel %vm1427_vm0, nan, %v1437_v8  ;;  %v1794_v11 = vsel %vm1784_vm6, %v1780_v33, 1326507024  ;;  %v1822_v53 = vand.u32 65535, %v1792_v26  ;;  %v1823_v28 = vshrl.u32 %v1792_v26, 16 }
 0x19e   : > { %2994 = vst [vmem:[%s3870_s25 + $0x28] sm:$0xff] %v1438_v44  ;;  %v777_v46 = vor.u32 %v776_v52, %v775_v55  ;;  %v780_v50 = vshll.u32 %v779_v13, 23  ;;  %v1795_v48 = vsel %vm1783_vm5, %v1777_v3, %v1794_v11  ;;  %v1785_v37 = vsel %vm1781_vm2, %v1765_v41, %v1768_v17 }
 0x19f   : > { %v1787_v35 = vsel %vm1783_vm5, %v1771_v14, %v1786_v45  ;;  %v1796_v12 = vsel %vm1782_vm15, %v1793_v16, %v1795_v48  ;;  %v1825_v33 = vmul.u32 %v1823_v28, %v4038_v23  ;;  %v1447_v63 = vor.u32 8388608, %v4047_v56 }
 0x1a0   : > { %v781_v32 = vor.u32 4788187, %v780_v50  ;;  %v1800_v21 = vand.u32 65535, %v1796_v12  ;;  %v1801_v57 = vshrl.u32 %v1796_v12, 16  ;;  %v784_v3 = vcvt.s32.f32 %v777_v46 }
 0x1a1   : > { %v1826_v18 = vmul.u32 %v1822_v53, %v4043_v9  ;;  %vm1450_vm7 = vcmp.gt.s32.totalorder %v4049_v20, 0  ;;  %v4107_v61 = vand.u32 3, %v808_v1  ;;  %v4111_v17 = vsel %vm1782_vm15, %v1785_v37, %v1787_v35 }
 0x1a2   : > { %v782_v40 = vand.u32 2147483647, %v781_v32  ;;  %v1803_v14 = vmul.u32 %v1801_v57, %v4038_v23  ;;  %v1804_v41 = vmul.u32 %v1800_v21, %v4043_v9  ;;  %v1824_v7 = vmul.u32 %v1822_v53, %v4038_v23 }
 0x1a3   : > { %v1827_v8 = vmul.u32 %v1823_v28, %v4043_v9  ;;  %v1828_v55 = vshll.u32 %v1825_v33, 16  ;;  %v1802_v52 = vmul.u32 %v1800_v21, %v4038_v23  ;;  %v1805_v13 = vmul.u32 %v1801_v57, %v4043_v9 }
 0x1a4   : > { %v785_v22 = vmul.f32 %v784_v3, %v782_v40  ;;  %v1806_v44 = vshll.u32 %v1803_v14, 16  ;;  %v1451_v45 = vsel %vm1450_vm7, %v4049_v20, 0  ;;  %v1830_v43 = vshll.u32 %v1826_v18, 16 }
 0x1a5   : > { %vm1832_vm8 = vc.u32 %v1824_v7, %v1828_v55  ;;  %v1834_v16 = vadd.s32 %v1828_v55, %v1824_v7  ;;  %v1808_v46 = vshll.u32 %v1804_v41, 16  ;;  %v1829_v32 = vshrl.u32 %v1825_v33, 16 }
 0x1a6   : > { %v786_v6 = vxor.u32 2147483648, %v785_v22  ;;  %vm1810_vm11 = vc.u32 %v1802_v52, %v1806_v44  ;;  %v1812_v50 = vadd.s32 %v1806_v44, %v1802_v52  ;;  %v1833_v26 = vsel %vm1832_vm8, 1, %v3277_v29 }
 0x1a7   : > { %v1811_v1 = vsel %vm1810_vm11, 1, %v3277_v29  ;;  %v1835_v23 = vadd.s32 %v1833_v26, %v1827_v8  ;;  %vm1836_vm12 = vc.u32 %v1834_v16, %v1830_v43  ;;  %v1807_v35 = vshrl.u32 %v1803_v14, 16 }
 0x1a8   : > { %v787_v11 = vsel %vm666_vm10, %v786_v6, %v785_v22  ;;  %v1813_v20 = vadd.s32 %v1811_v1, %v1805_v13  ;;  %vm1814_vm13 = vc.u32 %v1812_v50, %v1808_v46  ;;  %v1837_v48 = vsel %vm1836_vm12, 1, %v3277_v29 }
 0x1a9   : > { %v790_v9 = vsel %vm4030_vm9, %v3755_v59, %v787_v11  ;;  %v1815_v28 = vsel %vm1814_vm13, 1, %v3277_v29  ;;  %v1839_v37 = vadd.s32 %v1837_v48, %v1835_v23  ;;  %v1842_v21 = vmul.u32 %v4025_v2, %v4111_v17 }
 0x1aa   : > { %v792_v53 = vmul.f32 %v790_v9, %v790_v9  ;;  %v1817_v12 = vadd.s32 %v1815_v28, %v1813_v20  ;;  %v1453_v57 = vand.u32 31, %v1451_v45  ;;  %v1831_v22 = vshrl.u32 %v1826_v18, 16 }
 0x1ab   : > { %v1840_v5 = vadd.s32 %v1839_v37, %v1829_v32  ;;  %v1809_v7 = vshrl.u32 %v1804_v41, 16  ;;  %v4131_v55 = vadd.s32 %v1834_v16, %v1830_v43  ;;  %v4147_v50 = vshrl.u32 %v1451_v45, 5 }
 0x1ac   : > { %v793_v40 = vmul.f32 -0.001358992, %v792_v53  ;;  %v800_v3 = vmul.f32 -0.00019511016, %v792_v53  ;;  %v1818_v8 = vadd.s32 %v1817_v12, %v1807_v35  ;;  %v4133_v52 = vsub.s32 32, %v1453_v57  ;;  %v4157_v12 = vpop.permute.xlu1 %363 }
 0x1ad   : > { %v1841_v33 = vadd.s32 %v1840_v5, %v1831_v22  ;;  %v1456_v14 = vshll.u32 %v3279_v19, %v1453_v57  ;;  %v1459_v17 = vshll.u32 %v3280_v25, %v1453_v57  ;;  %v1462_v11 = vshll.u32 %v5453_v58, %v1453_v57 }
 0x1ae   : > { %v794_v13 = vadd.f32 0.041655596, %v793_v40  ;;  %v801_v44 = vadd.f32 0.008332121, %v800_v3  ;;  %v4136_v6 = vadd.s32 %v1818_v8, %v1809_v7  ;;  %v1457_v2 = vshrl.u32 %v3280_v25, %v4133_v52 }
 0x1af   : > { %v1460_v18 = vshrl.u32 %v5453_v58, %v4133_v52  ;;  %v1845_v16 = vadd.s32 1, %v1841_v33  ;;  %v1463_v46 = vshrl.u32 %v3282_v36, %v4133_v52  ;;  %v1465_v37 = vshll.u32 %v3282_v36, %v1453_v57 }
 0x1b0   : > { %v795_v41 = vmul.f32 %v794_v13, %v792_v53  ;;  %v802_v43 = vmul.f32 %v801_v44, %v792_v53  ;;  %vm1844_vm9 = vc.u32 %v4136_v6, %v4131_v55  ;;  %v4149_v26 = vor.u32 %v1457_v2, %v1456_v14 }
 0x1b1   : > { %v1846_v20 = vsel %vm1844_vm9, %v1845_v16, %v1841_v33  ;;  %v4152_v48 = vor.u32 %v1460_v18, %v1459_v17  ;;  %v1464_v32 = vor.u32 %v1463_v46, %v1462_v11  ;;  %v1466_v35 = vshrl.u32 %v5454_v47, %v4133_v52 }
 0x1b2   : > { %v796_v1 = vadd.f32 -0.4999988, %v795_v41  ;;  %v803_v23 = vadd.f32 -0.16666654, %v802_v43  ;;  %v1847_v28 = vadd.s32 %v1846_v20, %v1842_v21  ;;  %v1468_v3 = vshll.u32 %v5454_v47, %v1453_v57 }
 0x1b3   : > { %v1469_v22 = vshrl.u32 %v5455_v51, %v4133_v52  ;;  %v1467_v7 = vor.u32 %v1466_v35, %v1465_v37  ;;  %vm1471_vm10 = vcmp.lt.s32.totalorder %v4147_v50, 1  ;;  %vm1472_vm14 = vcmp.lt.s32.totalorder %v4147_v50, 2 }
 0x1b4   : > { %v797_v45 = vmul.f32 %v796_v1, %v792_v53  ;;  %v804_v40 = vmul.f32 %v803_v23, %v792_v53  ;;  %v1848_v5 = vadd.s32 536870912, %v1847_v28  ;;  %vm1474_vm0 = vcmp.lt.s32.totalorder %v4147_v50, 4 }
 0x1b5   : > { %v1470_v13 = vor.u32 %v1469_v22, %v1468_v3  ;;  %vm1473_vm4 = vcmp.lt.s32.totalorder %v4147_v50, 3  ;;  %v1479_v53 = vsel %vm1471_vm10, %v4149_v26, %v4152_v48  ;;  %v1480_v57 = vsel %vm1474_vm0, %v1467_v7, 920167782 }
 0x1b6   : > { %v798_v21 = vadd.f32 1.0, %v797_v45  ;;  %v805_v8 = vadd.f32 1.0, %v804_v40  ;;  %v4165_v44 = vshrl.u32 %v1848_v5, 30  ;;  %v1481_v2 = vsel %vm1473_vm4, %v1464_v32, %v1480_v57  ;;  %v4199_v40 = vpop.permute.xlu1 %375 }
 0x1b7   : > { %v1483_v17 = vsel %vm1471_vm10, %v4152_v48, %v1464_v32  ;;  %v1482_v41 = vsel %vm1472_vm14, %v1479_v53, %v1481_v2  ;;  %v1484_v43 = vsel %vm1474_vm0, %v1470_v13, 1326507024  ;;  %vm807_vm2 = vweird.f32 %v3755_v59 }
 0x1b8   : > { %v806_v33 = vmul.f32 %v805_v8, %v790_v9  ;;  %v815_v14 = vxor.u32 2147483648, %v798_v21  ;;  %v1850_v18 = vshll.u32 %v4165_v44, 30  ;;  %v1485_v9 = vsel %vm1473_vm4, %v1467_v7, %v1484_v43 }
 0x1b9   : > { %v4189_v46 = vshll.u32 %v1447_v63, 8  ;;  %vm811_vm15 = vcmp.eq.s32.totalorder %v4107_v61, 0  ;;  %vm814_vm5 = vcmp.eq.s32.totalorder %v4107_v61, 2  ;;  %v1486_v1 = vsel %vm1472_vm14, %v1483_v17, %v1485_v9 }
 0x1ba   : > { %v812_v16 = vxor.u32 2147483648, %v806_v33  ;;  %v1851_v11 = vsub.s32 %v1847_v28, %v1850_v18  ;;  %vm810_vm6 = vcmp.lt.s32.totalorder %v4107_v61, 2  ;;  %v816_v20 = vsel %vm814_vm5, %v815_v14, %v806_v33 }
 0x1bb   : > { %v1512_v37 = vand.u32 65535, %v1482_v41  ;;  %v1488_v56 = vand.u32 65535, %v4189_v46  ;;  %v1489_v28 = vshrl.u32 %v4189_v46, 16  ;;  %v1490_v3 = vand.u32 65535, %v1486_v1 }
 0x1bc   : > { %v813_v23 = vsel %vm811_vm15, %v798_v21, %v812_v16  ;;  %vm1852_vm7 = vcmp.lt.s32.totalorder %v1851_v11, 0  ;;  %v1853_v45 = vsub.s32 0, %v1851_v11  ;;  %v1491_v22 = vshrl.u32 %v1486_v1, 16 }
 0x1bd   : > { %v817_v35 = vsel %vm810_vm6, %v813_v23, %v816_v20  ;;  %v1455_v61 = vshrl.u32 %v3279_v19, %v4133_v52  ;;  %v1513_v7 = vshrl.u32 %v1482_v41, 16  ;;  %v1494_v13 = vmul.u32 %v1490_v3, %v1489_v28 }
 0x1be   : > { %v818_v63 = vsel %vm807_vm2, nan, %v817_v35  ;;  %v1854_v5 = vsel %vm1852_vm7, %v1853_v45, %v1851_v11  ;;  %v1493_v8 = vmul.u32 %v1491_v22, %v1488_v56  ;;  %v1843_v53 = vadd.s32 %v4131_v55, %v4136_v6 }
 0x1bf   : > { %2990 = vst [vmem:[%s3870_s25 + $0x8] sm:$0xff] %v818_v63  ;;  %v1855_v21 = vclz %v1854_v5  ;;  %v1873_v59 = vsub.s32 4, %v4165_v44  ;;  %v1475_v57 = vsel %vm1471_vm10, %v1455_v61, %v4149_v26  ;;  %v1476_v33 = vsel %vm1474_vm0, %v1464_v32, 2102212464  ;;  %v443_v61 = vpop.permute.xlu2 %442 }
 0x1c0   : > { %v1492_v2 = vmul.u32 %v1490_v3, %v1488_v56  ;;  %v1496_v17 = vshll.u32 %v1493_v8, 16  ;;  %v1516_v52 = vmul.u32 %v1512_v37, %v1489_v28  ;;  %v1495_v18 = vmul.u32 %v1491_v22, %v1489_v28 }
 0x1c1   : > { %v3115_v14 = vadd.s32 4294967294, %v1855_v21  ;;  %v1497_v41 = vshrl.u32 %v1493_v8, 16  ;;  %v1514_v43 = vmul.u32 %v1512_v37, %v1488_v56  ;;  %v1515_v16 = vmul.u32 %v1513_v7, %v1488_v56  ;;  %v407_v21 = vpop.permute.xlu1 %406 }
 0x1c2   : > { %vm1751_vm8 = vcmp.lt.s32.totalorder %v3993_v27, 0  ;;  %v1498_v55 = vshll.u32 %v1494_v13, 16  ;;  %vm1500_vm12 = vc.u32 %v1492_v2, %v1496_v17  ;;  %v1502_v6 = vadd.s32 %v1496_v17, %v1492_v2 }
 0x1c3   : > { %vm3116_vm11 = vcmp.lt.s32.totalorder %v3115_v14, 0  ;;  %v1501_v26 = vsel %vm1500_vm12, 1, %v3277_v29  ;;  %v1517_v1 = vmul.u32 %v1513_v7, %v1489_v28  ;;  %v1518_v23 = vshll.u32 %v1515_v16, 16 }
 0x1c4   : > { %v1858_v9 = vsel %vm3116_vm11, 0, %v3115_v14  ;;  %v1503_v35 = vadd.s32 %v1501_v26, %v1495_v18  ;;  %v1520_v45 = vshll.u32 %v1516_v52, 16  ;;  %vm1504_vm13 = vc.u32 %v1502_v6, %v1498_v55 }
 0x1c5   : > { %v1859_v32 = vsub.s32 32, %v1858_v9  ;;  %v1863_v20 = vsub.s32 4294967266, %v1858_v9  ;;  %v1860_v63 = vshll.u32 %v1851_v11, %v1858_v9  ;;  %vm1522_vm9 = vc.u32 %v1514_v43, %v1518_v23 }
 0x1c6   : > { %v1524_v37 = vadd.s32 %v1518_v23, %v1514_v43  ;;  %v1505_v22 = vsel %vm1504_vm13, 1, %v3277_v29  ;;  %v1523_v5 = vsel %vm1522_vm9, 1, %v3277_v29  ;;  %v1499_v8 = vshrl.u32 %v1494_v13, 16 }
 0x1c7   : > { %v1861_v56 = vshrl.u32 %v1843_v53, %v1859_v32  ;;  %v1864_v3 = vadd.s32 127, %v1863_v20  ;;  %v1507_v14 = vadd.s32 %v1505_v22, %v1503_v35  ;;  %v1525_v28 = vadd.s32 %v1523_v5, %v1517_v1 }
 0x1c8   : > { %vm1526_vm10 = vc.u32 %v1524_v37, %v1520_v45  ;;  %v1519_v17 = vshrl.u32 %v1515_v16, 16  ;;  %v472_v53 = vsel %vm394_vm3, %v443_v61, %v3569_v24  ;;  %v463_v43 = vsel %vm394_vm3, %v407_v21, %v3517_v62 }
 0x1c9   : > { %v1862_v7 = vor.u32 %v1861_v56, %v1860_v63  ;;  %v1865_v2 = vshll.u32 %v1864_v3, 23  ;;  %v1527_v11 = vsel %vm1526_vm10, 1, %v3277_v29  ;;  %v1508_v18 = vadd.s32 %v1507_v14, %v1497_v41 }
 0x1ca   : > { %v1529_v55 = vadd.s32 %v1527_v11, %v1525_v28  ;;  %v1477_v13 = vsel %vm1473_vm4, %v4152_v48, %v1476_v33  ;;  %v488_v9 = vmul.f32 %v472_v53, %v3549_v34  ;;  %v479_v16 = vmul.f32 %v463_v43, %v3549_v34 }
 0x1cb   : > { %v1866_v6 = vor.u32 4788187, %v1865_v2  ;;  %v1874_v41 = vsel %vm1751_vm8, %v1873_v59, %v4165_v44  ;;  %v1509_v26 = vadd.s32 %v1508_v18, %v1499_v8  ;;  %v1521_v1 = vshrl.u32 %v1516_v52, 16 }
 0x1cc   : > { %v1530_v24 = vadd.s32 %v1529_v55, %v1519_v17  ;;  %v1869_v32 = vcvt.s32.f32 %v1862_v7  ;;  %v1528_v20 = vadd.s32 %v1524_v37, %v1520_v45  ;;  %v4233_v62 = vadd.f32 %v488_v9, %v3560_v39 }
 0x1cd   : > { %v1867_v23 = vand.u32 2147483647, %v1866_v6  ;;  %vm4237_vm0 = vcmp.le.f32.partialorder %v1749_v42, 0.7853982  ;;  %v1478_v33 = vsel %vm1472_vm14, %v1475_v57, %v1477_v13  ;;  %v4244_v44 = vadd.f32 %v479_v16, %v3560_v39 }
 0x1ce   : > { %v1531_v35 = vadd.s32 %v1530_v24, %v1521_v1  ;;  %vm1534_vm4 = vc.u32 %v1509_v26, %v1528_v20  ;;  %v2214_v52 = vand.u32 2147483647, %v4233_v62  ;;  %v2217_v45 = vand.u32 2139095040, %v4233_v62 }
 0x1cf   : > { %v1870_v59 = vmul.f32 %v1869_v32, %v1867_v23  ;;  %v1876_v63 = vsel %vm4237_vm0, 0, %v1874_v41  ;;  %v1532_v56 = vmul.u32 %v4189_v46, %v1478_v33  ;;  %v822_v22 = vand.u32 2139095040, %v4244_v44 }
 0x1d0   : > { %v1535_v42 = vadd.s32 1, %v1531_v35  ;;  %v2218_v3 = vshrl.u32 %v2217_v45, 23  ;;  %v2221_v50 = vand.u32 8388607, %v2214_v52  ;;  %v1893_v14 = vadd.s32 3, %v1876_v63 }
 0x1d1   : > { %v1871_v37 = vxor.u32 2147483648, %v1870_v59  ;;  %v823_v17 = vshrl.u32 %v822_v22, 23  ;;  %v5463_v1 = vand.u32 2147483647, %v4008_v38  ;;  %vm1441_vm15 = vcmp.lt.s32.totalorder %v4008_v38, 0 }
 0x1d2   : > { %v1536_v57 = vsel %vm1534_vm4, %v1535_v42, %v1531_v35  ;;  %v3123_v21 = vadd.s32 4294967169, %v2218_v3  ;;  %v2222_v28 = vor.u32 8388608, %v2221_v50  ;;  %v4259_v53 = vand.u32 3, %v1893_v14 }
 0x1d3   : > { %v1872_v5 = vsel %vm1751_vm8, %v1871_v37, %v1870_v59  ;;  %v1537_v61 = vadd.s32 %v1536_v57, %v1532_v56  ;;  %vm4265_vm2 = vcmp.le.f32.partialorder %v5463_v1, 0.7853982  ;;  %v3096_v32 = vadd.s32 4294967169, %v823_v17 }
 0x1d4   : > { %v1875_v8 = vsel %vm4237_vm0, %v3993_v27, %v1872_v5  ;;  %v2224_v2 = vadd.s32 1, %v3123_v21  ;;  %v4261_v6 = vshll.u32 %v2222_v28, 8  ;;  %v1533_v35 = vadd.s32 %v1528_v20, %v1509_v26 }
 0x1d5   : > { %v1877_v7 = vmul.f32 %v1875_v8, %v1875_v8  ;;  %v1538_v46 = vadd.s32 536870912, %v1537_v61  ;;  %vm1899_vm5 = vcmp.eq.s32.totalorder %v4259_v53, 2  ;;  %v819_v37 = vand.u32 2147483647, %v4244_v44 }
 0x1d6   : > { %vm2225_vm14 = vcmp.gt.s32.totalorder %v2224_v2, 0  ;;  %v4278_v42 = vand.u32 65535, %v4261_v6  ;;  %vm1896_vm7 = vcmp.eq.s32.totalorder %v4259_v53, 0  ;;  %v4288_v22 = vadd.s32 1, %v3096_v32 }
 0x1d7   : > { %v1878_v11 = vmul.f32 -0.001358992, %v1877_v7  ;;  %v1885_v18 = vmul.f32 -0.00019511016, %v1877_v7  ;;  %v1539_v55 = vshrl.u32 %v1538_v46, 30  ;;  %v2226_v43 = vsel %vm2225_vm14, %v2224_v2, 0 }
 0x1d8   : > { %v2228_v23 = vand.u32 31, %v2226_v43  ;;  %v4284_v20 = vshrl.u32 %v2226_v43, 5  ;;  %vm1895_vm8 = vcmp.lt.s32.totalorder %v4259_v53, 2  ;;  %vm1892_vm11 = vweird.f32 %v3993_v27 }
 0x1d9   : > { %v1879_v13 = vadd.f32 0.041655596, %v1878_v11  ;;  %v1886_v9 = vadd.f32 0.008332121, %v1885_v18  ;;  %v1540_v16 = vshll.u32 %v1539_v55, 30  ;;  %v1563_v41 = vsub.s32 4, %v1539_v55 }
 0x1da   : > { %v2229_v63 = vsub.s32 32, %v2228_v23  ;;  %v2231_v2 = vshll.u32 %v3279_v19, %v2228_v23  ;;  %v2234_v17 = vshll.u32 %v3280_v25, %v2228_v23  ;;  %vm2246_vm13 = vcmp.lt.s32.totalorder %v4284_v20, 1 }
 0x1db   : > { %v1880_v48 = vmul.f32 %v1879_v13, %v1877_v7  ;;  %v1887_v33 = vmul.f32 %v1886_v9, %v1877_v7  ;;  %v4270_v59 = vsub.s32 %v1537_v61, %v1540_v16  ;;  %v4275_v45 = vsel %vm1441_vm15, %v1563_v41, %v1539_v55 }
 0x1dc   : > { %v2232_v50 = vshrl.u32 %v3280_v25, %v2229_v63  ;;  %v2235_v57 = vshrl.u32 %v5453_v58, %v2229_v63  ;;  %v1566_v14 = vsel %vm4265_vm2, 0, %v4275_v45  ;;  %v2230_v46 = vshrl.u32 %v3279_v19, %v2229_v63 }
 0x1dd   : > { %v1881_v56 = vadd.f32 -0.4999988, %v1880_v48  ;;  %v1888_v3 = vadd.f32 -0.16666654, %v1887_v33  ;;  %vm1542_vm6 = vcmp.lt.s32.totalorder %v4270_v59, 0  ;;  %v1543_v26 = vsub.s32 0, %v4270_v59 }
 0x1de   : > { %v2238_v55 = vshrl.u32 %v3282_v36, %v2229_v63  ;;  %v2233_v13 = vor.u32 %v2232_v50, %v2231_v2  ;;  %v2236_v9 = vor.u32 %v2235_v57, %v2234_v17  ;;  %v2240_v16 = vshll.u32 %v3282_v36, %v2228_v23 }
 0x1df   : > { %v1882_v5 = vmul.f32 %v1881_v56, %v1877_v7  ;;  %v1889_v61 = vmul.f32 %v1888_v3, %v1877_v7  ;;  %v1544_v21 = vsel %vm1542_vm6, %v1543_v26, %v4270_v59  ;;  %v2237_v7 = vshll.u32 %v5453_v58, %v2228_v23 }
 0x1e0   : > { %v1545_v28 = vclz %v1544_v21  ;;  %v2241_v48 = vshrl.u32 %v5454_v47, %v2229_v63  ;;  %v2243_v33 = vshll.u32 %v5454_v47, %v2228_v23  ;;  %v2244_v45 = vshrl.u32 %v5455_v51, %v2229_v63 }
 0x1e1   : > { %v1883_v11 = vadd.f32 1.0, %v1882_v5  ;;  %v1890_v18 = vadd.f32 1.0, %v1889_v61  ;;  %v2239_v32 = vor.u32 %v2238_v55, %v2237_v7  ;;  %vm2247_vm9 = vcmp.lt.s32.totalorder %v4284_v20, 2 }
 0x1e2   : > { %v3109_v43 = vadd.s32 4294967294, %v1545_v28  ;;  %v2242_v50 = vor.u32 %v2241_v48, %v2240_v16  ;;  %v2245_v61 = vor.u32 %v2244_v45, %v2243_v33  ;;  %vm2248_vm10 = vcmp.lt.s32.totalorder %v4284_v20, 3 }
 0x1e3   : > { %v1891_v41 = vmul.f32 %v1890_v18, %v1875_v8  ;;  %v1900_v1 = vxor.u32 2147483648, %v1883_v11  ;;  %vm2249_vm0 = vcmp.lt.s32.totalorder %v4284_v20, 4  ;;  %v2250_v2 = vsel %vm2246_vm13, %v2230_v46, %v2233_v13 }
 0x1e4   : > { %vm3110_vm12 = vcmp.lt.s32.totalorder %v3109_v43, 0  ;;  %v2251_v17 = vsel %vm2249_vm0, %v2239_v32, 2102212464  ;;  %v2255_v18 = vsel %vm2249_vm0, %v2242_v50, 920167782  ;;  %v1583_v27 = vadd.s32 3, %v1566_v14 }
 0x1e5   : > { %v1897_v56 = vxor.u32 2147483648, %v1891_v41  ;;  %v1901_v3 = vsel %vm1899_vm5, %v1900_v1, %v1891_v41  ;;  %v1548_v26 = vsel %vm3110_vm12, 0, %v3109_v43  ;;  %v2256_v46 = vsel %vm2248_vm10, %v2239_v32, %v2255_v18 }
 0x1e6   : > { %v1549_v57 = vsub.s32 32, %v1548_v26  ;;  %v1550_v8 = vshll.u32 %v4270_v59, %v1548_v26  ;;  %v1553_v5 = vsub.s32 4294967266, %v1548_v26  ;;  %v2258_v43 = vsel %vm2246_vm13, %v2236_v9, %v2239_v32 }
 0x1e7   : > { %v1898_v21 = vsel %vm1896_vm7, %v1883_v11, %v1897_v56  ;;  %v2254_v11 = vsel %vm2246_vm13, %v2233_v13, %v2236_v9  ;;  %v2259_v13 = vsel %vm2249_vm0, %v2245_v61, 1326507024  ;;  %v2264_v1 = vshrl.u32 %v4261_v6, 16 }
 0x1e8   : > { %v1902_v23 = vsel %vm1895_vm8, %v1898_v21, %v1901_v3  ;;  %v1551_v63 = vshrl.u32 %v1533_v35, %v1549_v57  ;;  %v1554_v28 = vadd.s32 127, %v1553_v5  ;;  %v2252_v35 = vsel %vm2248_vm10, %v2236_v9, %v2251_v17 }
 0x1e9   : > { %v1903_v59 = vsel %vm1892_vm11, nan, %v1902_v23  ;;  %v2257_v55 = vsel %vm2247_vm9, %v2254_v11, %v2256_v46  ;;  %v2260_v41 = vsel %vm2248_vm10, %v2242_v50, %v2259_v13  ;;  %v4342_v33 = vsel %vm2247_vm9, %v2250_v2, %v2252_v35 }
 0x1ea   : > { %2997 = vst [vmem:[%s3870_s25 + $0x40] sm:$0xff] %v1903_v59  ;;  %v1552_v53 = vor.u32 %v1551_v63, %v1550_v8  ;;  %v1555_v7 = vshll.u32 %v1554_v28, 23  ;;  %v2287_v48 = vand.u32 65535, %v2257_v55  ;;  %v2261_v14 = vsel %vm2247_vm9, %v2258_v43, %v2260_v41 }
 0x1eb   : > { %v2288_v45 = vshrl.u32 %v2257_v55, 16  ;;  %vm830_vm4 = vcmp.gt.s32.totalorder %v4288_v22, 0  ;;  %v2265_v56 = vand.u32 65535, %v2261_v14  ;;  %v2266_v3 = vshrl.u32 %v2261_v14, 16 }
 0x1ec   : > { %v1556_v16 = vor.u32 4788187, %v1555_v7  ;;  %v1559_v32 = vcvt.s32.f32 %v1552_v53  ;;  %v4347_v26 = vand.u32 3, %v1583_v27  ;;  %v2291_v57 = vmul.u32 %v2287_v48, %v2264_v1 }
 0x1ed   : > { %v2290_v50 = vmul.u32 %v2288_v45, %v4278_v42  ;;  %v4352_v8 = vand.u32 8388607, %v819_v37  ;;  %v2268_v20 = vmul.u32 %v2266_v3, %v4278_v42  ;;  %v2269_v61 = vmul.u32 %v2265_v56, %v2264_v1 }
 0x1ee   : > { %v1557_v9 = vand.u32 2147483647, %v1556_v16  ;;  %v2307_v21 = vmul.u32 %v4261_v6, %v4342_v33  ;;  %v2289_v23 = vmul.u32 %v2287_v48, %v4278_v42  ;;  %v2292_v63 = vmul.u32 %v2288_v45, %v2264_v1 }
 0x1ef   : > { %v2293_v28 = vshll.u32 %v2290_v50, 16  ;;  %v831_v2 = vsel %vm830_vm4, %v4288_v22, 0  ;;  %v2267_v17 = vmul.u32 %v2265_v56, %v4278_v42  ;;  %v2270_v11 = vmul.u32 %v2266_v3, %v2264_v1 }
 0x1f0   : > { %v1560_v5 = vmul.f32 %v1559_v32, %v1557_v9  ;;  %v2271_v18 = vshll.u32 %v2268_v20, 16  ;;  %v2273_v53 = vshll.u32 %v2269_v61, 16  ;;  %v2295_v7 = vshll.u32 %v2291_v57, 16 }
 0x1f1   : > { %vm2297_vm14 = vc.u32 %v2289_v23, %v2293_v28  ;;  %v2299_v35 = vadd.s32 %v2293_v28, %v2289_v23  ;;  %v2294_v48 = vshrl.u32 %v2290_v50, 16  ;;  %v833_v45 = vand.u32 31, %v831_v2 }
 0x1f2   : > { %v1561_v59 = vxor.u32 2147483648, %v1560_v5  ;;  %vm2275_vm5 = vc.u32 %v2267_v17, %v2271_v18  ;;  %v2277_v27 = vadd.s32 %v2271_v18, %v2267_v17  ;;  %v2298_v55 = vsel %vm2297_vm14, 1, %v3277_v29 }
 0x1f3   : > { %v2276_v43 = vsel %vm2275_vm5, 1, %v3277_v29  ;;  %v2300_v42 = vadd.s32 %v2298_v55, %v2292_v63  ;;  %vm2301_vm6 = vc.u32 %v2299_v35, %v2295_v7  ;;  %v2272_v56 = vshrl.u32 %v2268_v20, 16 }
 0x1f4   : > { %v1562_v46 = vsel %vm1441_vm15, %v1561_v59, %v1560_v5  ;;  %v2278_v16 = vadd.s32 %v2276_v43, %v2270_v11  ;;  %vm2279_vm7 = vc.u32 %v2277_v27, %v2273_v53  ;;  %v2302_v41 = vsel %vm2301_vm6, 1, %v3277_v29 }
 0x1f5   : > { %v1565_v22 = vsel %vm4265_vm2, %v4008_v38, %v1562_v46  ;;  %v2280_v1 = vsel %vm2279_vm7, 1, %v3277_v29  ;;  %v2304_v14 = vadd.s32 %v2302_v41, %v2300_v42  ;;  %v2296_v24 = vshrl.u32 %v2291_v57, 16 }
 0x1f6   : > { %v1567_v13 = vmul.f32 %v1565_v22, %v1565_v22  ;;  %v2282_v3 = vadd.s32 %v2280_v1, %v2278_v16  ;;  %v4371_v23 = vshrl.u32 %v831_v2, 5  ;;  %v4373_v63 = vsub.s32 32, %v833_v45 }
 0x1f7   : > { %v2305_v5 = vadd.s32 %v2304_v14, %v2294_v48  ;;  %v2274_v17 = vshrl.u32 %v2269_v61, 16  ;;  %v4375_v18 = vadd.s32 %v2299_v35, %v2295_v7  ;;  %v836_v50 = vshll.u32 %v3279_v19, %v833_v45 }
 0x1f8   : > { %v1568_v9 = vmul.f32 -0.001358992, %v1567_v13  ;;  %v1575_v32 = vmul.f32 -0.00019511016, %v1567_v13  ;;  %v2283_v11 = vadd.s32 %v2282_v3, %v2272_v56  ;;  %v837_v46 = vshrl.u32 %v3280_v25, %v4373_v63 }
 0x1f9   : > { %v2306_v53 = vadd.s32 %v2305_v5, %v2296_v24  ;;  %v839_v2 = vshll.u32 %v3280_v25, %v833_v45  ;;  %v840_v43 = vshrl.u32 %v5453_v58, %v4373_v63  ;;  %v842_v61 = vshll.u32 %v5453_v58, %v833_v45 }
 0x1fa   : > { %v1569_v28 = vadd.f32 0.041655596, %v1568_v9  ;;  %v1576_v59 = vadd.f32 0.008332121, %v1575_v32  ;;  %v4380_v57 = vadd.s32 %v2283_v11, %v2274_v17  ;;  %v843_v7 = vshrl.u32 %v3282_v36, %v4373_v63 }
 0x1fb   : > { %v2310_v55 = vadd.s32 1, %v2306_v53  ;;  %v838_v16 = vor.u32 %v837_v46, %v836_v50  ;;  %v845_v1 = vshll.u32 %v3282_v36, %v833_v45  ;;  %v846_v48 = vshrl.u32 %v5454_v47, %v4373_v63 }
 0x1fc   : > { %v1570_v20 = vmul.f32 %v1569_v28, %v1567_v13  ;;  %v1577_v27 = vmul.f32 %v1576_v59, %v1567_v13  ;;  %vm2309_vm2 = vc.u32 %v4380_v57, %v4375_v18  ;;  %v848_v14 = vshll.u32 %v5454_v47, %v833_v45 }
 0x1fd   : > { %v2311_v41 = vsel %vm2309_vm2, %v2310_v55, %v2306_v53  ;;  %v849_v3 = vshrl.u32 %v5455_v51, %v4373_v63  ;;  %v4399_v24 = vor.u32 %v840_v43, %v839_v2  ;;  %v844_v5 = vor.u32 %v843_v7, %v842_v61 }
 0x1fe   : > { %v1571_v35 = vadd.f32 -0.4999988, %v1570_v20  ;;  %v1578_v42 = vadd.f32 -0.16666654, %v1577_v27  ;;  %v2312_v56 = vadd.s32 %v2311_v41, %v2307_v21  ;;  %v847_v28 = vor.u32 %v846_v48, %v845_v1 }
 0x1ff   : > { %vm854_vm15 = vcmp.lt.s32.totalorder %v4371_v23, 4  ;;  %v850_v53 = vor.u32 %v849_v3, %v848_v14  ;;  %vm1585_vm8 = vcmp.lt.s32.totalorder %v4347_v26, 2  ;;  %vm851_vm11 = vcmp.lt.s32.totalorder %v4371_v23, 1 }
 0x200   : > { %v1572_v9 = vmul.f32 %v1571_v35, %v1567_v13  ;;  %v1579_v32 = vmul.f32 %v1578_v42, %v1567_v13  ;;  %v2313_v11 = vadd.s32 536870912, %v2312_v56  ;;  %v827_v13 = vor.u32 8388608, %v4352_v8 }
 0x201   : > { %v860_v6 = vsel %vm854_vm15, %v847_v28, 920167782  ;;  %vm1586_vm12 = vcmp.eq.s32.totalorder %v4347_v26, 0  ;;  %vm853_vm13 = vcmp.lt.s32.totalorder %v4371_v23, 3  ;;  %v863_v50 = vsel %vm851_vm11, %v4399_v24, %v844_v5 }
 0x202   : > { %v1573_v59 = vadd.f32 1.0, %v1572_v9  ;;  %v1580_v17 = vadd.f32 1.0, %v1579_v32  ;;  %v4406_v45 = vshrl.u32 %v2313_v11, 30  ;;  %v864_v8 = vsel %vm854_vm15, %v850_v53, 1326507024 }
 0x203   : > { %v861_v27 = vsel %vm853_vm13, %v844_v5, %v860_v6  ;;  %vm1589_vm9 = vcmp.eq.s32.totalorder %v4347_v26, 2  ;;  %vm852_vm10 = vcmp.lt.s32.totalorder %v4371_v23, 2  ;;  %v865_v2 = vsel %vm853_vm13, %v847_v28, %v864_v8 }
 0x204   : > { %v1581_v33 = vmul.f32 %v1580_v17, %v1565_v22  ;;  %v1590_v21 = vxor.u32 2147483648, %v1573_v59  ;;  %v2315_v20 = vshll.u32 %v4406_v45, 30  ;;  %v859_v22 = vsel %vm851_vm11, %v838_v16, %v4399_v24 }
 0x205   : > { %v4426_v55 = vshll.u32 %v827_v13, 8  ;;  %v866_v35 = vsel %vm852_vm10, %v863_v50, %v865_v2  ;;  %vm1582_vm0 = vweird.f32 %v4008_v38  ;;  %v862_v41 = vsel %vm852_vm10, %v859_v22, %v861_v27 }
 0x206   : > { %v1587_v46 = vxor.u32 2147483648, %v1581_v33  ;;  %v1591_v61 = vsel %vm1589_vm9, %v1590_v21, %v1581_v33  ;;  %v2316_v7 = vsub.s32 %v2312_v56, %v2315_v20  ;;  %v870_v32 = vand.u32 65535, %v866_v35 }
 0x207   : > { %v868_v14 = vand.u32 65535, %v4426_v55  ;;  %v869_v9 = vshrl.u32 %v4426_v55, 16  ;;  %v871_v56 = vshrl.u32 %v866_v35, 16  ;;  %v835_v38 = vshrl.u32 %v3279_v19, %v4373_v63 }
 0x208   : > { %v1588_v43 = vsel %vm1586_vm12, %v1573_v59, %v1587_v46  ;;  %vm2317_vm4 = vcmp.lt.s32.totalorder %v2316_v7, 0  ;;  %v2318_v48 = vsub.s32 0, %v2316_v7  ;;  %v892_v28 = vand.u32 65535, %v862_v41  ;;  %v435_v59 = vpop.permute.xlu0 %434 }
 0x209   : > { %v1592_v42 = vsel %vm1585_vm8, %v1588_v43, %v1591_v61  ;;  %v893_v26 = vshrl.u32 %v862_v41, 16  ;;  %v873_v11 = vmul.u32 %v871_v56, %v868_v14  ;;  %v874_v53 = vmul.u32 %v870_v32, %v869_v9 }
 0x20a   : > { %v1593_v1 = vsel %vm1582_vm0, nan, %v1592_v42  ;;  %v2319_v3 = vsel %vm2317_vm4, %v2318_v48, %v2316_v7  ;;  %v2308_v13 = vadd.s32 %v4375_v18, %v4380_v57  ;;  %v4444_v6 = vsel %vm851_vm11, %v835_v38, %v838_v16  ;;  %v455_v48 = vpop.permute.xlu2 %454 }
 0x20b   : > { %2995 = vst [vmem:[%s3870_s25 + $0x30] sm:$0xff] %v1593_v1  ;;  %v2320_v17 = vclz %v2319_v3  ;;  %v856_v33 = vsel %vm854_vm15, %v844_v5, 2102212464  ;;  %v872_v50 = vmul.u32 %v870_v32, %v868_v14  ;;  %v876_v8 = vshll.u32 %v873_v11, 16 }
 0x20c   : > { %v470_v63 = vsel %vm394_vm3, %v435_v59, %v3591_v60  ;;  %v875_v46 = vmul.u32 %v871_v56, %v869_v9  ;;  %v877_v20 = vshrl.u32 %v873_v11, 16  ;;  %v895_v22 = vmul.u32 %v893_v26, %v868_v14 }
 0x20d   : > { %v3124_v21 = vadd.s32 4294967294, %v2320_v17  ;;  %v896_v27 = vmul.u32 %v892_v28, %v869_v9  ;;  %v878_v18 = vshll.u32 %v874_v53, 16  ;;  %vm880_vm5 = vc.u32 %v872_v50, %v876_v8 }
 0x20e   : > { %v882_v57 = vadd.s32 %v876_v8, %v872_v50  ;;  %v881_v2 = vsel %vm880_vm5, 1, %v3277_v29  ;;  %v894_v43 = vmul.u32 %v892_v28, %v868_v14  ;;  %v898_v5 = vshll.u32 %v895_v22, 16 }
 0x20f   : > { %vm3125_vm14 = vcmp.lt.s32.totalorder %v3124_v21, 0  ;;  %vm2216_vm6 = vcmp.lt.s32.totalorder %v4233_v62, 0  ;;  %v883_v42 = vadd.s32 %v881_v2, %v875_v46  ;;  %v897_v41 = vmul.u32 %v893_v26, %v869_v9 }
 0x210   : > { %v2323_v16 = vsel %vm3125_vm14, 0, %v3124_v21  ;;  %vm884_vm7 = vc.u32 %v882_v57, %v878_v18  ;;  %v900_v1 = vshll.u32 %v896_v27, 16  ;;  %vm902_vm2 = vc.u32 %v894_v43, %v898_v5 }
 0x211   : > { %v2324_v61 = vsub.s32 32, %v2323_v16  ;;  %v2328_v35 = vsub.s32 4294967266, %v2323_v16  ;;  %v2325_v60 = vshll.u32 %v2316_v7, %v2323_v16  ;;  %v885_v3 = vsel %vm884_vm7, 1, %v3277_v29 }
 0x212   : > { %v903_v38 = vsel %vm902_vm2, 1, %v3277_v29  ;;  %v887_v59 = vadd.s32 %v885_v3, %v883_v42  ;;  %v904_v14 = vadd.s32 %v898_v5, %v894_v43  ;;  %v486_v17 = vmul.f32 %v470_v63, %v3549_v34 }
 0x213   : > { %v2326_v32 = vshrl.u32 %v2308_v13, %v2324_v61  ;;  %v2329_v56 = vadd.s32 127, %v2328_v35  ;;  %v905_v28 = vadd.s32 %v903_v38, %v897_v41  ;;  %v857_v7 = vsel %vm853_vm13, %v4399_v24, %v856_v33 }
 0x214   : > { %v475_v9 = vsel %vm394_vm3, %v455_v48, %v3597_v0  ;;  %v2338_v26 = vsub.s32 4, %v4406_v45  ;;  %v888_v13 = vadd.s32 %v887_v59, %v877_v20  ;;  %vm906_vm15 = vc.u32 %v904_v14, %v900_v1 }
 0x215   : > { %v2327_v11 = vor.u32 %v2326_v32, %v2325_v60  ;;  %v2330_v21 = vshll.u32 %v2329_v56, 23  ;;  %v4464_v50 = vadd.f32 %v486_v17, %v3560_v39  ;;  %v879_v46 = vshrl.u32 %v874_v53, 16 }
 0x216   : > { %v907_v63 = vsel %vm906_vm15, 1, %v3277_v29  ;;  %v491_v18 = vmul.f32 %v475_v9, %v3549_v34  ;;  %v899_v16 = vshrl.u32 %v895_v22, 16  ;;  %v2339_v53 = vsel %vm2216_vm6, %v2338_v26, %v4406_v45 }
 0x217   : > { %v2331_v8 = vor.u32 4788187, %v2330_v21  ;;  %v2334_v57 = vcvt.s32.f32 %v2327_v11  ;;  %v909_v24 = vadd.s32 %v907_v63, %v905_v28  ;;  %v1904_v33 = vand.u32 2147483647, %v4464_v50 }
 0x218   : > { %v889_v0 = vadd.s32 %v888_v13, %v879_v46  ;;  %v1907_v43 = vand.u32 2139095040, %v4464_v50  ;;  %v4471_v20 = vadd.f32 %v491_v18, %v3560_v39  ;;  %v901_v5 = vshrl.u32 %v896_v27, 16 }
 0x219   : > { %v2332_v2 = vand.u32 2147483647, %v2331_v8  ;;  %v910_v61 = vadd.s32 %v909_v24, %v899_v16  ;;  %v908_v42 = vadd.s32 %v904_v14, %v900_v1  ;;  %v1911_v22 = vand.u32 8388607, %v1904_v33 }
 0x21a   : > { %v1908_v41 = vshrl.u32 %v1907_v43, 23  ;;  %vm2215_vm8 = vcmp.le.f32.partialorder %v2214_v52, 0.7853982  ;;  %v858_v60 = vsel %vm852_vm10, %v4444_v6, %v857_v7  ;;  %v2682_v32 = vand.u32 2139095040, %v4471_v20 }
 0x21b   : > { %v2335_v35 = vmul.f32 %v2334_v57, %v2332_v2  ;;  %v911_v48 = vadd.s32 %v910_v61, %v901_v5  ;;  %v2341_v45 = vsel %vm2215_vm8, 0, %v2339_v53  ;;  %vm914_vm11 = vc.u32 %v889_v0, %v908_v42 }
 0x21c   : > { %v3117_v27 = vadd.s32 4294967169, %v1908_v41  ;;  %v1912_v1 = vor.u32 8388608, %v1911_v22  ;;  %v912_v59 = vmul.u32 %v4426_v55, %v858_v60  ;;  %v2358_v28 = vadd.s32 3, %v2341_v45 }
 0x21d   : > { %v2336_v56 = vxor.u32 2147483648, %v2335_v35  ;;  %v915_v3 = vadd.s32 1, %v911_v48  ;;  %v2683_v6 = vshrl.u32 %v2682_v32, 23  ;;  %v4492_v16 = vadd.s32 %v908_v42, %v889_v0 }
 0x21e   : > { %v1914_v14 = vadd.s32 1, %v3117_v27  ;;  %v4488_v7 = vshll.u32 %v1912_v1, 8  ;;  %v4490_v8 = vand.u32 3, %v2358_v28  ;;  %v2679_v43 = vand.u32 2147483647, %v4471_v20 }
 0x21f   : > { %v2337_v38 = vsel %vm2216_vm6, %v2336_v56, %v2335_v35  ;;  %v916_v23 = vsel %vm914_vm11, %v915_v3, %v911_v48  ;;  %v3132_v63 = vadd.s32 4294967169, %v2683_v6  ;;  %vm821_vm13 = vcmp.lt.s32.totalorder %v4244_v44, 0 }
 0x220   : > { %v2340_v52 = vsel %vm2215_vm8, %v4233_v62, %v2337_v38  ;;  %v917_v11 = vadd.s32 %v916_v23, %v912_v59  ;;  %vm1915_vm12 = vcmp.gt.s32.totalorder %v1914_v14, 0  ;;  %v4495_v2 = vand.u32 65535, %v4488_v7 }
 0x221   : > { %v2342_v17 = vmul.f32 %v2340_v52, %v2340_v52  ;;  %v1916_v21 = vsel %vm1915_vm12, %v1914_v14, 0  ;;  %v4500_v35 = vshrl.u32 %v4488_v7, 16  ;;  %vm2364_vm9 = vcmp.eq.s32.totalorder %v4490_v8, 2 }
 0x222   : > { %v918_v13 = vadd.s32 536870912, %v917_v11  ;;  %v1918_v46 = vand.u32 31, %v1916_v21  ;;  %v4503_v41 = vshrl.u32 %v1916_v21, 5  ;;  %v4507_v22 = vadd.s32 1, %v3132_v63 }
 0x223   : > { %v2343_v9 = vmul.f32 -0.001358992, %v2342_v17  ;;  %v2350_v26 = vmul.f32 -0.00019511016, %v2342_v17  ;;  %vm2361_vm10 = vcmp.eq.s32.totalorder %v4490_v8, 0  ;;  %vm2360_vm0 = vcmp.lt.s32.totalorder %v4490_v8, 2 }
 0x224   : > { %v919_v57 = vshrl.u32 %v918_v13, 30  ;;  %v1919_v24 = vsub.s32 32, %v1918_v46  ;;  %v1921_v56 = vshll.u32 %v3279_v19, %v1918_v46  ;;  %v1924_v27 = vshll.u32 %v3280_v25, %v1918_v46 }
 0x225   : > { %v2344_v55 = vadd.f32 0.041655596, %v2343_v9  ;;  %v2351_v18 = vadd.f32 0.008332121, %v2350_v26  ;;  %v1927_v3 = vshll.u32 %v5453_v58, %v1918_v46  ;;  %vm2357_vm14 = vweird.f32 %v4233_v62 }
 0x226   : > { %v920_v61 = vshll.u32 %v919_v57, 30  ;;  %v1922_v0 = vshrl.u32 %v3280_v25, %v1919_v24  ;;  %v1925_v42 = vshrl.u32 %v5453_v58, %v1919_v24  ;;  %v943_v45 = vsub.s32 4, %v919_v57 }
 0x227   : > { %v2345_v53 = vmul.f32 %v2344_v55, %v2342_v17  ;;  %v2352_v5 = vmul.f32 %v2351_v18, %v2342_v17  ;;  %v1928_v1 = vshrl.u32 %v3282_v36, %v1919_v24  ;;  %v1930_v6 = vshll.u32 %v3282_v36, %v1918_v46 }
 0x228   : > { %v4509_v32 = vsub.s32 %v917_v11, %v920_v61  ;;  %v1923_v28 = vor.u32 %v1922_v0, %v1921_v56  ;;  %v1926_v23 = vor.u32 %v1925_v42, %v1924_v27  ;;  %v1931_v11 = vshrl.u32 %v5454_v47, %v1919_v24 }
 0x229   : > { %v2346_v60 = vadd.f32 -0.4999988, %v2345_v53  ;;  %v2353_v48 = vadd.f32 -0.16666654, %v2352_v5  ;;  %vm4526_vm5 = vcmp.le.f32.partialorder %v819_v37, 0.7853982  ;;  %v1929_v55 = vor.u32 %v1928_v1, %v1927_v3 }
 0x22a   : > { %vm922_vm4 = vcmp.lt.s32.totalorder %v4509_v32, 0  ;;  %v923_v14 = vsub.s32 0, %v4509_v32  ;;  %v1932_v18 = vor.u32 %v1931_v11, %v1930_v6  ;;  %v1933_v53 = vshll.u32 %v5454_v47, %v1918_v46 }
 0x22b   : > { %v2347_v38 = vmul.f32 %v2346_v60, %v2342_v17  ;;  %v2354_v59 = vmul.f32 %v2353_v48, %v2342_v17  ;;  %v1934_v17 = vshrl.u32 %v5455_v51, %v1919_v24  ;;  %v1920_v0 = vshrl.u32 %v3279_v19, %v1919_v24 }
 0x22c   : > { %v924_v26 = vsel %vm922_vm4, %v923_v14, %v4509_v32  ;;  %vm1936_vm6 = vcmp.lt.s32.totalorder %v4503_v41, 1  ;;  %v944_v60 = vsel %vm821_vm13, %v943_v45, %v919_v57  ;;  %vm1937_vm7 = vcmp.lt.s32.totalorder %v4503_v41, 2 }
 0x22d   : > { %v2348_v21 = vadd.f32 1.0, %v2347_v38  ;;  %v2355_v9 = vadd.f32 1.0, %v2354_v59  ;;  %v925_v63 = vclz %v924_v26  ;;  %v1935_v48 = vor.u32 %v1934_v17, %v1933_v53 }
 0x22e   : > { %vm1938_vm2 = vcmp.lt.s32.totalorder %v4503_v41, 3  ;;  %vm1939_vm15 = vcmp.lt.s32.totalorder %v4503_v41, 4  ;;  %v1944_v46 = vsel %vm1936_vm6, %v1923_v28, %v1926_v23  ;;  %v1940_v27 = vsel %vm1936_vm6, %v1920_v0, %v1923_v28 }
 0x22f   : > { %v2356_v5 = vmul.f32 %v2355_v9, %v2340_v52  ;;  %v2365_v61 = vxor.u32 2147483648, %v2348_v21  ;;  %v3097_v42 = vadd.s32 4294967294, %v925_v63  ;;  %v1941_v52 = vsel %vm1939_vm15, %v1929_v55, 2102212464 }
 0x230   : > { %v1945_v57 = vsel %vm1939_vm15, %v1932_v18, 920167782  ;;  %v1942_v14 = vsel %vm1938_vm2, %v1926_v23, %v1941_v52  ;;  %v1948_v28 = vsel %vm1936_vm6, %v1926_v23, %v1929_v55  ;;  %v1949_v26 = vsel %vm1939_vm15, %v1935_v48, 1326507024 }
 0x231   : > { %v2362_v37 = vxor.u32 2147483648, %v2356_v5  ;;  %v2366_v56 = vsel %vm2364_vm9, %v2365_v61, %v2356_v5  ;;  %vm3098_vm8 = vcmp.lt.s32.totalorder %v3097_v42, 0  ;;  %v1946_v3 = vsel %vm1938_vm2, %v1929_v55, %v1945_v57 }
 0x232   : > { %v928_v45 = vsel %vm3098_vm8, 0, %v3097_v42  ;;  %v946_v62 = vsel %vm4526_vm5, 0, %v944_v60  ;;  %v1950_v63 = vsel %vm1938_vm2, %v1932_v18, %v1949_v26  ;;  %vm2690_vm11 = vcmp.gt.s32.totalorder %v4507_v22, 0 }
 0x233   : > { %v2363_v24 = vsel %vm2361_vm10, %v2348_v21, %v2362_v37  ;;  %v929_v38 = vsub.s32 32, %v928_v45  ;;  %v933_v59 = vsub.s32 4294967266, %v928_v45  ;;  %v930_v11 = vshll.u32 %v4509_v32, %v928_v45 }
 0x234   : > { %v2367_v1 = vsel %vm2360_vm0, %v2363_v24, %v2366_v56  ;;  %v1947_v21 = vsel %vm1937_vm7, %v1944_v46, %v1946_v3  ;;  %v4571_v32 = vsel %vm1937_vm7, %v1940_v27, %v1942_v14  ;;  %v4580_v48 = vadd.s32 3, %v946_v62 }
 0x235   : > { %v2368_v6 = vsel %vm2357_vm14, nan, %v2367_v1  ;;  %v931_v8 = vshrl.u32 %v4492_v16, %v929_v38  ;;  %v934_v9 = vadd.s32 127, %v933_v59  ;;  %v1977_v17 = vand.u32 65535, %v1947_v21 }
 0x236   : > { %3000 = vst [vmem:[%s3870_s25 + $0x58] sm:$0xff] %v2368_v6  ;;  %v1978_v53 = vshrl.u32 %v1947_v21, 16  ;;  %v1951_v16 = vsel %vm1937_vm7, %v1948_v28, %v1950_v63  ;;  %v1997_v18 = vmul.u32 %v4488_v7, %v4571_v32  ;;  %v4586_v37 = vand.u32 8388607, %v2679_v43 }
 0x237   : > { %v932_v23 = vor.u32 %v931_v8, %v930_v11  ;;  %v935_v55 = vshll.u32 %v934_v9, 23  ;;  %v1955_v5 = vand.u32 65535, %v1951_v16  ;;  %v1956_v61 = vshrl.u32 %v1951_v16, 16 }
 0x238   : > { %v1980_v0 = vmul.u32 %v1978_v53, %v4495_v2  ;;  %v1981_v42 = vmul.u32 %v1977_v17, %v4500_v35  ;;  %v1979_v52 = vmul.u32 %v1977_v17, %v4495_v2  ;;  %v2691_v46 = vsel %vm2690_vm11, %v4507_v22, 0 }
 0x239   : > { %v936_v60 = vor.u32 4788187, %v935_v55  ;;  %v1958_v41 = vmul.u32 %v1956_v61, %v4495_v2  ;;  %v1959_v56 = vmul.u32 %v1955_v5, %v4500_v35  ;;  %v939_v24 = vcvt.s32.f32 %v932_v23 }
 0x23a   : > { %v1982_v45 = vmul.u32 %v1978_v53, %v4500_v35  ;;  %v1983_v27 = vshll.u32 %v1980_v0, 16  ;;  %v1957_v3 = vmul.u32 %v1955_v5, %v4495_v2  ;;  %v1960_v1 = vmul.u32 %v1956_v61, %v4500_v35 }
 0x23b   : > { %v937_v57 = vand.u32 2147483647, %v936_v60  ;;  %v1961_v38 = vshll.u32 %v1958_v41, 16  ;;  %v1985_v59 = vshll.u32 %v1981_v42, 16  ;;  %v1963_v6 = vshll.u32 %v1959_v56, 16 }
 0x23c   : > { %vm1987_vm12 = vc.u32 %v1979_v52, %v1983_v27  ;;  %v1989_v11 = vadd.s32 %v1983_v27, %v1979_v52  ;;  %v2693_v22 = vand.u32 31, %v2691_v46  ;;  %v1984_v2 = vshrl.u32 %v1980_v0, 16 }
 0x23d   : > { %v940_v14 = vmul.f32 %v939_v24, %v937_v57  ;;  %vm1965_vm9 = vc.u32 %v1957_v3, %v1961_v38  ;;  %v1967_v21 = vadd.s32 %v1961_v38, %v1957_v3  ;;  %v1988_v28 = vsel %vm1987_vm12, 1, %v3277_v29 }
 0x23e   : > { %v1966_v9 = vsel %vm1965_vm9, 1, %v3277_v29  ;;  %v1990_v26 = vadd.s32 %v1988_v28, %v1982_v45  ;;  %vm1991_vm10 = vc.u32 %v1989_v11, %v1985_v59  ;;  %v4601_v23 = vsub.s32 32, %v2693_v22 }
 0x23f   : > { %v941_v8 = vxor.u32 2147483648, %v940_v14  ;;  %v1968_v17 = vadd.s32 %v1966_v9, %v1960_v1  ;;  %vm1969_vm0 = vc.u32 %v1967_v21, %v1963_v6  ;;  %v1992_v35 = vsel %vm1991_vm10, 1, %v3277_v29 }
 0x240   : > { %v1970_v63 = vsel %vm1969_vm0, 1, %v3277_v29  ;;  %v1994_v53 = vadd.s32 %v1992_v35, %v1990_v26  ;;  %v1962_v16 = vshrl.u32 %v1958_v41, 16  ;;  %v4606_v61 = vshrl.u32 %v2691_v46, 5 }
 0x241   : > { %v942_v62 = vsel %vm821_vm13, %v941_v8, %v940_v14  ;;  %v1972_v5 = vadd.s32 %v1970_v63, %v1968_v17  ;;  %v1964_v0 = vshrl.u32 %v1959_v56, 16  ;;  %v1986_v52 = vshrl.u32 %v1981_v42, 16 }
 0x242   : > { %v945_v55 = vsel %vm4526_vm5, %v4244_v44, %v942_v62  ;;  %v1995_v57 = vadd.s32 %v1994_v53, %v1984_v2  ;;  %v4608_v45 = vadd.s32 %v1989_v11, %v1985_v59  ;;  %v2696_v27 = vshll.u32 %v3279_v19, %v2693_v22 }
 0x243   : > { %v947_v60 = vmul.f32 %v945_v55, %v945_v55  ;;  %v1973_v24 = vadd.s32 %v1972_v5, %v1962_v16  ;;  %v2699_v3 = vshll.u32 %v3280_v25, %v2693_v22  ;;  %v2697_v13 = vshrl.u32 %v3280_v25, %v4601_v23 }
 0x244   : > { %v1996_v14 = vadd.s32 %v1995_v57, %v1986_v52  ;;  %v2700_v56 = vshrl.u32 %v5453_v58, %v4601_v23  ;;  %v2703_v42 = vshrl.u32 %v3282_v36, %v4601_v23  ;;  %v2705_v46 = vshll.u32 %v3282_v36, %v2693_v22 }
 0x245   : > { %v948_v1 = vmul.f32 -0.001358992, %v947_v60  ;;  %v955_v38 = vmul.f32 -0.00019511016, %v947_v60  ;;  %v4614_v41 = vadd.s32 %v1973_v24, %v1964_v0  ;;  %v2706_v21 = vshrl.u32 %v5454_v47, %v4601_v23 }
 0x246   : > { %v2000_v11 = vadd.s32 1, %v1996_v14  ;;  %v2702_v28 = vshll.u32 %v5453_v58, %v2693_v22  ;;  %v2708_v8 = vshll.u32 %v5454_v47, %v2693_v22  ;;  %v2709_v9 = vshrl.u32 %v5455_v51, %v4601_v23 }
 0x247   : > { %v949_v59 = vadd.f32 0.041655596, %v948_v1  ;;  %v956_v6 = vadd.f32 0.008332121, %v955_v38  ;;  %vm1999_vm13 = vc.u32 %v4614_v41, %v4608_v45  ;;  %v2707_v35 = vor.u32 %v2706_v21, %v2705_v46 }
 0x248   : > { %v2001_v2 = vsel %vm1999_vm13, %v2000_v11, %v1996_v14  ;;  %v4632_v63 = vor.u32 %v2697_v13, %v2696_v27  ;;  %v4634_v53 = vor.u32 %v2700_v56, %v2699_v3  ;;  %v4636_v16 = vor.u32 %v2703_v42, %v2702_v28 }
 0x249   : > { %v950_v26 = vmul.f32 %v949_v59, %v947_v60  ;;  %v957_v17 = vmul.f32 %v956_v6, %v947_v60  ;;  %v2002_v62 = vadd.s32 %v2001_v2, %v1997_v18  ;;  %v2710_v22 = vor.u32 %v2709_v9, %v2708_v8 }
 0x24a   : > { %v964_v52 = vand.u32 3, %v4580_v48  ;;  %v2687_v24 = vor.u32 8388608, %v4586_v37  ;;  %vm2714_vm4 = vcmp.lt.s32.totalorder %v4606_v61, 4  ;;  %vm2711_vm14 = vcmp.lt.s32.totalorder %v4606_v61, 1 }
 0x24b   : > { %v951_v5 = vadd.f32 -0.4999988, %v950_v26  ;;  %v958_v0 = vadd.f32 -0.16666654, %v957_v17  ;;  %v2003_v57 = vadd.s32 536870912, %v2002_v62  ;;  %vm2713_vm5 = vcmp.lt.s32.totalorder %v4606_v61, 3 }
 0x24c   : > { %v2720_v7 = vsel %vm2714_vm4, %v2707_v35, 920167782  ;;  %v2719_v48 = vsel %vm2711_vm14, %v4632_v63, %v4634_v53  ;;  %v2723_v18 = vsel %vm2711_vm14, %v4634_v53, %v4636_v16  ;;  %v2724_v3 = vsel %vm2714_vm4, %v2710_v22, 1326507024 }
 0x24d   : > { %v952_v1 = vmul.f32 %v951_v5, %v947_v60  ;;  %v959_v38 = vmul.f32 %v958_v0, %v947_v60  ;;  %v4644_v32 = vshrl.u32 %v2003_v57, 30  ;;  %v2721_v27 = vsel %vm2713_vm5, %v4636_v16, %v2720_v7 }
 0x24e   : > { %vm2712_vm6 = vcmp.lt.s32.totalorder %v4606_v61, 2  ;;  %v2725_v13 = vsel %vm2713_vm5, %v2707_v35, %v2724_v3  ;;  %v4664_v56 = vshll.u32 %v2687_v24, 8  ;;  %vm962_vm7 = vweird.f32 %v4244_v44 }
 0x24f   : > { %v953_v37 = vadd.f32 1.0, %v952_v1  ;;  %v960_v60 = vadd.f32 1.0, %v959_v38  ;;  %v2005_v14 = vshll.u32 %v4644_v32, 30  ;;  %v2726_v59 = vsel %vm2712_vm6, %v2723_v18, %v2725_v13 }
 0x250   : > { %vm965_vm2 = vcmp.lt.s32.totalorder %v964_v52, 2  ;;  %vm966_vm15 = vcmp.eq.s32.totalorder %v964_v52, 0  ;;  %v2722_v11 = vsel %vm2712_vm6, %v2719_v48, %v2721_v27  ;;  %vm969_vm8 = vcmp.eq.s32.totalorder %v964_v52, 2 }
 0x251   : > { %v961_v42 = vmul.f32 %v960_v60, %v945_v55  ;;  %v970_v46 = vxor.u32 2147483648, %v953_v37  ;;  %v2006_v6 = vsub.s32 %v2002_v62, %v2005_v14  ;;  %v2729_v28 = vshrl.u32 %v4664_v56, 16 }
 0x252   : > { %v2730_v8 = vand.u32 65535, %v2726_v59  ;;  %v2728_v9 = vand.u32 65535, %v4664_v56  ;;  %v2731_v26 = vshrl.u32 %v2726_v59, 16  ;;  %v2752_v5 = vand.u32 65535, %v2722_v11 }
 0x253   : > { %v967_v21 = vxor.u32 2147483648, %v961_v42  ;;  %vm2007_vm11 = vcmp.lt.s32.totalorder %v2006_v6, 0  ;;  %v2008_v55 = vsub.s32 0, %v2006_v6  ;;  %v971_v2 = vsel %vm969_vm8, %v970_v46, %v961_v42 }
 0x254   : > { %v2734_v35 = vmul.u32 %v2730_v8, %v2729_v28  ;;  %v2733_v22 = vmul.u32 %v2731_v26, %v2728_v9  ;;  %v2753_v57 = vshrl.u32 %v2722_v11, 16  ;;  %v390_v38 = vsel %vm311_vm1, %v4157_v12, %v3495_v49 }
 0x255   : > { %v968_v17 = vsel %vm966_vm15, %v953_v37, %v967_v21  ;;  %v2009_v0 = vsel %vm2007_vm11, %v2008_v55, %v2006_v6  ;;  %v2695_v7 = vshrl.u32 %v3279_v19, %v4601_v23  ;;  %v2732_v48 = vmul.u32 %v2730_v8, %v2728_v9  ;;  %v415_v21 = vpop.permute.xlu1 %414 }
 0x256   : > { %v972_v62 = vsel %vm965_vm2, %v968_v17, %v971_v2  ;;  %v2010_v1 = vclz %v2009_v0  ;;  %v2736_v18 = vshll.u32 %v2733_v22, 16  ;;  %v1998_v52 = vadd.s32 %v4608_v45, %v4614_v41 }
 0x257   : > { %v973_v24 = vsel %vm962_vm7, nan, %v972_v62  ;;  %v2735_v60 = vmul.u32 %v2731_v26, %v2729_v28  ;;  %v2738_v27 = vshll.u32 %v2734_v35, 16  ;;  %v2755_v3 = vmul.u32 %v2753_v57, %v2728_v9 }
 0x258   : > { %2991 = vst [vmem:[%s3870_s25 + $0x10] sm:$0xff] %v973_v24  ;;  %v3118_v37 = vadd.s32 4294967294, %v2010_v1  ;;  %vm2740_vm12 = vc.u32 %v2732_v48, %v2736_v18  ;;  %v2742_v44 = vadd.s32 %v2736_v18, %v2732_v48  ;;  %v2756_v14 = vmul.u32 %v2752_v5, %v2729_v28 }
 0x259   : > { %v2715_v49 = vsel %vm2711_vm14, %v2695_v7, %v4632_v63  ;;  %v2737_v12 = vshrl.u32 %v2733_v22, 16  ;;  %v2741_v23 = vsel %vm2740_vm12, 1, %v3277_v29  ;;  %v2758_v46 = vshll.u32 %v2755_v3, 16 }
 0x25a   : > { %vm3119_vm9 = vcmp.lt.s32.totalorder %v3118_v37, 0  ;;  %v2743_v42 = vadd.s32 %v2741_v23, %v2735_v60  ;;  %vm2744_vm10 = vc.u32 %v2742_v44, %v2738_v27  ;;  %v2754_v11 = vmul.u32 %v2752_v5, %v2728_v9  ;;  %v447_v5 = vpop.permute.xlu0 %446 }
 0x25b   : > { %v2013_v13 = vsel %vm3119_vm9, 0, %v3118_v37  ;;  %v2745_v59 = vsel %vm2744_vm10, 1, %v3277_v29  ;;  %v2757_v26 = vmul.u32 %v2753_v57, %v2729_v28  ;;  %v2760_v17 = vshll.u32 %v2756_v14, 16 }
 0x25c   : > { %v2014_v45 = vsub.s32 32, %v2013_v13  ;;  %v2018_v41 = vsub.s32 4294967266, %v2013_v13  ;;  %v2015_v8 = vshll.u32 %v2006_v6, %v2013_v13  ;;  %v2747_v55 = vadd.s32 %v2745_v59, %v2743_v42 }
 0x25d   : > { %vm2762_vm0 = vc.u32 %v2754_v11, %v2758_v46  ;;  %v2764_v63 = vadd.s32 %v2758_v46, %v2754_v11  ;;  %v2716_v0 = vsel %vm2714_vm4, %v4636_v16, 2102212464  ;;  %v465_v9 = vsel %vm394_vm3, %v415_v21, %v3524_v4 }
 0x25e   : > { %v2016_v2 = vshrl.u32 %v1998_v52, %v2014_v45  ;;  %v2019_v62 = vadd.s32 127, %v2018_v41  ;;  %v2748_v22 = vadd.s32 %v2747_v55, %v2737_v12  ;;  %v2763_v24 = vsel %vm2762_vm0, 1, %v3277_v29 }
 0x25f   : > { %v2765_v28 = vadd.s32 %v2763_v24, %v2757_v26  ;;  %vm2766_vm13 = vc.u32 %v2764_v63, %v2760_v17  ;;  %v2028_v57 = vsub.s32 4, %v4644_v32  ;;  %v2739_v7 = vshrl.u32 %v2734_v35, 16 }
 0x260   : > { %v2017_v6 = vor.u32 %v2016_v2, %v2015_v8  ;;  %v2020_v1 = vshll.u32 %v2019_v62, 23  ;;  %v2767_v48 = vsel %vm2766_vm13, 1, %v3277_v29  ;;  %v481_v18 = vmul.f32 %v465_v9, %v3549_v34 }
 0x261   : > { %v2759_v52 = vshrl.u32 %v2755_v3, 16  ;;  %v2769_v37 = vadd.s32 %v2767_v48, %v2765_v28  ;;  %v473_v60 = vsel %vm394_vm3, %v447_v5, %v390_v38  ;;  %v2717_v4 = vsel %vm2713_vm5, %v4634_v53, %v2716_v0 }
 0x262   : > { %v2021_v16 = vor.u32 4788187, %v2020_v1  ;;  %v2749_v27 = vadd.s32 %v2748_v22, %v2739_v7  ;;  %v4706_v44 = vadd.f32 %v481_v18, %v3560_v39  ;;  %v489_v35 = vmul.f32 %v473_v60, %v3549_v34 }
 0x263   : > { %v2024_v23 = vcvt.s32.f32 %v2017_v6  ;;  %v2761_v13 = vshrl.u32 %v2756_v14, 16  ;;  %v2770_v42 = vadd.s32 %v2769_v37, %v2759_v52  ;;  %vm1906_vm4 = vcmp.lt.s32.totalorder %v4464_v50, 0 }
 0x264   : > { %v2022_v12 = vand.u32 2147483647, %v2021_v16  ;;  %v2768_v3 = vadd.s32 %v2764_v63, %v2760_v17  ;;  %v1129_v46 = vand.u32 2147483647, %v4706_v44  ;;  %v1132_v38 = vand.u32 2139095040, %v4706_v44 }
 0x265   : > { %v2029_v53 = vsel %vm1906_vm4, %v2028_v57, %v4644_v32  ;;  %v2718_v41 = vsel %vm2712_vm6, %v2715_v49, %v2717_v4  ;;  %v2771_v59 = vadd.s32 %v2770_v42, %v2761_v13  ;;  %v4720_v21 = vadd.f32 %v489_v35, %v3560_v39 }
 0x266   : > { %v2025_v45 = vmul.f32 %v2024_v23, %v2022_v12  ;;  %vm2774_vm14 = vc.u32 %v2749_v27, %v2768_v3  ;;  %v1133_v11 = vshrl.u32 %v1132_v38, 23  ;;  %v1136_v14 = vand.u32 8388607, %v1129_v46 }
 0x267   : > { %vm1905_vm5 = vcmp.le.f32.partialorder %v1904_v33, 0.7853982  ;;  %v2775_v55 = vadd.s32 1, %v2771_v59  ;;  %v2772_v32 = vmul.u32 %v4664_v56, %v2718_v41  ;;  %v2372_v22 = vand.u32 2139095040, %v4720_v21 }
 0x268   : > { %v2026_v8 = vxor.u32 2147483648, %v2025_v45  ;;  %v2031_v26 = vsel %vm1905_vm5, 0, %v2029_v53  ;;  %v3102_v17 = vadd.s32 4294967169, %v1133_v11  ;;  %v1137_v2 = vor.u32 8388608, %v1136_v14 }
 0x269   : > { %v2776_v49 = vsel %vm2774_vm14, %v2775_v55, %v2771_v59  ;;  %v2048_v9 = vadd.s32 3, %v2031_v26  ;;  %v2373_v7 = vshrl.u32 %v2372_v22, 23  ;;  %vm2681_vm7 = vcmp.lt.s32.totalorder %v4471_v20, 0 }
 0x26a   : > { %v2027_v61 = vsel %vm1906_vm4, %v2026_v8, %v2025_v45  ;;  %v2777_v63 = vadd.s32 %v2776_v49, %v2772_v32  ;;  %v1139_v0 = vadd.s32 1, %v3102_v17  ;;  %v4729_v57 = vshll.u32 %v1137_v2, 8 }
 0x26b   : > { %v2030_v62 = vsel %vm1905_vm5, %v4464_v50, %v2027_v61  ;;  %v4731_v16 = vand.u32 3, %v2048_v9  ;;  %v2773_v35 = vadd.s32 %v2768_v3, %v2749_v27  ;;  %v2369_v12 = vand.u32 2147483647, %v4720_v21 }
 0x26c   : > { %v2032_v24 = vmul.f32 %v2030_v62, %v2030_v62  ;;  %v2778_v33 = vadd.s32 536870912, %v2777_v63  ;;  %vm1140_vm6 = vcmp.gt.s32.totalorder %v1139_v0, 0  ;;  %v4738_v13 = vand.u32 65535, %v4729_v57 }
 0x26d   : > { %v1141_v1 = vsel %vm1140_vm6, %v1139_v0, 0  ;;  %v4741_v42 = vshrl.u32 %v4729_v57, 16  ;;  %v4743_v38 = vadd.s32 4294967169, %v2373_v7  ;;  %vm2054_vm2 = vcmp.eq.s32.totalorder %v4731_v16, 2 }
 0x26e   : > { %v2033_v5 = vmul.f32 -0.001358992, %v2032_v24  ;;  %v2040_v6 = vmul.f32 -0.00019511016, %v2032_v24  ;;  %v2779_v56 = vshrl.u32 %v2778_v33, 30  ;;  %v1143_v28 = vand.u32 31, %v1141_v1 }
 0x26f   : > { %v4746_v59 = vshrl.u32 %v1141_v1, 5  ;;  %vm2051_vm15 = vcmp.eq.s32.totalorder %v4731_v16, 0  ;;  %vm2050_vm11 = vcmp.lt.s32.totalorder %v4731_v16, 2  ;;  %vm2047_vm12 = vweird.f32 %v4464_v50 }
 0x270   : > { %v2034_v48 = vadd.f32 0.041655596, %v2033_v5  ;;  %v2041_v18 = vadd.f32 0.008332121, %v2040_v6  ;;  %v2780_v52 = vshll.u32 %v2779_v56, 30  ;;  %v1144_v37 = vsub.s32 32, %v1143_v28 }
 0x271   : > { %v2803_v41 = vsub.s32 4, %v2779_v56  ;;  %v1146_v55 = vshll.u32 %v3279_v19, %v1143_v28  ;;  %v1149_v17 = vshll.u32 %v3280_v25, %v1143_v28  ;;  %v1152_v61 = vshll.u32 %v5453_v58, %v1143_v28 }
 0x272   : > { %v2035_v60 = vmul.f32 %v2034_v48, %v2032_v24  ;;  %v2042_v4 = vmul.f32 %v2041_v18, %v2032_v24  ;;  %v4735_v23 = vsub.s32 %v2777_v63, %v2780_v52  ;;  %v1147_v3 = vshrl.u32 %v3280_v25, %v1144_v37 }
 0x273   : > { %v1150_v11 = vshrl.u32 %v5453_v58, %v1144_v37  ;;  %v1153_v26 = vshrl.u32 %v3282_v36, %v1144_v37  ;;  %v1156_v49 = vshrl.u32 %v5454_v47, %v1144_v37  ;;  %v4763_v22 = vsel %vm2681_vm7, %v2803_v41, %v2779_v56 }
 0x274   : > { %v2036_v45 = vadd.f32 -0.4999988, %v2035_v60  ;;  %v2043_v53 = vadd.f32 -0.16666654, %v2042_v4  ;;  %vm2782_vm8 = vcmp.lt.s32.totalorder %v4735_v23, 0  ;;  %v2783_v27 = vsub.s32 0, %v4735_v23 }
 0x275   : > { %v1148_v9 = vor.u32 %v1147_v3, %v1146_v55  ;;  %v1151_v33 = vor.u32 %v1150_v11, %v1149_v17  ;;  %v1155_v5 = vshll.u32 %v3282_v36, %v1143_v28  ;;  %v1154_v48 = vor.u32 %v1153_v26, %v1152_v61 }
 0x276   : > { %v2037_v14 = vmul.f32 %v2036_v45, %v2032_v24  ;;  %v2044_v8 = vmul.f32 %v2043_v53, %v2032_v24  ;;  %v2784_v32 = vsel %vm2782_vm8, %v2783_v27, %v4735_v23  ;;  %v1145_v24 = vshrl.u32 %v3279_v19, %v1144_v37 }
 0x277   : > { %v2785_v0 = vclz %v2784_v32  ;;  %v1157_v18 = vor.u32 %v1156_v49, %v1155_v5  ;;  %v1158_v52 = vshll.u32 %v5454_v47, %v1143_v28  ;;  %v1159_v60 = vshrl.u32 %v5455_v51, %v1144_v37 }
 0x278   : > { %v2038_v2 = vadd.f32 1.0, %v2037_v14  ;;  %v2045_v63 = vadd.f32 1.0, %v2044_v8  ;;  %vm1161_vm9 = vcmp.lt.s32.totalorder %v4746_v59, 1  ;;  %vm4772_vm10 = vcmp.le.f32.partialorder %v2679_v43, 0.7853982 }
 0x279   : > { %v3133_v7 = vadd.s32 4294967294, %v2785_v0  ;;  %vm1162_vm13 = vcmp.lt.s32.totalorder %v4746_v59, 2  ;;  %vm1163_vm4 = vcmp.lt.s32.totalorder %v4746_v59, 3  ;;  %v1160_v37 = vor.u32 %v1159_v60, %v1158_v52 }
 0x27a   : > { %v2046_v6 = vmul.f32 %v2045_v63, %v2030_v62  ;;  %v2055_v1 = vxor.u32 2147483648, %v2038_v2  ;;  %vm1164_vm14 = vcmp.lt.s32.totalorder %v4746_v59, 4  ;;  %v1165_v3 = vsel %vm1161_vm9, %v1145_v24, %v1148_v9 }
 0x27b   : > { %vm3134_vm0 = vcmp.lt.s32.totalorder %v3133_v7, 0  ;;  %v1166_v41 = vsel %vm1164_vm14, %v1154_v48, 2102212464  ;;  %v1169_v11 = vsel %vm1161_vm9, %v1148_v9, %v1151_v33  ;;  %v1170_v14 = vsel %vm1164_vm14, %v1157_v18, 920167782 }
 0x27c   : > { %v2052_v4 = vxor.u32 2147483648, %v2046_v6  ;;  %v2056_v62 = vsel %vm2054_vm2, %v2055_v1, %v2046_v6  ;;  %v2788_v28 = vsel %vm3134_vm0, 0, %v3133_v7  ;;  %v1167_v16 = vsel %vm1163_vm4, %v1151_v33, %v1166_v41 }
 0x27d   : > { %v2789_v43 = vsub.s32 32, %v2788_v28  ;;  %v2793_v53 = vsub.s32 4294967266, %v2788_v28  ;;  %v2790_v55 = vshll.u32 %v4735_v23, %v2788_v28  ;;  %v1171_v17 = vsel %vm1163_vm4, %v1154_v48, %v1170_v14 }
 0x27e   : > { %v2053_v45 = vsel %vm2051_vm15, %v2038_v2, %v2052_v4  ;;  %v1173_v61 = vsel %vm1161_vm9, %v1151_v33, %v1154_v48  ;;  %v1174_v49 = vsel %vm1164_vm14, %v1160_v37, 1326507024  ;;  %v1172_v23 = vsel %vm1162_vm13, %v1169_v11, %v1171_v17 }
 0x27f   : > { %v2057_v27 = vsel %vm2050_vm11, %v2053_v45, %v2056_v62  ;;  %v2791_v26 = vshrl.u32 %v2773_v35, %v2789_v43  ;;  %v2794_v32 = vadd.s32 127, %v2793_v53  ;;  %v1175_v35 = vsel %vm1163_vm4, %v1157_v18, %v1174_v49 }
 0x280   : > { %v2058_v8 = vsel %vm2047_vm12, nan, %v2057_v27  ;;  %v1176_v63 = vsel %vm1162_vm13, %v1173_v61, %v1175_v35  ;;  %v1202_v0 = vand.u32 65535, %v1172_v23  ;;  %v1203_v24 = vshrl.u32 %v1172_v23, 16 }
 0x281   : > { %2998 = vst [vmem:[%s3870_s25 + $0x48] sm:$0xff] %v2058_v8  ;;  %v2792_v2 = vor.u32 %v2791_v26, %v2790_v55  ;;  %v2795_v50 = vshll.u32 %v2794_v32, 23  ;;  %v2379_v9 = vadd.s32 1, %v4743_v38  ;;  %v1180_v33 = vand.u32 65535, %v1176_v63 }
 0x282   : > { %v1181_v6 = vshrl.u32 %v1176_v63, 16  ;;  %v4814_v1 = vand.u32 8388607, %v2369_v12  ;;  %v2806_v7 = vsel %vm4772_vm10, 0, %v4763_v22  ;;  %v4821_v48 = vsel %vm1162_vm13, %v1165_v3, %v1167_v16 }
 0x283   : > { %v2796_v5 = vor.u32 4788187, %v2795_v50  ;;  %v1205_v18 = vmul.u32 %v1203_v24, %v4738_v13  ;;  %v1206_v52 = vmul.u32 %v1202_v0, %v4741_v42  ;;  %v2799_v60 = vcvt.s32.f32 %v2792_v2 }
 0x284   : > { %v1183_v4 = vmul.u32 %v1181_v6, %v4738_v13  ;;  %v1184_v62 = vmul.u32 %v1180_v33, %v4741_v42  ;;  %v1204_v28 = vmul.u32 %v1202_v0, %v4738_v13  ;;  %v1207_v37 = vmul.u32 %v1203_v24, %v4741_v42 }
 0x285   : > { %v2797_v38 = vand.u32 2147483647, %v2796_v5  ;;  %v1208_v45 = vshll.u32 %v1205_v18, 16  ;;  %vm2380_vm5 = vcmp.gt.s32.totalorder %v2379_v9, 0  ;;  %v1182_v59 = vmul.u32 %v1180_v33, %v4738_v13 }
 0x286   : > { %v1185_v43 = vmul.u32 %v1181_v6, %v4741_v42  ;;  %v1186_v53 = vshll.u32 %v1183_v4, 16  ;;  %v1188_v41 = vshll.u32 %v1184_v62, 16  ;;  %v1210_v27 = vshll.u32 %v1206_v52, 16 }
 0x287   : > { %v2800_v22 = vmul.f32 %v2799_v60, %v2797_v38  ;;  %vm1212_vm6 = vc.u32 %v1204_v28, %v1208_v45  ;;  %v1214_v3 = vadd.s32 %v1208_v45, %v1204_v28  ;;  %v1209_v26 = vshrl.u32 %v1205_v18, 16 }
 0x288   : > { %vm1190_vm2 = vc.u32 %v1182_v59, %v1186_v53  ;;  %v1192_v14 = vadd.s32 %v1186_v53, %v1182_v59  ;;  %v1213_v8 = vsel %vm1212_vm6, 1, %v3277_v29  ;;  %v2381_v2 = vsel %vm2380_vm5, %v2379_v9, 0 }
 0x289   : > { %v2801_v11 = vxor.u32 2147483648, %v2800_v22  ;;  %v1191_v55 = vsel %vm1190_vm2, 1, %v3277_v29  ;;  %v1215_v32 = vadd.s32 %v1213_v8, %v1207_v37  ;;  %vm1216_vm15 = vc.u32 %v1214_v3, %v1210_v27 }
 0x28a   : > { %v1193_v16 = vadd.s32 %v1191_v55, %v1185_v43  ;;  %vm1194_vm8 = vc.u32 %v1192_v14, %v1188_v41  ;;  %v1217_v42 = vsel %vm1216_vm15, 1, %v3277_v29  ;;  %v1187_v23 = vshrl.u32 %v1183_v4, 16 }
 0x28b   : > { %v2802_v13 = vsel %vm2681_vm7, %v2801_v11, %v2800_v22  ;;  %v1195_v61 = vsel %vm1194_vm8, 1, %v3277_v29  ;;  %v1219_v49 = vadd.s32 %v1217_v42, %v1215_v32  ;;  %v2383_v63 = vand.u32 31, %v2381_v2 }
 0x28c   : > { %v2805_v17 = vsel %vm4772_vm10, %v4471_v20, %v2802_v13  ;;  %v1197_v35 = vadd.s32 %v1195_v61, %v1193_v16  ;;  %v1189_v0 = vshrl.u32 %v1184_v62, 16  ;;  %v1211_v24 = vshrl.u32 %v1206_v52, 16 }
 0x28d   : > { %v2807_v50 = vmul.f32 %v2805_v17, %v2805_v17  ;;  %v1220_v5 = vadd.s32 %v1219_v49, %v1209_v26  ;;  %v4841_v38 = vsub.s32 32, %v2383_v63  ;;  %v2823_v60 = vadd.s32 3, %v2806_v7 }
 0x28e   : > { %v1198_v18 = vadd.s32 %v1197_v35, %v1187_v23  ;;  %v1222_v28 = vmul.u32 %v4729_v57, %v4821_v48  ;;  %v2377_v37 = vor.u32 8388608, %v4814_v1  ;;  %v4848_v22 = vadd.s32 %v1214_v3, %v1210_v27 }
 0x28f   : > { %v2808_v33 = vmul.f32 -0.001358992, %v2807_v50  ;;  %v2815_v6 = vmul.f32 -0.00019511016, %v2807_v50  ;;  %v1221_v56 = vadd.s32 %v1220_v5, %v1211_v24  ;;  %v4850_v62 = vshrl.u32 %v2381_v2, 5 }
 0x290   : > { %v4846_v4 = vadd.s32 %v1198_v18, %v1189_v0  ;;  %v2386_v59 = vshll.u32 %v3279_v19, %v2383_v63  ;;  %v2387_v7 = vshrl.u32 %v3280_v25, %v4841_v38  ;;  %v2390_v57 = vshrl.u32 %v5453_v58, %v4841_v38 }
 0x291   : > { %v2809_v9 = vadd.f32 0.041655596, %v2808_v33  ;;  %v2816_v45 = vadd.f32 0.008332121, %v2815_v6  ;;  %v1225_v52 = vadd.s32 1, %v1221_v56  ;;  %v2389_v48 = vshll.u32 %v3280_v25, %v2383_v63 }
 0x292   : > { %vm1224_vm7 = vc.u32 %v4846_v4, %v4848_v22  ;;  %v2392_v41 = vshll.u32 %v5453_v58, %v2383_v63  ;;  %v2393_v27 = vshrl.u32 %v3282_v36, %v4841_v38  ;;  %v2388_v8 = vor.u32 %v2387_v7, %v2386_v59 }
 0x293   : > { %v2810_v43 = vmul.f32 %v2809_v9, %v2807_v50  ;;  %v2817_v53 = vmul.f32 %v2816_v45, %v2807_v50  ;;  %v1226_v1 = vsel %vm1224_vm7, %v1225_v52, %v1221_v56  ;;  %v2395_v55 = vshll.u32 %v3282_v36, %v2383_v63 }
 0x294   : > { %v1227_v14 = vadd.s32 %v1226_v1, %v1222_v28  ;;  %v2396_v26 = vshrl.u32 %v5454_v47, %v4841_v38  ;;  %v2398_v32 = vshll.u32 %v5454_v47, %v2383_v63  ;;  %v2399_v13 = vshrl.u32 %v5455_v51, %v4841_v38 }
 0x295   : > { %v2811_v3 = vadd.f32 -0.4999988, %v2810_v43  ;;  %v2818_v11 = vadd.f32 -0.16666654, %v2817_v53  ;;  %v4869_v49 = vor.u32 %v2390_v57, %v2389_v48  ;;  %v2824_v2 = vand.u32 3, %v2823_v60 }
 0x296   : > { %v1228_v61 = vadd.s32 536870912, %v1227_v14  ;;  %v2394_v23 = vor.u32 %v2393_v27, %v2392_v41  ;;  %v2397_v35 = vor.u32 %v2396_v26, %v2395_v55  ;;  %v2400_v0 = vor.u32 %v2399_v13, %v2398_v32  ;;  %v427_v27 = vpop.permute.xlu1 %426 }
 0x297   : > { %v2812_v16 = vmul.f32 %v2811_v3, %v2807_v50  ;;  %v2819_v42 = vmul.f32 %v2818_v11, %v2807_v50  ;;  %vm2404_vm11 = vcmp.lt.s32.totalorder %v4850_v62, 4  ;;  %vm2822_vm12 = vweird.f32 %v4471_v20 }
 0x298   : > { %v4871_v33 = vshrl.u32 %v1228_v61, 30  ;;  %vm2401_vm9 = vcmp.lt.s32.totalorder %v4850_v62, 1  ;;  %vm2403_vm10 = vcmp.lt.s32.totalorder %v4850_v62, 3  ;;  %v2410_v50 = vsel %vm2404_vm11, %v2397_v35, 920167782 }
 0x299   : > { %v2813_v24 = vadd.f32 1.0, %v2812_v16  ;;  %v2820_v5 = vadd.f32 1.0, %v2819_v42  ;;  %v2409_v60 = vsel %vm2401_vm9, %v2388_v8, %v4869_v49  ;;  %vm2825_vm0 = vcmp.lt.s32.totalorder %v2824_v2, 2 }
 0x29a   : > { %v1230_v18 = vshll.u32 %v4871_v33, 30  ;;  %v2411_v56 = vsel %vm2403_vm10, %v2394_v23, %v2410_v50  ;;  %v2414_v28 = vsel %vm2404_vm11, %v2400_v0, 1326507024  ;;  %v4887_v9 = vshll.u32 %v2377_v37, 8 }
 0x29b   : > { %v2821_v63 = vmul.f32 %v2820_v5, %v2805_v17  ;;  %v2830_v6 = vxor.u32 2147483648, %v2813_v24  ;;  %vm2402_vm13 = vcmp.lt.s32.totalorder %v4850_v62, 2  ;;  %v2413_v17 = vsel %vm2401_vm9, %v4869_v49, %v2394_v23 }
 0x29c   : > { %v1231_v52 = vsub.s32 %v1227_v14, %v1230_v18  ;;  %vm2826_vm4 = vcmp.eq.s32.totalorder %v2824_v2, 0  ;;  %vm2829_vm14 = vcmp.eq.s32.totalorder %v2824_v2, 2  ;;  %v2412_v59 = vsel %vm2402_vm13, %v2409_v60, %v2411_v56 }
 0x29d   : > { %v2827_v45 = vxor.u32 2147483648, %v2821_v63  ;;  %v2415_v7 = vsel %vm2403_vm10, %v2397_v35, %v2414_v28  ;;  %v2831_v37 = vsel %vm2829_vm14, %v2830_v6, %v2821_v63  ;;  %v2385_v1 = vshrl.u32 %v3279_v19, %v4841_v38 }
 0x29e   : > { %vm1232_vm5 = vcmp.lt.s32.totalorder %v1231_v52, 0  ;;  %v1233_v53 = vsub.s32 0, %v1231_v52  ;;  %v2416_v48 = vsel %vm2402_vm13, %v2413_v17, %v2415_v7  ;;  %v2418_v41 = vand.u32 65535, %v4887_v9 }
 0x29f   : > { %v2828_v43 = vsel %vm2826_vm4, %v2813_v24, %v2827_v45  ;;  %v2420_v14 = vand.u32 65535, %v2416_v48  ;;  %v2442_v55 = vand.u32 65535, %v2412_v59  ;;  %v2419_v32 = vshrl.u32 %v4887_v9, 16 }
 0x2a0   : > { %v2832_v57 = vsel %vm2825_vm0, %v2828_v43, %v2831_v37  ;;  %v1234_v11 = vsel %vm1232_vm5, %v1233_v53, %v1231_v52  ;;  %v2421_v13 = vshrl.u32 %v2416_v48, 16  ;;  %v2443_v16 = vshrl.u32 %v2412_v59, 16 }
 0x2a1   : > { %v2833_v3 = vsel %vm2822_vm12, nan, %v2832_v57  ;;  %v1235_v26 = vclz %v1234_v11  ;;  %v393_v38 = vsel %vm311_vm1, %v4199_v40, %v3505_v54  ;;  %v1223_v42 = vadd.s32 %v4848_v22, %v4846_v4 }
 0x2a2   : > { %3003 = vst [vmem:[%s3870_s25 + $0x70] sm:$0xff] %v2833_v3  ;;  %v468_v20 = vsel %vm394_vm3, %v427_v27, %v3528_v10  ;;  %v2405_v2 = vsel %vm2401_vm9, %v2385_v1, %v2388_v8  ;;  %v2423_v35 = vmul.u32 %v2421_v13, %v2418_v41  ;;  %v2424_v0 = vmul.u32 %v2420_v14, %v2419_v32  ;;  %v459_v1 = vpop.permute.xlu0 %458 }
 0x2a3   : > { %v3103_v61 = vadd.s32 4294967294, %v1235_v26  ;;  %v1253_v24 = vsub.s32 4, %v4871_v33  ;;  %v2406_v5 = vsel %vm2404_vm11, %v2394_v23, 2102212464  ;;  %v2445_v50 = vmul.u32 %v2443_v16, %v2418_v41 }
 0x2a4   : > { %v2446_v54 = vmul.u32 %v2442_v55, %v2419_v32  ;;  %v2422_v40 = vmul.u32 %v2420_v14, %v2418_v41  ;;  %v2426_v4 = vshll.u32 %v2423_v35, 16  ;;  %v2444_v22 = vmul.u32 %v2442_v55, %v2418_v41 }
 0x2a5   : > { %vm3104_vm1 = vcmp.lt.s32.totalorder %v3103_v61, 0  ;;  %v2425_v6 = vmul.u32 %v2421_v13, %v2419_v32  ;;  %v2447_v10 = vmul.u32 %v2443_v16, %v2419_v32  ;;  %v2448_v18 = vshll.u32 %v2445_v50, 16 }
 0x2a6   : > { %v1238_v63 = vsel %vm3104_vm1, 0, %v3103_v61  ;;  %v2428_v8 = vshll.u32 %v2424_v0, 16  ;;  %vm2430_vm6 = vc.u32 %v2422_v40, %v2426_v4  ;;  %v2432_v17 = vadd.s32 %v2426_v4, %v2422_v40 }
 0x2a7   : > { %v1239_v60 = vsub.s32 32, %v1238_v63  ;;  %v1243_v56 = vsub.s32 4294967266, %v1238_v63  ;;  %v1240_v28 = vshll.u32 %v1231_v52, %v1238_v63  ;;  %v2431_v45 = vsel %vm2430_vm6, 1, %v3277_v29 }
 0x2a8   : > { %v2450_v59 = vshll.u32 %v2446_v54, 16  ;;  %v2433_v43 = vadd.s32 %v2431_v45, %v2425_v6  ;;  %vm2452_vm2 = vc.u32 %v2444_v22, %v2448_v18  ;;  %vm2434_vm15 = vc.u32 %v2432_v17, %v2428_v8 }
 0x2a9   : > { %v1241_v23 = vshrl.u32 %v1223_v42, %v1239_v60  ;;  %v1244_v7 = vadd.s32 127, %v1243_v56  ;;  %v2453_v37 = vsel %vm2452_vm2, 1, %v3277_v29  ;;  %v2454_v53 = vadd.s32 %v2448_v18, %v2444_v22 }
 0x2aa   : > { %v484_v57 = vmul.f32 %v468_v20, %v3549_v34  ;;  %v2435_v27 = vsel %vm2434_vm15, 1, %v3277_v29  ;;  %v2455_v52 = vadd.s32 %v2453_v37, %v2447_v10  ;;  %v2427_v3 = vshrl.u32 %v2423_v35, 16 }
 0x2ab   : > { %v1242_v48 = vor.u32 %v1241_v23, %v1240_v28  ;;  %v1245_v41 = vshll.u32 %v1244_v7, 23  ;;  %v2437_v11 = vadd.s32 %v2435_v27, %v2433_v43  ;;  %vm2456_vm8 = vc.u32 %v2454_v53, %v2450_v59 }
 0x2ac   : > { %v4926_v14 = vadd.f32 %v484_v57, %v3560_v39  ;;  %v2429_v26 = vshrl.u32 %v2424_v0, 16  ;;  %v2457_v32 = vsel %vm2456_vm8, 1, %v3277_v29  ;;  %v476_v13 = vsel %vm394_vm3, %v459_v1, %v393_v38 }
 0x2ad   : > { %v1246_v55 = vor.u32 4788187, %v1245_v41  ;;  %v2438_v16 = vadd.s32 %v2437_v11, %v2427_v3  ;;  %v2449_v42 = vshrl.u32 %v2445_v50, 16  ;;  %v2459_v20 = vadd.s32 %v2457_v32, %v2455_v52 }
 0x2ae   : > { %v1594_v61 = vand.u32 2147483647, %v4926_v14  ;;  %v1249_v4 = vcvt.s32.f32 %v1242_v48  ;;  %v2407_v35 = vsel %vm2403_vm10, %v4869_v49, %v2406_v5  ;;  %v1597_v22 = vand.u32 2139095040, %v4926_v14 }
 0x2af   : > { %v1247_v40 = vand.u32 2147483647, %v1246_v55  ;;  %v2439_v63 = vadd.s32 %v2438_v16, %v2429_v26  ;;  %v2451_v0 = vshrl.u32 %v2446_v54, 16  ;;  %v2460_v6 = vadd.s32 %v2459_v20, %v2449_v42 }
 0x2b0   : > { %v492_v10 = vmul.f32 %v476_v13, %v3549_v34  ;;  %vm1131_vm7 = vcmp.lt.s32.totalorder %v4706_v44, 0  ;;  %v2458_v50 = vadd.s32 %v2454_v53, %v2450_v59  ;;  %v1598_v18 = vshrl.u32 %v1597_v22, 23 }
 0x2b1   : > { %v1250_v38 = vmul.f32 %v1249_v4, %v1247_v40  ;;  %v1254_v60 = vsel %vm1131_vm7, %v1253_v24, %v4871_v33  ;;  %v2408_v56 = vsel %vm2402_vm13, %v2405_v2, %v2407_v35  ;;  %v2461_v8 = vadd.s32 %v2460_v6, %v2451_v0 }
 0x2b2   : > { %v1601_v49 = vand.u32 8388607, %v1594_v61  ;;  %vm2464_vm11 = vc.u32 %v2439_v63, %v2458_v50  ;;  %v3111_v54 = vadd.s32 4294967169, %v1598_v18  ;;  %vm1130_vm12 = vcmp.le.f32.partialorder %v1129_v46, 0.7853982 }
 0x2b3   : > { %v1251_v5 = vxor.u32 2147483648, %v1250_v38  ;;  %v2465_v28 = vadd.s32 1, %v2461_v8  ;;  %v4946_v45 = vadd.f32 %v492_v10, %v3560_v39  ;;  %v1256_v59 = vsel %vm1130_vm12, 0, %v1254_v60 }
 0x2b4   : > { %v2462_v33 = vmul.u32 %v4887_v9, %v2408_v56  ;;  %v1604_v62 = vadd.s32 1, %v3111_v54  ;;  %v1602_v23 = vor.u32 8388608, %v1601_v49  ;;  %v1273_v37 = vadd.s32 3, %v1256_v59 }
 0x2b5   : > { %v1252_v17 = vsel %vm1131_vm7, %v1251_v5, %v1250_v38  ;;  %v2466_v24 = vsel %vm2464_vm11, %v2465_v28, %v2461_v8  ;;  %v2834_v46 = vand.u32 2147483647, %v4946_v45  ;;  %v2837_v9 = vand.u32 2139095040, %v4946_v45 }
 0x2b6   : > { %v1255_v2 = vsel %vm1130_vm12, %v4706_v44, %v1252_v17  ;;  %v2467_v43 = vadd.s32 %v2466_v24, %v2462_v33  ;;  %vm1605_vm9 = vcmp.gt.s32.totalorder %v1604_v62, 0  ;;  %v4951_v27 = vshll.u32 %v1602_v23, 8 }
 0x2b7   : > { %v1257_v7 = vmul.f32 %v1255_v2, %v1255_v2  ;;  %v1606_v53 = vsel %vm1605_vm9, %v1604_v62, 0  ;;  %v4954_v55 = vand.u32 3, %v1273_v37  ;;  %v4956_v26 = vadd.s32 %v2458_v50, %v2439_v63 }
 0x2b8   : > { %v2468_v48 = vadd.s32 536870912, %v2467_v43  ;;  %v1608_v41 = vand.u32 31, %v1606_v53  ;;  %v4960_v20 = vand.u32 8388607, %v2834_v46  ;;  %vm2371_vm10 = vcmp.lt.s32.totalorder %v4720_v21, 0 }
 0x2b9   : > { %v1258_v57 = vmul.f32 -0.001358992, %v1257_v7  ;;  %v1265_v1 = vmul.f32 -0.00019511016, %v1257_v7  ;;  %v4963_v40 = vshrl.u32 %v1606_v53, 5  ;;  %v4966_v4 = vand.u32 65535, %v4951_v27 }
 0x2ba   : > { %v2469_v11 = vshrl.u32 %v2468_v48, 30  ;;  %v1609_v32 = vsub.s32 32, %v1608_v41  ;;  %v4969_v35 = vshrl.u32 %v4951_v27, 16  ;;  %v2838_v22 = vshrl.u32 %v2837_v9, 23 }
 0x2bb   : > { %v1259_v52 = vadd.f32 0.041655596, %v1258_v57  ;;  %v1266_v3 = vadd.f32 0.008332121, %v1265_v1  ;;  %v1611_v10 = vshll.u32 %v3279_v19, %v1608_v41  ;;  %vm1276_vm0 = vcmp.eq.s32.totalorder %v4954_v55, 0 }
 0x2bc   : > { %v2470_v42 = vshll.u32 %v2469_v11, 30  ;;  %vm1279_vm13 = vcmp.eq.s32.totalorder %v4954_v55, 2  ;;  %v1612_v38 = vshrl.u32 %v3280_v25, %v1609_v32  ;;  %v1614_v50 = vshll.u32 %v3280_v25, %v1608_v41 }
 0x2bd   : > { %v1260_v13 = vmul.f32 %v1259_v52, %v1257_v7  ;;  %v1267_v16 = vmul.f32 %v1266_v3, %v1257_v7  ;;  %v1615_v18 = vshrl.u32 %v5453_v58, %v1609_v32  ;;  %v1618_v60 = vshrl.u32 %v3282_v36, %v1609_v32 }
 0x2be   : > { %v4971_v6 = vsub.s32 %v2467_v43, %v2470_v42  ;;  %vm1275_vm4 = vcmp.lt.s32.totalorder %v4954_v55, 2  ;;  %vm1272_vm5 = vweird.f32 %v4706_v44  ;;  %v2493_v5 = vsub.s32 4, %v2469_v11 }
 0x2bf   : > { %v1261_v63 = vadd.f32 -0.4999988, %v1260_v13  ;;  %v1268_v0 = vadd.f32 -0.16666654, %v1267_v16  ;;  %v1617_v54 = vshll.u32 %v5453_v58, %v1608_v41  ;;  %v1620_v28 = vshll.u32 %v3282_v36, %v1608_v41 }
 0x2c0   : > { %vm2472_vm14 = vcmp.lt.s32.totalorder %v4971_v6, 0  ;;  %v2473_v49 = vsub.s32 0, %v4971_v6  ;;  %v1621_v17 = vshrl.u32 %v5454_v47, %v1609_v32  ;;  %v1624_v24 = vshrl.u32 %v5455_v51, %v1609_v32 }
 0x2c1   : > { %v1262_v56 = vmul.f32 %v1261_v63, %v1257_v7  ;;  %v1269_v8 = vmul.f32 %v1268_v0, %v1257_v7  ;;  %vm4991_vm1 = vcmp.le.f32.partialorder %v2369_v12, 0.7853982  ;;  %v1613_v43 = vor.u32 %v1612_v38, %v1611_v10 }
 0x2c2   : > { %v2474_v62 = vsel %vm2472_vm14, %v2473_v49, %v4971_v6  ;;  %v1616_v37 = vor.u32 %v1615_v18, %v1614_v50  ;;  %v1622_v53 = vor.u32 %v1621_v17, %v1620_v28  ;;  %v1619_v48 = vor.u32 %v1618_v60, %v1617_v54 }
 0x2c3   : > { %v1263_v59 = vadd.f32 1.0, %v1262_v56  ;;  %v1270_v33 = vadd.f32 1.0, %v1269_v8  ;;  %v2475_v7 = vclz %v2474_v62  ;;  %v1623_v9 = vshll.u32 %v5454_v47, %v1608_v41 }
 0x2c4   : > { %v1610_v3 = vshrl.u32 %v3279_v19, %v1609_v32  ;;  %vm1626_vm6 = vcmp.lt.s32.totalorder %v4963_v40, 1  ;;  %v3135_v13 = vadd.s32 4294967169, %v2838_v22  ;;  %v2494_v12 = vsel %vm2371_vm10, %v2493_v5, %v2469_v11 }
 0x2c5   : > { %v1271_v57 = vmul.f32 %v1270_v33, %v1255_v2  ;;  %v1280_v1 = vxor.u32 2147483648, %v1263_v59  ;;  %v3127_v52 = vadd.s32 4294967294, %v2475_v7  ;;  %v1625_v42 = vor.u32 %v1624_v24, %v1623_v9 }
 0x2c6   : > { %vm1629_vm2 = vcmp.lt.s32.totalorder %v4963_v40, 4  ;;  %vm1628_vm8 = vcmp.lt.s32.totalorder %v4963_v40, 3  ;;  %v1634_v2 = vsel %vm1626_vm6, %v1613_v43, %v1616_v37  ;;  %vm1627_vm7 = vcmp.lt.s32.totalorder %v4963_v40, 2 }
 0x2c7   : > { %v1277_v16 = vxor.u32 2147483648, %v1271_v57  ;;  %vm3128_vm15 = vcmp.lt.s32.totalorder %v3127_v52, 0  ;;  %v1635_v41 = vsel %vm1629_vm2, %v1622_v53, 920167782  ;;  %v1281_v22 = vsel %vm1279_vm13, %v1280_v1, %v1271_v57 }
 0x2c8   : > { %v2478_v11 = vsel %vm3128_vm15, 0, %v3127_v52  ;;  %v1636_v63 = vsel %vm1628_vm8, %v1619_v48, %v1635_v41  ;;  %v1638_v56 = vsel %vm1626_vm6, %v1616_v37, %v1619_v48  ;;  %v1639_v49 = vsel %vm1629_vm2, %v1625_v42, 1326507024 }
 0x2c9   : > { %v1278_v32 = vsel %vm1276_vm0, %v1263_v59, %v1277_v16  ;;  %v2479_v10 = vsub.s32 32, %v2478_v11  ;;  %v2483_v38 = vsub.s32 4294967266, %v2478_v11  ;;  %v2480_v18 = vshll.u32 %v4971_v6, %v2478_v11 }
 0x2ca   : > { %v1282_v0 = vsel %vm1275_vm4, %v1278_v32, %v1281_v22  ;;  %v1637_v60 = vsel %vm1627_vm7, %v1634_v2, %v1636_v63  ;;  %v2496_v44 = vsel %vm4991_vm1, 0, %v2494_v12  ;;  %v1631_v6 = vsel %vm1629_vm2, %v1619_v48, 2102212464 }
 0x2cb   : > { %v1283_v50 = vsel %vm1272_vm5, nan, %v1282_v0  ;;  %v2481_v8 = vshrl.u32 %v4956_v26, %v2479_v10  ;;  %v2484_v55 = vadd.s32 127, %v2483_v38  ;;  %v1667_v5 = vand.u32 65535, %v1637_v60 }
 0x2cc   : > { %2993 = vst [vmem:[%s3870_s25 + $0x20] sm:$0xff] %v1283_v50  ;;  %v1640_v54 = vsel %vm1628_vm8, %v1622_v53, %v1639_v49  ;;  %v1668_v28 = vshrl.u32 %v1637_v60, 16  ;;  %v2844_v33 = vadd.s32 1, %v3135_v13  ;;  %v2513_v9 = vadd.s32 3, %v2496_v44 }
 0x2cd   : > { %v2482_v17 = vor.u32 %v2481_v8, %v2480_v18  ;;  %v2485_v59 = vshll.u32 %v2484_v55, 23  ;;  %v1641_v26 = vsel %vm1627_vm7, %v1638_v56, %v1640_v54  ;;  %v1671_v57 = vmul.u32 %v1667_v5, %v4969_v35 }
 0x2ce   : > { %v1645_v62 = vand.u32 65535, %v1641_v26  ;;  %v1646_v24 = vshrl.u32 %v1641_v26, 16  ;;  %v1670_v7 = vmul.u32 %v1668_v28, %v4966_v4  ;;  %v1630_v48 = vsel %vm1626_vm6, %v1610_v3, %v1613_v43 }
 0x2cf   : > { %v2486_v1 = vor.u32 4788187, %v2485_v59  ;;  %v1632_v53 = vsel %vm1628_vm8, %v1616_v37, %v1631_v6  ;;  %v2489_v52 = vcvt.s32.f32 %v2482_v17  ;;  %v1669_v13 = vmul.u32 %v1667_v5, %v4966_v4 }
 0x2d0   : > { %v1648_v16 = vmul.u32 %v1646_v24, %v4966_v4  ;;  %v1649_v12 = vmul.u32 %v1645_v62, %v4969_v35  ;;  %v1672_v2 = vmul.u32 %v1668_v28, %v4969_v35  ;;  %v1673_v41 = vshll.u32 %v1670_v7, 16 }
 0x2d1   : > { %v2487_v42 = vand.u32 2147483647, %v2486_v1  ;;  %vm2845_vm11 = vcmp.gt.s32.totalorder %v2844_v33, 0  ;;  %v1647_v32 = vmul.u32 %v1645_v62, %v4966_v4  ;;  %v1650_v22 = vmul.u32 %v1646_v24, %v4969_v35 }
 0x2d2   : > { %v1651_v43 = vshll.u32 %v1648_v16, 16  ;;  %v1675_v3 = vshll.u32 %v1671_v57, 16  ;;  %v1653_v37 = vshll.u32 %v1649_v12, 16  ;;  %vm1677_vm12 = vc.u32 %v1669_v13, %v1673_v41 }
 0x2d3   : > { %v2490_v11 = vmul.f32 %v2489_v52, %v2487_v42  ;;  %v1679_v63 = vadd.s32 %v1673_v41, %v1669_v13  ;;  %v1678_v10 = vsel %vm1677_vm12, 1, %v3277_v29  ;;  %v2846_v38 = vsel %vm2845_vm11, %v2844_v33, 0 }
 0x2d4   : > { %vm1655_vm9 = vc.u32 %v1647_v32, %v1651_v43  ;;  %v1657_v0 = vadd.s32 %v1651_v43, %v1647_v32  ;;  %v1680_v60 = vadd.s32 %v1678_v10, %v1672_v2  ;;  %v1633_v4 = vsel %vm1627_vm7, %v1630_v48, %v1632_v53 }
 0x2d5   : > { %v2491_v50 = vxor.u32 2147483648, %v2490_v11  ;;  %v1656_v18 = vsel %vm1655_vm9, 1, %v3277_v29  ;;  %vm1681_vm0 = vc.u32 %v1679_v63, %v1675_v3  ;;  %v1674_v49 = vshrl.u32 %v1670_v7, 16 }
 0x2d6   : > { %v1658_v35 = vadd.s32 %v1656_v18, %v1650_v22  ;;  %vm1659_vm13 = vc.u32 %v1657_v0, %v1653_v37  ;;  %v1682_v56 = vsel %vm1681_vm0, 1, %v3277_v29  ;;  %v1652_v6 = vshrl.u32 %v1648_v16, 16 }
 0x2d7   : > { %v2492_v8 = vsel %vm2371_vm10, %v2491_v50, %v2490_v11  ;;  %v1660_v55 = vsel %vm1659_vm13, 1, %v3277_v29  ;;  %v1684_v5 = vadd.s32 %v1682_v56, %v1680_v60  ;;  %v2848_v28 = vand.u32 31, %v2846_v38 }
 0x2d8   : > { %v2495_v44 = vsel %vm4991_vm1, %v4720_v21, %v2492_v8  ;;  %v1662_v54 = vadd.s32 %v1660_v55, %v1658_v35  ;;  %v1676_v17 = vshrl.u32 %v1671_v57, 16  ;;  %v2842_v26 = vor.u32 8388608, %v4960_v20 }
 0x2d9   : > { %v2497_v40 = vmul.f32 %v2495_v44, %v2495_v44  ;;  %v1685_v59 = vadd.s32 %v1684_v5, %v1674_v49  ;;  %v5058_v33 = vand.u32 3, %v2513_v9  ;;  %v1654_v62 = vshrl.u32 %v1649_v12, 16 }
 0x2da   : > { %v1663_v24 = vadd.s32 %v1662_v54, %v1652_v6  ;;  %v5060_v1 = vsub.s32 32, %v2848_v28  ;;  %v1687_v23 = vmul.u32 %v4951_v27, %v1633_v4  ;;  %v5065_v16 = vadd.s32 %v1679_v63, %v1675_v3 }
 0x2db   : > { %v2498_v7 = vmul.f32 -0.001358992, %v2497_v40  ;;  %v2505_v48 = vmul.f32 -0.00019511016, %v2497_v40  ;;  %v1686_v53 = vadd.s32 %v1685_v59, %v1676_v17  ;;  %v5067_v13 = vshrl.u32 %v2846_v38, 5 }
 0x2dc   : > { %v5063_v52 = vadd.s32 %v1663_v24, %v1654_v62  ;;  %v2852_v20 = vshrl.u32 %v3280_v25, %v5060_v1  ;;  %v2851_v42 = vshll.u32 %v3279_v19, %v2848_v28  ;;  %v2854_v2 = vshll.u32 %v3280_v25, %v2848_v28 }
 0x2dd   : > { %v2499_v57 = vadd.f32 0.041655596, %v2498_v7  ;;  %v2506_v9 = vadd.f32 0.008332121, %v2505_v48  ;;  %v1690_v12 = vadd.s32 1, %v1686_v53  ;;  %v2855_v27 = vshrl.u32 %v5453_v58, %v5060_v1 }
 0x2de   : > { %vm1689_vm10 = vc.u32 %v5063_v52, %v5065_v16  ;;  %v2858_v41 = vshrl.u32 %v3282_v36, %v5060_v1  ;;  %v2857_v3 = vshll.u32 %v5453_v58, %v2848_v28  ;;  %v5080_v37 = vor.u32 %v2852_v20, %v2851_v42 }
 0x2df   : > { %v2500_v32 = vmul.f32 %v2499_v57, %v2497_v40  ;;  %v2507_v22 = vmul.f32 %v2506_v9, %v2497_v40  ;;  %v1691_v43 = vsel %vm1689_vm10, %v1690_v12, %v1686_v53  ;;  %v2860_v63 = vshll.u32 %v3282_v36, %v2848_v28 }
 0x2e0   : > { %v1692_v11 = vadd.s32 %v1691_v43, %v1687_v23  ;;  %v2861_v0 = vshrl.u32 %v5454_v47, %v5060_v1  ;;  %v2863_v50 = vshll.u32 %v5454_v47, %v2848_v28  ;;  %v2864_v18 = vshrl.u32 %v5455_v51, %v5060_v1 }
 0x2e1   : > { %v2501_v10 = vadd.f32 -0.4999988, %v2500_v32  ;;  %v2508_v38 = vadd.f32 -0.16666654, %v2507_v22  ;;  %v5088_v4 = vor.u32 %v2855_v27, %v2854_v2  ;;  %v5090_v35 = vor.u32 %v2858_v41, %v2857_v3 }
 0x2e2   : > { %v1693_v60 = vadd.s32 536870912, %v1692_v11  ;;  %v2862_v56 = vor.u32 %v2861_v0, %v2860_v63  ;;  %v2865_v49 = vor.u32 %v2864_v18, %v2863_v50  ;;  %vm2869_vm4 = vcmp.lt.s32.totalorder %v5067_v13, 4  ;;  %v439_v63 = vpop.permute.xlu1 %438 }
 0x2e3   : > { %v2502_v8 = vmul.f32 %v2501_v10, %v2497_v40  ;;  %v2509_v55 = vmul.f32 %v2508_v38, %v2497_v40  ;;  %vm2512_vm14 = vweird.f32 %v4720_v21  ;;  %v5098_v54 = vshll.u32 %v2842_v26, 8 }
 0x2e4   : > { %v5094_v5 = vshrl.u32 %v1693_v60, 30  ;;  %v2875_v6 = vsel %vm2869_vm4, %v2862_v56, 920167782  ;;  %vm2866_vm5 = vcmp.lt.s32.totalorder %v5067_v13, 1  ;;  %vm2868_vm1 = vcmp.lt.s32.totalorder %v5067_v13, 3 }
 0x2e5   : > { %v2503_v28 = vadd.f32 1.0, %v2502_v8  ;;  %v2510_v17 = vadd.f32 1.0, %v2509_v55  ;;  %v2874_v59 = vsel %vm2866_vm5, %v5080_v37, %v5088_v4  ;;  %v2876_v62 = vsel %vm2868_vm1, %v5090_v35, %v2875_v6 }
 0x2e6   : > { %v1695_v40 = vshll.u32 %v5094_v5, 30  ;;  %v2878_v26 = vsel %vm2866_vm5, %v5088_v4, %v5090_v35  ;;  %vm2515_vm6 = vcmp.lt.s32.totalorder %v5058_v33, 2  ;;  %v2879_v48 = vsel %vm2869_vm4, %v2865_v49, 1326507024 }
 0x2e7   : > { %v2511_v24 = vmul.f32 %v2510_v17, %v2495_v44  ;;  %v2520_v7 = vxor.u32 2147483648, %v2503_v28  ;;  %vm2516_vm2 = vcmp.eq.s32.totalorder %v5058_v33, 0  ;;  %vm2867_vm15 = vcmp.lt.s32.totalorder %v5067_v13, 2 }
 0x2e8   : > { %v1696_v53 = vsub.s32 %v1692_v11, %v1695_v40  ;;  %v2880_v23 = vsel %vm2868_vm1, %v2862_v56, %v2879_v48  ;;  %vm2519_vm8 = vcmp.eq.s32.totalorder %v5058_v33, 2  ;;  %v2877_v44 = vsel %vm2867_vm15, %v2874_v59, %v2876_v62 }
 0x2e9   : > { %v2517_v20 = vxor.u32 2147483648, %v2511_v24  ;;  %v2881_v57 = vsel %vm2867_vm15, %v2878_v26, %v2880_v23  ;;  %v2883_v12 = vand.u32 65535, %v5098_v54  ;;  %v2521_v27 = vsel %vm2519_vm8, %v2520_v7, %v2511_v24 }
 0x2ea   : > { %vm1697_vm7 = vcmp.lt.s32.totalorder %v1696_v53, 0  ;;  %v1698_v9 = vsub.s32 0, %v1696_v53  ;;  %v2885_v42 = vand.u32 65535, %v2881_v57  ;;  %v2884_v41 = vshrl.u32 %v5098_v54, 16 }
 0x2eb   : > { %v2518_v2 = vsel %vm2516_vm2, %v2503_v28, %v2517_v20  ;;  %v2886_v32 = vshrl.u32 %v2881_v57, 16  ;;  %v2907_v3 = vand.u32 65535, %v2877_v44  ;;  %v2908_v11 = vshrl.u32 %v2877_v44, 16 }
 0x2ec   : > { %v2522_v22 = vsel %vm2515_vm6, %v2518_v2, %v2521_v27  ;;  %v1699_v43 = vsel %vm1697_vm7, %v1698_v9, %v1696_v53  ;;  %v2889_v50 = vmul.u32 %v2885_v42, %v2884_v41  ;;  %v2850_v60 = vshrl.u32 %v3279_v19, %v5060_v1  ;;  %v451_v2 = vpop.permute.xlu1 %450 }
 0x2ed   : > { %v2523_v0 = vsel %vm2512_vm14, nan, %v2522_v22  ;;  %v1700_v10 = vclz %v1699_v43  ;;  %v2888_v38 = vmul.u32 %v2886_v32, %v2883_v12  ;;  %v2887_v56 = vmul.u32 %v2885_v42, %v2883_v12 }
 0x2ee   : > { %3001 = vst [vmem:[%s3870_s25 + $0x60] sm:$0xff] %v2523_v0  ;;  %v1688_v33 = vadd.s32 %v5065_v16, %v5063_v52  ;;  %v2890_v55 = vmul.u32 %v2886_v32, %v2884_v41  ;;  %v2893_v49 = vshll.u32 %v2889_v50, 16  ;;  %v2910_v6 = vmul.u32 %v2908_v11, %v2883_v12 }
 0x2ef   : > { %v3112_v18 = vadd.s32 4294967294, %v1700_v10  ;;  %v2891_v8 = vshll.u32 %v2888_v38, 16  ;;  %v2909_v28 = vmul.u32 %v2907_v3, %v2883_v12  ;;  %v2911_v59 = vmul.u32 %v2907_v3, %v2884_v41 }
 0x2f0   : > { %v2913_v62 = vshll.u32 %v2910_v6, 16  ;;  %v2892_v1 = vshrl.u32 %v2888_v38, 16  ;;  %vm1596_vm9 = vcmp.lt.s32.totalorder %v4926_v14, 0  ;;  %v2912_v52 = vmul.u32 %v2908_v11, %v2884_v41 }
 0x2f1   : > { %vm3113_vm11 = vcmp.lt.s32.totalorder %v3112_v18, 0  ;;  %vm2895_vm12 = vc.u32 %v2887_v56, %v2891_v8  ;;  %v2897_v21 = vadd.s32 %v2891_v8, %v2887_v56  ;;  %v2915_v9 = vshll.u32 %v2911_v59, 16 }
 0x2f2   : > { %v1703_v17 = vsel %vm3113_vm11, 0, %v3112_v18  ;;  %v2896_v40 = vsel %vm2895_vm12, 1, %v3277_v29  ;;  %vm2917_vm13 = vc.u32 %v2909_v28, %v2913_v62  ;;  %v2919_v12 = vadd.s32 %v2913_v62, %v2909_v28 }
 0x2f3   : > { %v1704_v26 = vsub.s32 32, %v1703_v17  ;;  %v1708_v24 = vsub.s32 4294967266, %v1703_v17  ;;  %v2898_v7 = vadd.s32 %v2896_v40, %v2890_v55  ;;  %v1705_v48 = vshll.u32 %v1696_v53, %v1703_v17 }
 0x2f4   : > { %vm2899_vm0 = vc.u32 %v2897_v21, %v2893_v49  ;;  %v2918_v44 = vsel %vm2917_vm13, 1, %v3277_v29  ;;  %v2871_v53 = vsel %vm2869_vm4, %v5090_v35, 2102212464  ;;  %v471_v41 = vsel %vm394_vm3, %v439_v63, %v3532_v15 }
 0x2f5   : > { %v1706_v16 = vshrl.u32 %v1688_v33, %v1704_v26  ;;  %v1709_v23 = vadd.s32 127, %v1708_v24  ;;  %v2900_v20 = vsel %vm2899_vm0, 1, %v3277_v29  ;;  %v2920_v42 = vadd.s32 %v2918_v44, %v2912_v52 }
 0x2f6   : > { %v2902_v57 = vadd.s32 %v2900_v20, %v2898_v7  ;;  %v1718_v22 = vsub.s32 4, %v5094_v5  ;;  %vm2921_vm10 = vc.u32 %v2919_v12, %v2915_v9  ;;  %v487_v3 = vmul.f32 %v471_v41, %v3549_v34 }
 0x2f7   : > { %v1707_v27 = vor.u32 %v1706_v16, %v1705_v48  ;;  %v1710_v32 = vshll.u32 %v1709_v23, 23  ;;  %v2894_v0 = vshrl.u32 %v2889_v50, 16  ;;  %v2922_v10 = vsel %vm2921_vm10, 1, %v3277_v29 }
 0x2f8   : > { %v2903_v43 = vadd.s32 %v2902_v57, %v2892_v1  ;;  %v474_v38 = vsel %vm394_vm3, %v451_v2, %v3543_v30  ;;  %v2870_v35 = vsel %vm2866_vm5, %v2850_v60, %v5080_v37  ;;  %v2914_v18 = vshrl.u32 %v2910_v6, 16 }
 0x2f9   : > { %v1711_v11 = vor.u32 4788187, %v1710_v32  ;;  %v2924_v15 = vadd.s32 %v2922_v10, %v2920_v42  ;;  %v5157_v63 = vadd.f32 %v487_v3, %v3560_v39  ;;  %v1714_v8 = vcvt.s32.f32 %v1707_v27 }
 0x2fa   : > { %v2872_v50 = vsel %vm2868_vm1, %v5088_v4, %v2871_v53  ;;  %v2904_v33 = vadd.s32 %v2903_v43, %v2894_v0  ;;  %v2916_v55 = vshrl.u32 %v2911_v59, 16  ;;  %v490_v30 = vmul.f32 %v474_v38, %v3549_v34 }
 0x2fb   : > { %v1712_v56 = vand.u32 2147483647, %v1711_v11  ;;  %v2925_v49 = vadd.s32 %v2924_v15, %v2914_v18  ;;  %v2059_v31 = vand.u32 2147483647, %v5157_v63  ;;  %v1719_v37 = vsel %vm1596_vm9, %v1718_v22, %v5094_v5 }
 0x2fc   : > { %v2923_v60 = vadd.s32 %v2919_v12, %v2915_v9  ;;  %v2062_v6 = vand.u32 2139095040, %v5157_v63  ;;  %v2873_v28 = vsel %vm2867_vm15, %v2870_v35, %v2872_v50  ;;  %vm1595_vm3 = vcmp.le.f32.partialorder %v1594_v61, 0.7853982 }
 0x2fd   : > { %v1715_v21 = vmul.f32 %v1714_v8, %v1712_v56  ;;  %v2926_v17 = vadd.s32 %v2925_v49, %v2916_v55  ;;  %v1721_v59 = vsel %vm1595_vm3, 0, %v1719_v37  ;;  %v2066_v62 = vand.u32 8388607, %v2059_v31 }
 0x2fe   : > { %vm2929_vm4 = vc.u32 %v2904_v33, %v2923_v60  ;;  %v2063_v40 = vshrl.u32 %v2062_v6, 23  ;;  %v5175_v5 = vadd.f32 %v490_v30, %v3560_v39  ;;  %v2927_v13 = vmul.u32 %v5098_v54, %v2873_v28 }
 0x2ff   : > { %v1716_v4 = vxor.u32 2147483648, %v1715_v21  ;;  %v2930_v34 = vadd.s32 1, %v2926_v17  ;;  %v1738_v48 = vadd.s32 3, %v1721_v59  ;;  %v2067_v23 = vor.u32 8388608, %v2066_v62 }
 0x300   : > { %v3120_v24 = vadd.s32 4294967169, %v2063_v40  ;;  %v2527_v20 = vand.u32 2139095040, %v5175_v5  ;;  %v2524_v53 = vand.u32 2147483647, %v5175_v5  ;;  %vm5189_vm5 = vcmp.le.f32.partialorder %v2834_v46, 0.7853982 }
 0x301   : > { %v1717_v26 = vsel %vm1596_vm9, %v1716_v4, %v1715_v21  ;;  %v2931_v61 = vsel %vm2929_vm4, %v2930_v34, %v2926_v17  ;;  %v5182_v2 = vand.u32 3, %v1738_v48  ;;  %v5184_v32 = vshll.u32 %v2067_v23, 8 }
 0x302   : > { %v1720_v1 = vsel %vm1595_vm3, %v4926_v14, %v1717_v26  ;;  %v2932_v52 = vadd.s32 %v2931_v61, %v2927_v13  ;;  %v2069_v16 = vadd.s32 1, %v3120_v24  ;;  %v2528_v41 = vshrl.u32 %v2527_v20, 23 }
 0x303   : > { %v1722_v7 = vmul.f32 %v1720_v1, %v1720_v1  ;;  %vm2836_vm1 = vcmp.lt.s32.totalorder %v4946_v45, 0  ;;  %vm1744_vm6 = vcmp.eq.s32.totalorder %v5182_v2, 2  ;;  %v2928_v18 = vadd.s32 %v2923_v60, %v2904_v33 }
 0x304   : > { %v2933_v39 = vadd.s32 536870912, %v2932_v52  ;;  %vm2070_vm14 = vcmp.gt.s32.totalorder %v2069_v16, 0  ;;  %vm1741_vm2 = vcmp.eq.s32.totalorder %v5182_v2, 0  ;;  %v5199_v56 = vand.u32 65535, %v5184_v32 }
 0x305   : > { %v1723_v44 = vmul.f32 -0.001358992, %v1722_v7  ;;  %v1730_v57 = vmul.f32 -0.00019511016, %v1722_v7  ;;  %v2071_v9 = vsel %vm2070_vm14, %v2069_v16, 0  ;;  %v5202_v46 = vshrl.u32 %v5184_v32, 16 }
 0x306   : > { %v2934_v54 = vshrl.u32 %v2933_v39, 30  ;;  %v2073_v27 = vand.u32 31, %v2071_v9  ;;  %v5204_v8 = vadd.s32 4294967169, %v2528_v41  ;;  %v5208_v50 = vand.u32 8388607, %v2524_v53 }
 0x307   : > { %v1724_v12 = vadd.f32 0.041655596, %v1723_v44  ;;  %v1731_v42 = vadd.f32 0.008332121, %v1730_v57  ;;  %vm1740_vm15 = vcmp.lt.s32.totalorder %v5182_v2, 2  ;;  %vm1737_vm7 = vweird.f32 %v4926_v14 }
 0x308   : > { %v2935_v3 = vshll.u32 %v2934_v54, 30  ;;  %v2958_v0 = vsub.s32 4, %v2934_v54  ;;  %v5194_v10 = vsub.s32 32, %v2073_v27  ;;  %v5214_v21 = vshrl.u32 %v2071_v9, 5 }
 0x309   : > { %v1725_v22 = vmul.f32 %v1724_v12, %v1722_v7  ;;  %v1732_v43 = vmul.f32 %v1731_v42, %v1722_v7  ;;  %v2076_v37 = vshll.u32 %v3279_v19, %v2073_v27  ;;  %v2079_v59 = vshll.u32 %v3280_v25, %v2073_v27 }
 0x30a   : > { %v2936_v15 = vsub.s32 %v2932_v52, %v2935_v3  ;;  %v2959_v30 = vsel %vm2836_vm1, %v2958_v0, %v2934_v54  ;;  %v2077_v60 = vshrl.u32 %v3280_v25, %v5194_v10  ;;  %v2080_v4 = vshrl.u32 %v5453_v58, %v5194_v10 }
 0x30b   : > { %v1726_v38 = vadd.f32 -0.4999988, %v1725_v22  ;;  %v1733_v35 = vadd.f32 -0.16666654, %v1732_v43  ;;  %v2083_v34 = vshrl.u32 %v3282_v36, %v5194_v10  ;;  %v2086_v62 = vshrl.u32 %v5454_v47, %v5194_v10 }
 0x30c   : > { %vm2937_vm8 = vcmp.lt.s32.totalorder %v2936_v15, 0  ;;  %v2938_v33 = vsub.s32 0, %v2936_v15  ;;  %v2085_v24 = vshll.u32 %v3282_v36, %v2073_v27  ;;  %v2089_v61 = vshrl.u32 %v5455_v51, %v5194_v10 }
 0x30d   : > { %v1727_v55 = vmul.f32 %v1726_v38, %v1722_v7  ;;  %v1734_v49 = vmul.f32 %v1733_v35, %v1722_v7  ;;  %v2961_v48 = vsel %vm5189_vm5, 0, %v2959_v30  ;;  %v2082_v52 = vshll.u32 %v5453_v58, %v2073_v27 }
 0x30e   : > { %v2939_v17 = vsel %vm2937_vm8, %v2938_v33, %v2936_v15  ;;  %v2088_v16 = vshll.u32 %v5454_v47, %v2073_v27  ;;  %v2078_v20 = vor.u32 %v2077_v60, %v2076_v37  ;;  %v2081_v44 = vor.u32 %v2080_v4, %v2079_v59 }
 0x30f   : > { %v1728_v6 = vadd.f32 1.0, %v1727_v55  ;;  %v1735_v28 = vadd.f32 1.0, %v1734_v49  ;;  %v2940_v40 = vclz %v2939_v17  ;;  %v2087_v57 = vor.u32 %v2086_v62, %v2085_v24 }
 0x310   : > { %v2084_v39 = vor.u32 %v2083_v34, %v2082_v52  ;;  %v2090_v9 = vor.u32 %v2089_v61, %v2088_v16  ;;  %vm2091_vm12 = vcmp.lt.s32.totalorder %v5214_v21, 1  ;;  %vm2092_vm9 = vcmp.lt.s32.totalorder %v5214_v21, 2 }
 0x311   : > { %v1736_v26 = vmul.f32 %v1735_v28, %v1720_v1  ;;  %v1745_v13 = vxor.u32 2147483648, %v1728_v6  ;;  %v3136_v7 = vadd.s32 4294967294, %v2940_v40  ;;  %vm2094_vm0 = vcmp.lt.s32.totalorder %v5214_v21, 4 }
 0x312   : > { %vm2093_vm13 = vcmp.lt.s32.totalorder %v5214_v21, 3  ;;  %v2099_v43 = vsel %vm2091_vm12, %v2078_v20, %v2081_v44  ;;  %v2100_v3 = vsel %vm2094_vm0, %v2087_v57, 920167782  ;;  %v2096_v55 = vsel %vm2094_vm0, %v2084_v39, 2102212464 }
 0x313   : > { %v1742_v23 = vxor.u32 2147483648, %v1736_v26  ;;  %v1746_v1 = vsel %vm1744_vm6, %v1745_v13, %v1736_v26  ;;  %vm3137_vm11 = vcmp.lt.s32.totalorder %v3136_v7, 0  ;;  %v2101_v2 = vsel %vm2093_vm13, %v2084_v39, %v2100_v3 }
 0x314   : > { %v2943_v42 = vsel %vm3137_vm11, 0, %v3136_v7  ;;  %v2102_v49 = vsel %vm2092_vm9, %v2099_v43, %v2101_v2  ;;  %v2103_v14 = vsel %vm2091_vm12, %v2081_v44, %v2084_v39  ;;  %v2104_v33 = vsel %vm2094_vm0, %v2090_v9, 1326507024 }
 0x315   : > { %v1743_v12 = vsel %vm1741_vm2, %v1728_v6, %v1742_v23  ;;  %v2944_v27 = vsub.s32 32, %v2943_v42  ;;  %v2948_v41 = vsub.s32 4294967266, %v2943_v42  ;;  %v2945_v0 = vshll.u32 %v2936_v15, %v2943_v42 }
 0x316   : > { %v1747_v54 = vsel %vm1740_vm15, %v1743_v12, %v1746_v1  ;;  %v2105_v60 = vsel %vm2093_vm13, %v2087_v57, %v2104_v33  ;;  %v2132_v6 = vand.u32 65535, %v2102_v49  ;;  %v2133_v28 = vshrl.u32 %v2102_v49, 16 }
 0x317   : > { %v1748_v22 = vsel %vm1737_vm7, nan, %v1747_v54  ;;  %v2946_v38 = vshrl.u32 %v2928_v18, %v2944_v27  ;;  %v2949_v35 = vadd.s32 127, %v2948_v41  ;;  %v2075_v18 = vshrl.u32 %v3279_v19, %v5194_v10 }
 0x318   : > { %2996 = vst [vmem:[%s3870_s25 + $0x38] sm:$0xff] %v1748_v22  ;;  %v2106_v15 = vsel %vm2092_vm9, %v2103_v14, %v2105_v60  ;;  %v2534_v17 = vadd.s32 1, %v5204_v8  ;;  %v2978_v40 = vadd.s32 3, %v2961_v48  ;;  %v2097_v26 = vsel %vm2093_vm13, %v2081_v44, %v2096_v55 }
 0x319   : > { %v2947_v30 = vor.u32 %v2946_v38, %v2945_v0  ;;  %v2950_v37 = vshll.u32 %v2949_v35, 23  ;;  %v2110_v59 = vand.u32 65535, %v2106_v15  ;;  %v2111_v34 = vshrl.u32 %v2106_v15, 16 }
 0x31a   : > { %v2095_v62 = vsel %vm2091_vm12, %v2075_v18, %v2078_v20  ;;  %v2135_v13 = vmul.u32 %v2133_v28, %v5199_v56  ;;  %v2136_v10 = vmul.u32 %v2132_v6, %v5202_v46  ;;  %v2134_v48 = vmul.u32 %v2132_v6, %v5199_v56 }
 0x31b   : > { %v2951_v4 = vor.u32 4788187, %v2950_v37  ;;  %v2954_v61 = vcvt.s32.f32 %v2947_v30  ;;  %v2113_v7 = vmul.u32 %v2111_v34, %v5199_v56  ;;  %v2114_v8 = vmul.u32 %v2110_v59, %v5202_v46 }
 0x31c   : > { %v2137_v52 = vmul.u32 %v2133_v28, %v5202_v46  ;;  %v2138_v16 = vshll.u32 %v2135_v13, 16  ;;  %vm2535_vm10 = vcmp.gt.s32.totalorder %v2534_v17, 0  ;;  %v2112_v20 = vmul.u32 %v2110_v59, %v5199_v56 }
 0x31d   : > { %v2952_v24 = vand.u32 2147483647, %v2951_v4  ;;  %v2115_v44 = vmul.u32 %v2111_v34, %v5202_v46  ;;  %v2116_v57 = vshll.u32 %v2113_v7, 16  ;;  %v2118_v1 = vshll.u32 %v2114_v8, 16 }
 0x31e   : > { %v2140_v39 = vshll.u32 %v2136_v10, 16  ;;  %vm2142_vm3 = vc.u32 %v2134_v48, %v2138_v16  ;;  %v2144_v9 = vadd.s32 %v2138_v16, %v2134_v48  ;;  %v2139_v41 = vshrl.u32 %v2135_v13, 16 }
 0x31f   : > { %v2955_v23 = vmul.f32 %v2954_v61, %v2952_v24  ;;  %vm2120_vm4 = vc.u32 %v2112_v20, %v2116_v57  ;;  %v2122_v42 = vadd.s32 %v2116_v57, %v2112_v20  ;;  %v2143_v54 = vsel %vm2142_vm3, 1, %v3277_v29 }
 0x320   : > { %v2121_v27 = vsel %vm2120_vm4, 1, %v3277_v29  ;;  %v2145_v22 = vadd.s32 %v2143_v54, %v2137_v52  ;;  %vm2146_vm14 = vc.u32 %v2144_v9, %v2140_v39  ;;  %v2536_v35 = vsel %vm2535_vm10, %v2534_v17, 0 }
 0x321   : > { %v2956_v12 = vxor.u32 2147483648, %v2955_v23  ;;  %v2123_v43 = vadd.s32 %v2121_v27, %v2115_v44  ;;  %vm2124_vm6 = vc.u32 %v2122_v42, %v2118_v1  ;;  %v2147_v46 = vsel %vm2146_vm14, 1, %v3277_v29 }
 0x322   : > { %v2125_v0 = vsel %vm2124_vm6, 1, %v3277_v29  ;;  %v2149_v38 = vadd.s32 %v2147_v46, %v2145_v22  ;;  %v2117_v55 = vshrl.u32 %v2113_v7, 16  ;;  %v2538_v14 = vand.u32 31, %v2536_v35 }
 0x323   : > { %v2957_v56 = vsel %vm2836_vm1, %v2956_v12, %v2955_v23  ;;  %v2127_v49 = vadd.s32 %v2125_v0, %v2123_v43  ;;  %v2098_v33 = vsel %vm2092_vm9, %v2095_v62, %v2097_v26  ;;  %v2119_v30 = vshrl.u32 %v2114_v8, 16 }
 0x324   : > { %v2960_v3 = vsel %vm5189_vm5, %v4946_v45, %v2957_v56  ;;  %v2141_v37 = vshrl.u32 %v2136_v10, 16  ;;  %v2150_v60 = vadd.s32 %v2149_v38, %v2139_v41  ;;  %v5285_v11 = vsub.s32 32, %v2538_v14 }
 0x325   : > { %v2962_v2 = vmul.f32 %v2960_v3, %v2960_v3  ;;  %v2128_v15 = vadd.s32 %v2127_v49, %v2117_v55  ;;  %v5287_v28 = vand.u32 3, %v2978_v40  ;;  %v2532_v17 = vor.u32 8388608, %v5208_v50 }
 0x326   : > { %v2151_v4 = vadd.s32 %v2150_v60, %v2141_v37  ;;  %v5292_v24 = vadd.s32 %v2144_v9, %v2140_v39  ;;  %v2152_v21 = vmul.u32 %v5184_v32, %v2098_v33  ;;  %v5295_v26 = vshrl.u32 %v2536_v35, 5 }
 0x327   : > { %v2963_v6 = vmul.f32 -0.001358992, %v2962_v2  ;;  %v2970_v18 = vmul.f32 -0.00019511016, %v2962_v2  ;;  %v5290_v13 = vadd.s32 %v2128_v15, %v2119_v30  ;;  %v2541_v10 = vshll.u32 %v3279_v19, %v2538_v14 }
 0x328   : > { %v2155_v62 = vadd.s32 1, %v2151_v4  ;;  %v2542_v50 = vshrl.u32 %v3280_v25, %v5285_v11  ;;  %v2544_v8 = vshll.u32 %v3280_v25, %v2538_v14  ;;  %v2545_v48 = vshrl.u32 %v5453_v58, %v5285_v11 }
 0x329   : > { %v2964_v59 = vadd.f32 0.041655596, %v2963_v6  ;;  %v2971_v34 = vadd.f32 0.008332121, %v2970_v18  ;;  %vm2154_vm5 = vc.u32 %v5290_v13, %v5292_v24  ;;  %v2548_v32 = vshrl.u32 %v3282_v36, %v5285_v11 }
 0x32a   : > { %v2156_v40 = vsel %vm2154_vm5, %v2155_v62, %v2151_v4  ;;  %v2547_v20 = vshll.u32 %v5453_v58, %v2538_v14  ;;  %v2550_v44 = vshll.u32 %v3282_v36, %v2538_v14  ;;  %v2551_v57 = vshrl.u32 %v5454_v47, %v5285_v11 }
 0x32b   : > { %v2965_v61 = vmul.f32 %v2964_v59, %v2962_v2  ;;  %v2972_v7 = vmul.f32 %v2971_v34, %v2962_v2  ;;  %v2157_v23 = vadd.s32 %v2156_v40, %v2152_v21  ;;  %v2553_v1 = vshll.u32 %v5454_v47, %v2538_v14 }
 0x32c   : > { %v2554_v25 = vshrl.u32 %v5455_v51, %v5285_v11  ;;  %v5314_v42 = vor.u32 %v2542_v50, %v2541_v10  ;;  %v5316_v54 = vor.u32 %v2545_v48, %v2544_v8  ;;  %v5318_v27 = vor.u32 %v2548_v32, %v2547_v20 }
 0x32d   : > { %v2966_v52 = vadd.f32 -0.4999988, %v2965_v61  ;;  %v2973_v16 = vadd.f32 -0.16666654, %v2972_v7  ;;  %v2158_v12 = vadd.s32 536870912, %v2157_v23  ;;  %v2552_v58 = vor.u32 %v2551_v57, %v2550_v44 }
 0x32e   : > { %v2555_v41 = vor.u32 %v2554_v25, %v2553_v1  ;;  %vm2559_vm1 = vcmp.lt.s32.totalorder %v5295_v26, 4  ;;  %vm2980_vm2 = vcmp.lt.s32.totalorder %v5287_v28, 2  ;;  %vm2556_vm15 = vcmp.lt.s32.totalorder %v5295_v26, 1 }
 0x32f   : > { %v2967_v39 = vmul.f32 %v2966_v52, %v2962_v2  ;;  %v2974_v9 = vmul.f32 %v2973_v16, %v2962_v2  ;;  %v5320_v56 = vshrl.u32 %v2158_v12, 30  ;;  %v2565_v47 = vsel %vm2559_vm1, %v2552_v58, 920167782 }
 0x330   : > { %vm2558_vm8 = vcmp.lt.s32.totalorder %v5295_v26, 3  ;;  %vm2984_vm7 = vcmp.eq.s32.totalorder %v5287_v28, 2  ;;  %v2564_v0 = vsel %vm2556_vm15, %v5314_v42, %v5316_v54  ;;  %v2569_v35 = vsel %vm2559_vm1, %v2555_v41, 1326507024 }
 0x331   : > { %v2968_v36 = vadd.f32 1.0, %v2967_v39  ;;  %v2975_v22 = vadd.f32 1.0, %v2974_v9  ;;  %v2160_v46 = vshll.u32 %v5320_v56, 30  ;;  %v2566_v38 = vsel %vm2558_vm8, %v5318_v27, %v2565_v47 }
 0x332   : > { %v2568_v55 = vsel %vm2556_vm15, %v5316_v54, %v5318_v27  ;;  %v5343_v49 = vshll.u32 %v2532_v17, 8  ;;  %vm2981_vm11 = vcmp.eq.s32.totalorder %v5287_v28, 0  ;;  %vm2557_vm12 = vcmp.lt.s32.totalorder %v5295_v26, 2 }
 0x333   : > { %v2976_v51 = vmul.f32 %v2975_v22, %v2960_v3  ;;  %v2985_v43 = vxor.u32 2147483648, %v2968_v36  ;;  %v2161_v2 = vsub.s32 %v2157_v23, %v2160_v46  ;;  %v2570_v33 = vsel %vm2558_vm8, %v2552_v58, %v2569_v35 }
 0x334   : > { %v2567_v60 = vsel %vm2557_vm12, %v2564_v0, %v2566_v38  ;;  %vm2977_vm0 = vweird.f32 %v4946_v45  ;;  %v2571_v18 = vsel %vm2557_vm12, %v2568_v55, %v2570_v33  ;;  %v2573_v17 = vand.u32 65535, %v5343_v49 }
 0x335   : > { %v2982_v3 = vxor.u32 2147483648, %v2976_v51  ;;  %v2986_v14 = vsel %vm2984_vm7, %v2985_v43, %v2976_v51  ;;  %vm2162_vm9 = vcmp.lt.s32.totalorder %v2161_v2, 0  ;;  %v2163_v37 = vsub.s32 0, %v2161_v2 }
 0x336   : > { %v2575_v59 = vand.u32 65535, %v2571_v18  ;;  %v2576_v21 = vshrl.u32 %v2571_v18, 16  ;;  %v2597_v62 = vand.u32 65535, %v2567_v60  ;;  %v2598_v10 = vshrl.u32 %v2567_v60, 16 }
 0x337   : > { %v2983_v30 = vsel %vm2981_vm11, %v2968_v36, %v2982_v3  ;;  %v2164_v4 = vsel %vm2162_vm9, %v2163_v37, %v2161_v2  ;;  %v2574_v61 = vshrl.u32 %v5343_v49, 16  ;;  %v2153_v28 = vadd.s32 %v5292_v24, %v5290_v13 }
 0x338   : > { %v2987_v6 = vsel %vm2980_vm2, %v2983_v30, %v2986_v14  ;;  %v2165_v34 = vclz %v2164_v4  ;;  %v2578_v45 = vmul.u32 %v2576_v21, %v2573_v17  ;;  %v2600_v40 = vmul.u32 %v2598_v10, %v2573_v17 }
 0x339   : > { %v2988_v15 = vsel %vm2977_vm0, nan, %v2987_v6  ;;  %v2579_v50 = vmul.u32 %v2575_v59, %v2574_v61  ;;  %v2577_v8 = vmul.u32 %v2575_v59, %v2573_v17  ;;  %v2599_v32 = vmul.u32 %v2597_v62, %v2573_v17 }
 0x33a   : > { %3004 = vst [vmem:[%s3870_s25 + $0x78] sm:$0xff] %v2988_v15  ;;  %v3121_v7 = vadd.s32 4294967294, %v2165_v34  ;;  %v2581_v48 = vshll.u32 %v2578_v45, 16  ;;  %v2580_v16 = vmul.u32 %v2576_v21, %v2574_v61  ;;  %v2601_v23 = vmul.u32 %v2597_v62, %v2574_v61 }
 0x33b   : > { %v2603_v20 = vshll.u32 %v2600_v40, 16  ;;  %v2602_v1 = vmul.u32 %v2598_v10, %v2574_v61  ;;  %v2583_v39 = vshll.u32 %v2579_v50, 16  ;;  %v2561_v0 = vsel %vm2559_vm1, %v5318_v27, 2102212464 }
 0x33c   : > { %vm3122_vm13 = vcmp.lt.s32.totalorder %v3121_v7, 0  ;;  %vm2585_vm10 = vc.u32 %v2577_v8, %v2581_v48  ;;  %v2587_v12 = vadd.s32 %v2581_v48, %v2577_v8  ;;  %v2605_v41 = vshll.u32 %v2601_v23, 16 }
 0x33d   : > { %v2168_v52 = vsel %vm3122_vm13, 0, %v3121_v7  ;;  %v2586_v9 = vsel %vm2585_vm10, 1, %v3277_v29  ;;  %vm2607_vm3 = vc.u32 %v2599_v32, %v2603_v20  ;;  %v2609_v22 = vadd.s32 %v2603_v20, %v2599_v32 }
 0x33e   : > { %v2169_v44 = vsub.s32 32, %v2168_v52  ;;  %v2173_v57 = vsub.s32 4294967266, %v2168_v52  ;;  %v2170_v25 = vshll.u32 %v2161_v2, %v2168_v52  ;;  %v2588_v58 = vadd.s32 %v2586_v9, %v2580_v16 }
 0x33f   : > { %vm2589_vm4 = vc.u32 %v2587_v12, %v2583_v39  ;;  %v2608_v36 = vsel %vm2607_vm3, 1, %v3277_v29  ;;  %v2582_v38 = vshrl.u32 %v2578_v45, 16  ;;  %vm2611_vm14 = vc.u32 %v2609_v22, %v2605_v41 }
 0x340   : > { %v2171_v13 = vshrl.u32 %v2153_v28, %v2169_v44  ;;  %v2174_v24 = vadd.s32 127, %v2173_v57  ;;  %v2590_v43 = vsel %vm2589_vm4, 1, %v3277_v29  ;;  %v2610_v46 = vadd.s32 %v2608_v36, %v2602_v1 }
 0x341   : > { %v2592_v35 = vadd.s32 %v2590_v43, %v2588_v58  ;;  %v2540_v2 = vshrl.u32 %v3279_v19, %v5285_v11  ;;  %v2612_v55 = vsel %vm2611_vm14, 1, %v3277_v29  ;;  %v2584_v14 = vshrl.u32 %v2579_v50, 16 }
 0x342   : > { %v2172_v47 = vor.u32 %v2171_v13, %v2170_v25  ;;  %v2175_v51 = vshll.u32 %v2174_v24, 23  ;;  %v2604_v30 = vshrl.u32 %v2600_v40, 16  ;;  %v2614_v37 = vadd.s32 %v2612_v55, %v2610_v46 }
 0x343   : > { %v2593_v33 = vadd.s32 %v2592_v35, %v2582_v38  ;;  %v2560_v18 = vsel %vm2556_vm15, %v2540_v2, %v5314_v42  ;;  %v2562_v27 = vsel %vm2558_vm8, %v5316_v54, %v2561_v0  ;;  %v2606_v4 = vshrl.u32 %v2601_v23, 16 }
 0x344   : > { %v2176_v3 = vor.u32 4788187, %v2175_v51  ;;  %v2179_v6 = vcvt.s32.f32 %v2172_v47  ;;  %v2615_v17 = vadd.s32 %v2614_v37, %v2604_v30  ;;  %v2613_v11 = vadd.s32 %v2609_v22, %v2605_v41 }
 0x345   : > { %v2594_v15 = vadd.s32 %v2593_v33, %v2584_v14  ;;  %v2563_v29 = vsel %vm2557_vm12, %v2560_v18, %v2562_v27  ;;  %vm2061_vm5 = vcmp.lt.s32.totalorder %v5157_v63, 0  ;;  %vm5381_vm1 = vcmp.le.f32.partialorder %v2059_v31, 0.7853982 }
 0x346   : > { %v2177_v60 = vand.u32 2147483647, %v2176_v3  ;;  %v2616_v59 = vadd.s32 %v2615_v17, %v2606_v4  ;;  %v2617_v62 = vmul.u32 %v5343_v49, %v2563_v29  ;;  %v2183_v10 = vsub.s32 4, %v5320_v56 }
 0x347   : > { %vm2619_vm6 = vc.u32 %v2594_v15, %v2613_v11  ;;  %vm2202_vm15 = vweird.f32 %v5157_v63  ;;  %v2618_v38 = vadd.s32 %v2613_v11, %v2594_v15  ;;  %vm2526_vm9 = vcmp.lt.s32.totalorder %v5175_v5, 0 }
 0x348   : > { %v2180_v19 = vmul.f32 %v2179_v6, %v2177_v60  ;;  %v2620_v21 = vadd.s32 1, %v2616_v59  ;;  %v2184_v31 = vsel %vm2061_vm5, %v2183_v10, %v5320_v56  ;;  %vm2525_vm0 = vcmp.le.f32.partialorder %v2524_v53, 0.7853982 }
 0x349   : > { %v2186_v49 = vsel %vm5381_vm1, 0, %v2184_v31  ;;  %vm2667_vm4 = vweird.f32 %v5175_v5 }
 0x34a   : > { %v2181_v34 = vxor.u32 2147483648, %v2180_v19  ;;  %v2621_v61 = vsel %vm2619_vm6, %v2620_v21, %v2616_v59  ;;  %v2203_v1 = vadd.s32 3, %v2186_v49 }
 0x34b   : > { %v2622_v45 = vadd.s32 %v2621_v61, %v2617_v62 }
 0x34c   : > { %v2182_v54 = vsel %vm2061_vm5, %v2181_v34, %v2180_v19  ;;  %v2204_v24 = vand.u32 3, %v2203_v1 }
 0x34d   : > { %v2185_v26 = vsel %vm5381_vm1, %v5157_v63, %v2182_v54  ;;  %v2623_v40 = vadd.s32 536870912, %v2622_v45 }
 0x34e   : > { %v2187_v7 = vmul.f32 %v2185_v26, %v2185_v26  ;;  %vm2206_vm8 = vcmp.eq.s32.totalorder %v2204_v24, 0  ;;  %vm2209_vm7 = vcmp.eq.s32.totalorder %v2204_v24, 2  ;;  %vm2205_vm12 = vcmp.lt.s32.totalorder %v2204_v24, 2 }
 0x34f   : > { %v2624_v32 = vshrl.u32 %v2623_v40, 30 }
 0x350   : > { %v2188_v28 = vmul.f32 -0.001358992, %v2187_v7  ;;  %v2195_v50 = vmul.f32 -0.00019511016, %v2187_v7 }
 0x351   : > { %v2625_v23 = vshll.u32 %v2624_v32, 30  ;;  %v2648_v4 = vsub.s32 4, %v2624_v32 }
 0x352   : > { %v2189_v8 = vadd.f32 0.041655596, %v2188_v28  ;;  %v2196_v48 = vadd.f32 0.008332121, %v2195_v50 }
 0x353   : > { %v2626_v57 = vsub.s32 %v2622_v45, %v2625_v23  ;;  %v2649_v59 = vsel %vm2526_vm9, %v2648_v4, %v2624_v32 }
 0x354   : > { %v2190_v52 = vmul.f32 %v2189_v8, %v2187_v7  ;;  %v2197_v16 = vmul.f32 %v2196_v48, %v2187_v7  ;;  %v2651_v42 = vsel %vm2525_vm0, 0, %v2649_v59 }
 0x355   : > { %vm2627_vm2 = vcmp.lt.s32.totalorder %v2626_v57, 0  ;;  %v2628_v9 = vsub.s32 0, %v2626_v57  ;;  %v2668_v61 = vadd.s32 3, %v2651_v42 }
 0x356   : > { %v2191_v20 = vadd.f32 -0.4999988, %v2190_v52  ;;  %v2198_v44 = vadd.f32 -0.16666654, %v2197_v16 }
 0x357   : > { %v2629_v56 = vsel %vm2627_vm2, %v2628_v9, %v2626_v57  ;;  %v2669_v50 = vand.u32 3, %v2668_v61 }
 0x358   : > { %v2192_v25 = vmul.f32 %v2191_v20, %v2187_v7  ;;  %v2199_v39 = vmul.f32 %v2198_v44, %v2187_v7  ;;  %v2630_v58 = vclz %v2629_v56 }
 0x359   : > { %vm2671_vm13 = vcmp.eq.s32.totalorder %v2669_v50, 0  ;;  %vm2674_vm10 = vcmp.eq.s32.totalorder %v2669_v50, 2  ;;  %vm2670_vm3 = vcmp.lt.s32.totalorder %v2669_v50, 2 }
 0x35a   : > { %v2193_v12 = vadd.f32 1.0, %v2192_v25  ;;  %v2200_v13 = vadd.f32 1.0, %v2199_v39  ;;  %v3130_v22 = vadd.s32 4294967294, %v2630_v58 }
 0x35c   : > { %v2201_v41 = vmul.f32 %v2200_v13, %v2185_v26  ;;  %v2210_v36 = vxor.u32 2147483648, %v2193_v12  ;;  %vm3131_vm11 = vcmp.lt.s32.totalorder %v3130_v22, 0 }
 0x35d   : > { %v2633_v46 = vsel %vm3131_vm11, 0, %v3130_v22 }
 0x35e   : > { %v2207_v47 = vxor.u32 2147483648, %v2201_v41  ;;  %v2211_v43 = vsel %vm2209_vm7, %v2210_v36, %v2201_v41  ;;  %v2634_v35 = vsub.s32 32, %v2633_v46  ;;  %v2638_v3 = vsub.s32 4294967266, %v2633_v46 }
 0x35f   : > { %v2635_v55 = vshll.u32 %v2626_v57, %v2633_v46 }
 0x360   : > { %v2208_v51 = vsel %vm2206_vm8, %v2193_v12, %v2207_v47  ;;  %v2636_v14 = vshrl.u32 %v2618_v38, %v2634_v35  ;;  %v2639_v33 = vadd.s32 127, %v2638_v3 }
 0x361   : > { %v2212_v0 = vsel %vm2205_vm12, %v2208_v51, %v2211_v43 }
 0x362   : > { %v2213_v2 = vsel %vm2202_vm15, nan, %v2212_v0  ;;  %v2637_v30 = vor.u32 %v2636_v14, %v2635_v55  ;;  %v2640_v37 = vshll.u32 %v2639_v33, 23 }
 0x363   : > { %2999 = vst [vmem:[%s3870_s25 + $0x50] sm:$0xff] %v2213_v2 }
 0x364   : > { %v2641_v60 = vor.u32 4788187, %v2640_v37  ;;  %v2644_v6 = vcvt.s32.f32 %v2637_v30 }
 0x366   : > { %v2642_v63 = vand.u32 2147483647, %v2641_v60 }
 0x368   : > { %v2645_v18 = vmul.f32 %v2644_v6, %v2642_v63 }
 0x36a   : > { %v2646_v27 = vxor.u32 2147483648, %v2645_v18 }
 0x36c   : > { %v2647_v15 = vsel %vm2526_vm9, %v2646_v27, %v2645_v18 }
 0x36d   : > { %v2650_v17 = vsel %vm2525_vm0, %v5175_v5, %v2647_v15 }
 0x36e   : > { %v2652_v19 = vmul.f32 %v2650_v17, %v2650_v17 }
 0x370   : > { %v2653_v11 = vmul.f32 -0.001358992, %v2652_v19  ;;  %v2660_v29 = vmul.f32 -0.00019511016, %v2652_v19 }
 0x372   : > { %v2654_v34 = vadd.f32 0.041655596, %v2653_v11  ;;  %v2661_v21 = vadd.f32 0.008332121, %v2660_v29 }
 0x374   : > { %v2655_v54 = vmul.f32 %v2654_v34, %v2652_v19  ;;  %v2662_v62 = vmul.f32 %v2661_v21, %v2652_v19 }
 0x376   : > { %v2656_v10 = vadd.f32 -0.4999988, %v2655_v54  ;;  %v2663_v26 = vadd.f32 -0.16666654, %v2662_v62 }
 0x378   : > { %v2657_v7 = vmul.f32 %v2656_v10, %v2652_v19  ;;  %v2664_v53 = vmul.f32 %v2663_v26, %v2652_v19 }
 0x37a   : > { %v2658_v45 = vadd.f32 1.0, %v2657_v7  ;;  %v2665_v28 = vadd.f32 1.0, %v2664_v53 }
 0x37c   : > { %v2666_v40 = vmul.f32 %v2665_v28, %v2650_v17  ;;  %v2675_v31 = vxor.u32 2147483648, %v2658_v45 }
 0x37e   : > { %v2672_v8 = vxor.u32 2147483648, %v2666_v40  ;;  %v2676_v32 = vsel %vm2674_vm10, %v2675_v31, %v2666_v40 }
 0x380   : > { %v2673_v48 = vsel %vm2671_vm13, %v2658_v45, %v2672_v8 }
 0x381   : > { %v2677_v49 = vsel %vm2670_vm3, %v2673_v48, %v2676_v32 }
 0x382   : > { %v2678_v52 = vsel %vm2667_vm4, nan, %v2677_v49 }
 0x383   : > { %3002 = vst [vmem:[%s3870_s25 + $0x68] sm:$0xff] %v2678_v52 }
 0x384   : > { %3237 = shalt.err (!%p3234_p3)
}
 0x385   : > { %s3285_s19 = smov 128   ;;  %s3286_s20 = smov 8  }
 0x386   : > { %3144 = dma.vmem_to_hbm [thread:$0]  (%p3335_p5), %s3019_s30, 2048, %s3021_s2, %s3006_s3, %s3285_s19, %s3285_s19, %s3286_s20  }
 0x387 PF: > { %p3150_p4 = scmp.ge.s32.totalorder %s3272_s9, 2  ;;  %s3035_s21 = sand.u32 1, %s3260_s6  }
 0x388   : > { %s3036_s22 = scalar_lea.sflag [#allocation3], %s3035_s21 }
 0x389   : > { %p3147_p7 = pnand %p3150_p4, %p3339_p6 }
 0x38b   : > { %p3148_p8 = pneg %p3147_p7 }
 0x38d   : > { %3255 = dma.done.wait (%p3148_p8), %s3036_s22, 2048  }
 0x38e   : > { %3257 = vsyncadd (%p3148_p8), %s3036_s22, 4294965248  ;;  %p11_p9 = scmp.ge.s32.totalorder %s3322_s12, 4   ;;  %s5476_s6 = smov %s3264_s7 }
 0x38f   : > { %s5477_s7 = smov %s3268_s8  ;;  %s5478_s8 = smov %s3333_s15 }
 0x390   : > { %s5479_s9 = smov %s3322_s12  ;;  %13 = sbr.rel (!%p11_p9) target bundleno = 3 (0x3), region = 59 }
 0x395   :  { %3042 = vsyncpa [#allocation3], 1 }
 0x396   :  { %3044 = vsyncpa [#allocation3 + $0x1], 1 }

</bundles_post_ra>
